<compile_context>
chip_gen: v7x
topology: tpu7x:2x2x1
jax: 0.10.0
libtpu: 0.0.40
codegen_flags: <defaults>
</compile_context>

<pallas_src>
import functools

import jax
import jax.numpy as jnp
from jax.experimental import pallas as pl
from jax.experimental.pallas import tpu as pltpu


_TAPS = tuple((dy, dx) for dy in range(3) for dx in range(3))


def _leaky(v):
    # LeakyReLU(0.2) == max(v, 0.2*v) for positive slope < 1: one VPU max
    # instead of compare + select.
    return jnp.maximum(v, 0.2 * v)


def _downconv_kernel(W, TH, Cin, Cout, pooling,
                     core_ref, top_ref, bot_ref,
                     w1_ref, b1_ref, w2_ref, b2_ref,
                     *outs_and_scratch):
    """One (batch element, row slab) per grid step.

    core_ref : (1, TH, W, Cin)     rows [i*TH, (i+1)*TH) of the image
    top_ref  : (1, 1, 2, W, Cin)   the 2 rows above the slab (zeros at border)
    bot_ref  : (1, 1, 2, W, Cin)   the 2 rows below the slab (zeros at border)
    w1_ref   : (9*Cin, Cout)       conv1 weights, row order (dy, dx, ci)
    b1_ref   : (1, Cout)
    w2_ref   : (9*Cout, Cout)
    b2_ref   : (1, Cout)
    outputs  : [pool_ref (1, TH//2, W//2, Cout)], prior_ref (1, TH, W, Cout)
    scratch  : h1pad (TH+2, W+2, Cout)  W-padded conv1 output (+1 row halo)

    Scoped (lifetime-disjoint) VMEM, allocated via pl.run_scoped so the two
    im2col buffers reuse the same region:
      scope A: xpad  (TH+4, W+2, Cin),  p1buf (TH+2, W, 9*Cin)
      scope B: p2buf (TH,   W, 9*Cout)
    """
    if pooling:
        pool_ref, prior_ref, h1pad = outs_and_scratch
    else:
        prior_ref, h1pad = outs_and_scratch

    f32 = jnp.float32
    i = pl.program_id(1)
    n_slabs = pl.num_programs(1)

    # ---- conv1: stage slab, im2col, single MXU matmul (K = 9*Cin) ----------
    # conv1 is evaluated on TH+2 output rows (one halo row above/below) so
    # conv2 gets its 1-row halo without talking to neighbouring slabs.
    def conv1_scope(xpad, p1buf):
        # W zero-pad columns re-zeroed every step (cheap) so correctness never
        # depends on scratch state surviving a particular grid partition.
        xpad[:, 0:1, :] = jnp.zeros((TH + 4, 1, Cin), f32)
        xpad[:, W + 1:W + 2, :] = jnp.zeros((TH + 4, 1, Cin), f32)
        xpad[0:2, 1:W + 1, :] = top_ref[0, 0].astype(f32)
        xpad[2:TH + 2, 1:W + 1, :] = core_ref[0].astype(f32)
        xpad[TH + 2:TH + 4, 1:W + 1, :] = bot_ref[0, 0].astype(f32)

        for k, (dy, dx) in enumerate(_TAPS):
            p1buf[:, :, k * Cin:(k + 1) * Cin] = xpad[dy:dy + TH + 2, dx:dx + W, :]
        w1 = w1_ref[...].astype(f32)                       # cast hoisted (once)
        y1 = jax.lax.dot_general(p1buf[...], w1,
                                 (((2,), (0,)), ((), ())),
                                 preferred_element_type=f32)    # (TH+2, W, Cout)
        y1 = y1 + b1_ref[...].astype(f32)
        # Stage conv1 output into the W-padded persistent buffer.
        h1pad[:, 1:W + 1, :] = _leaky(y1)

    pl.run_scoped(conv1_scope,
                  pltpu.VMEM((TH + 4, W + 2, Cin), f32),
                  pltpu.VMEM((TH + 2, W, 9 * Cin), f32))

    # ---- conv2 padding of the conv1 output ----------------------------------
    h1pad[:, 0:1, :] = jnp.zeros((TH + 2, 1, Cout), f32)
    h1pad[:, W + 1:W + 2, :] = jnp.zeros((TH + 2, 1, Cout), f32)

    @pl.when(i == 0)
    def _():      # conv2's zero padding above the first image row
        h1pad[0:1, :, :] = jnp.zeros((1, W + 2, Cout), f32)

    @pl.when(i == n_slabs - 1)
    def _():      # conv2's zero padding below the last image row
        h1pad[TH + 1:TH + 2, :, :] = jnp.zeros((1, W + 2, Cout), f32)

    # ---- conv2: im2col, single MXU matmul (K = 9*Cout), pool, store --------
    def conv2_scope(p2buf):
        for k, (dy, dx) in enumerate(_TAPS):
            p2buf[:, :, k * Cout:(k + 1) * Cout] = h1pad[dy:dy + TH, dx:dx + W, :]
        w2 = w2_ref[...].astype(f32)
        y2 = jax.lax.dot_general(p2buf[...], w2,
                                 (((2,), (0,)), ((), ())),
                                 preferred_element_type=f32)    # (TH, W, Cout)
        y2 = y2 + b2_ref[...].astype(f32)
        prior = _leaky(y2)

        prior_ref[0] = prior.astype(prior_ref.dtype)
        if pooling:
            # MaxPool2d(kernel=2, stride=2) on the slab.
            pooled = prior.reshape(TH // 2, 2, W // 2, 2, Cout).max(axis=(1, 3))
            pool_ref[0] = pooled.astype(pool_ref.dtype)

    pl.run_scoped(conv2_scope, pltpu.VMEM((TH, W, 9 * Cout), f32))


def _pick_tile_h(H, target_rows=32):
    """Largest even divisor of H that is <= target_rows (fallback: H)."""
    best = H
    for th in range(2, min(H, target_rows) + 1, 2):
        if H % th == 0:
            best = th
    return best


def down_conv(x_nchw, w1_hwio, b1, w2_hwio, b2, *, pooling=True, tile_h=None):
    """Forward pass of DownConv. Returns (x_out, prior) in NCHW."""
    N, Cin, H, W = x_nchw.shape
    Cout = w1_hwio.shape[3]
    if pooling:
        assert H % 2 == 0 and W % 2 == 0

    TH = _pick_tile_h(H) if tile_h is None else tile_h
    assert H % TH == 0, "tile_h must divide H"
    if pooling:
        assert TH % 2 == 0, "tile_h must be even when pooling"
    nb = H // TH
    dt = x_nchw.dtype

    # Layout plumbing: NCHW -> NHWC (channels on the TPU lane axis).
    x_nhwc = jnp.transpose(x_nchw, (0, 2, 3, 1))            # (N, H, W, Cin)

    # Halo side inputs: the 2 rows above / below every row slab (zeros at the
    # image border).  Replaces a whole-image jnp.pad; touches only 4/TH of x.
    xr = x_nhwc.reshape(N, nb, TH, W, Cin)
    zrows = jnp.zeros((N, 1, 2, W, Cin), dt)
    halo_top = jnp.concatenate([zrows, xr[:, :nb - 1, TH - 2:, :, :]], axis=1)
    halo_bot = jnp.concatenate([xr[:, 1:, :2, :, :], zrows], axis=1)

    # Weights as (9*C, Cout) im2col matrices; row order (dy, dx, ci) matches
    # the patch buffers built inside the kernel.  Biases as (1, Cout).
    w1_mat = w1_hwio.reshape(9 * Cin, Cout)
    w2_mat = w2_hwio.reshape(9 * Cout, Cout)
    b1_2d = b1.reshape(1, Cout)
    b2_2d = b2.reshape(1, Cout)

    kernel = functools.partial(_downconv_kernel, W, TH, Cin, Cout, pooling)

    in_specs = [
        pl.BlockSpec((1, TH, W, Cin), lambda n, i: (n, i, 0, 0)),
        pl.BlockSpec((1, 1, 2, W, Cin), lambda n, i: (n, i, 0, 0, 0)),
        pl.BlockSpec((1, 1, 2, W, Cin), lambda n, i: (n, i, 0, 0, 0)),
        pl.BlockSpec((9 * Cin, Cout), lambda n, i: (0, 0)),
        pl.BlockSpec((1, Cout), lambda n, i: (0, 0)),
        pl.BlockSpec((9 * Cout, Cout), lambda n, i: (0, 0)),
        pl.BlockSpec((1, Cout), lambda n, i: (0, 0)),
    ]

    prior_shape = jax.ShapeDtypeStruct((N, H, W, Cout), dt)
    prior_spec = pl.BlockSpec((1, TH, W, Cout), lambda n, i: (n, i, 0, 0))

    if pooling:
        out_shape = (jax.ShapeDtypeStruct((N, H // 2, W // 2, Cout), dt),
                     prior_shape)
        out_specs = (pl.BlockSpec((1, TH // 2, W // 2, Cout),
                                  lambda n, i: (n, i, 0, 0)),
                     prior_spec)
    else:
        out_shape = prior_shape
        out_specs = prior_spec

    # Only the conv1 output buffer persists across the whole body; the big
    # im2col buffers live in pl.run_scoped regions inside the kernel.
    scratch_shapes = [
        pltpu.VMEM((TH + 2, W + 2, Cout), jnp.float32),     # h1pad
    ]

    result = pl.pallas_call(
        kernel,
        out_shape=out_shape,
        grid_spec=pltpu.PrefetchScalarGridSpec(
            num_scalar_prefetch=0,
            grid=(N, nb),
            in_specs=in_specs,
            out_specs=out_specs,
            scratch_shapes=scratch_shapes,
        ),
        compiler_params=pltpu.CompilerParams(
            dimension_semantics=("parallel", "parallel"),
            # Explicit scoped-VMEM limit; safe on v5e/v6e (128 MiB) and v7x
            # (64 MiB).  TH is sized so the per-slab buffers stay well inside.
            vmem_limit_bytes=32 * 1024 * 1024,
        ),
    )(x_nhwc, halo_top, halo_bot, w1_mat, b1_2d, w2_mat, b2_2d)

    if pooling:
        pooled_nhwc, prior_nhwc = result
        x_out = jnp.transpose(pooled_nhwc, (0, 3, 1, 2))
    else:
        prior_nhwc = result
        x_out = jnp.transpose(prior_nhwc, (0, 3, 1, 2))
    prior_out = jnp.transpose(prior_nhwc, (0, 3, 1, 2))
    return x_out, prior_out


# ---------------------------- pure-JAX reference ----------------------------
def _ref_forward(x_nchw, w1_hwio, b1, w2_hwio, b2, pooling=True):
    def conv(x, w_hwio, b):
        w_oihw = jnp.transpose(w_hwio, (3, 2, 0, 1))
        y = jax.lax.conv_general_dilated(
            x, w_oihw, window_strides=(1, 1), padding="SAME",
            dimension_numbers=("NCHW", "OIHW", "NCHW"))
        return y + b[None, :, None, None]

    def leaky(v):
        return jnp.where(v > 0, v, 0.2 * v)

    h = leaky(conv(x_nchw, w1_hwio, b1))
    prior = leaky(conv(h, w2_hwio, b2))
    if pooling:
        N, C, H, W = prior.shape
        pooled = prior.reshape(N, C, H // 2, 2, W // 2, 2).max(axis=(3, 5))
        return pooled, prior
    return prior, prior


if __name__ == "__main__":
    # Small shapes consistent with the module: batch=2, in=4, out=8, 16x16.
    N, Cin, Cout, H, W = 2, 4, 8, 16, 16
    key = jax.random.PRNGKey(0)
    kx, kw1, kb1, kw2, kb2 = jax.random.split(key, 5)

    x = jax.random.normal(kx, (N, Cin, H, W), jnp.float32)

    # Deterministic PyTorch-like init: U(-1/sqrt(fan_in), 1/sqrt(fan_in)).
    fan1 = Cin * 3 * 3
    fan2 = Cout * 3 * 3
    w1 = jax.random.uniform(kw1, (3, 3, Cin, Cout), jnp.float32,
                            -1.0 / jnp.sqrt(fan1), 1.0 / jnp.sqrt(fan1))
    b1 = jax.random.uniform(kb1, (Cout,), jnp.float32,
                            -1.0 / jnp.sqrt(fan1), 1.0 / jnp.sqrt(fan1))
    w2 = jax.random.uniform(kw2, (3, 3, Cout, Cout), jnp.float32,
                            -1.0 / jnp.sqrt(fan2), 1.0 / jnp.sqrt(fan2))
    b2 = jax.random.uniform(kb2, (Cout,), jnp.float32,
                            -1.0 / jnp.sqrt(fan2), 1.0 / jnp.sqrt(fan2))

    # tile_h=8 -> 2 row slabs per image, exercising the halo path.
    x_out, prior = down_conv(x, w1, b1, w2, b2, pooling=True, tile_h=8)
    jax.block_until_ready((x_out, prior))

    ref_out, ref_prior = _ref_forward(x, w1, b1, w2, b2, pooling=True)
    assert x_out.shape == (N, Cout, H // 2, W // 2)
    assert prior.shape == (N, Cout, H, W)
    assert jnp.allclose(x_out, ref_out, atol=2e-4, rtol=2e-4), \
        float(jnp.max(jnp.abs(x_out - ref_out)))
    assert jnp.allclose(prior, ref_prior, atol=2e-4, rtol=2e-4), \
        float(jnp.max(jnp.abs(prior - ref_prior)))

    # Also exercise the no-pooling branch.
    x_out2, prior2 = down_conv(x, w1, b1, w2, b2, pooling=False, tile_h=8)
    jax.block_until_ready((x_out2, prior2))
    ref_out2, ref_prior2 = _ref_forward(x, w1, b1, w2, b2, pooling=False)
    assert jnp.allclose(prior2, ref_prior2, atol=2e-4, rtol=2e-4)
    assert jnp.allclose(x_out2, ref_out2, atol=2e-4, rtol=2e-4)

    print("KERNEL_OK")
</pallas_src>

<mosaic_0001>
module attributes {stable_mosaic.version = 11 : i64} {
  func.func @_downconv_kernel(%arg0: i32, %arg1: i32, %arg2: memref<1x8x16x4xf32, #tpu.memory_space<vmem>>, %arg3: memref<1x1x2x16x4xf32, #tpu.memory_space<vmem>>, %arg4: memref<1x1x2x16x4xf32, #tpu.memory_space<vmem>>, %arg5: memref<36x8xf32, #tpu.memory_space<vmem>>, %arg6: memref<1x8xf32, #tpu.memory_space<vmem>>, %arg7: memref<72x8xf32, #tpu.memory_space<vmem>>, %arg8: memref<1x8xf32, #tpu.memory_space<vmem>>, %arg9: memref<1x4x8x8xf32, #tpu.memory_space<vmem>>, %arg10: memref<1x8x16x8xf32, #tpu.memory_space<vmem>>, %arg11: memref<10x18x8xf32, #tpu.memory_space<vmem>>) attributes {dimension_semantics = [#tpu.dimension_semantics<parallel>, #tpu.dimension_semantics<parallel>], iteration_bounds = array<i64: 2, 2>, scalar_prefetch = 0 : i64, scratch_operands = 1 : i64, tpu.core_type = #tpu.core_type<tc>, window_params = [{transform_indices = @transform_0, window_bounds = array<i64: 1, 8, 16, 4>}, {transform_indices = @transform_1, window_bounds = array<i64: 1, 1, 2, 16, 4>}, {transform_indices = @transform_2, window_bounds = array<i64: 1, 1, 2, 16, 4>}, {pipeline_mode = #tpu.pipeline_mode<synchronous>, transform_indices = @transform_3, window_bounds = array<i64: 36, 8>}, {pipeline_mode = #tpu.pipeline_mode<synchronous>, transform_indices = @transform_4, window_bounds = array<i64: 1, 8>}, {pipeline_mode = #tpu.pipeline_mode<synchronous>, transform_indices = @transform_5, window_bounds = array<i64: 72, 8>}, {pipeline_mode = #tpu.pipeline_mode<synchronous>, transform_indices = @transform_6, window_bounds = array<i64: 1, 8>}, {transform_indices = @transform_7, window_bounds = array<i64: 1, 4, 8, 8>}, {transform_indices = @transform_8, window_bounds = array<i64: 1, 8, 16, 8>}]} {
    "tpu.region"() ({
      %alloca = memref.alloca() : memref<12x18x4xf32, #tpu.memory_space<vmem>>
      %alloca_7 = memref.alloca() : memref<10x16x36xf32, #tpu.memory_space<vmem>>
      %cst_8 = arith.constant 0.000000e+00 : f32
      %10 = vector.broadcast %cst_8 : f32 to vector<12x1x4xf32>
      %c0_9 = arith.constant 0 : index
      %c0_10 = arith.constant 0 : index
      %c0_11 = arith.constant 0 : index
      %11 = vector.load %alloca[%c0_9, %c0_10, %c0_11] : memref<12x18x4xf32, #tpu.memory_space<vmem>>, vector<12x1x4xf32>
      tpu.vector_store %alloca[%c0_9, %c0_10, %c0_11], %10 {strides = array<i32>} : memref<12x18x4xf32, #tpu.memory_space<vmem>>, vector<12x1x4xf32>,
      %cst_12 = arith.constant 0.000000e+00 : f32
      %12 = vector.broadcast %cst_12 : f32 to vector<12x1x4xf32>
      %c0_13 = arith.constant 0 : index
      %c17_14 = arith.constant 17 : index
      %c0_15 = arith.constant 0 : index
      %13 = vector.load %alloca[%c0_13, %c17_14, %c0_15] : memref<12x18x4xf32, #tpu.memory_space<vmem>>, vector<12x1x4xf32>
      tpu.vector_store %alloca[%c0_13, %c17_14, %c0_15], %12 {strides = array<i32>} : memref<12x18x4xf32, #tpu.memory_space<vmem>>, vector<12x1x4xf32>,
      %c0_16 = arith.constant 0 : index
      %c0_17 = arith.constant 0 : index
      %c0_18 = arith.constant 0 : index
      %c0_19 = arith.constant 0 : index
      %c0_20 = arith.constant 0 : index
      %14 = vector.load %arg3[%c0_16, %c0_17, %c0_18, %c0_19, %c0_20] : memref<1x1x2x16x4xf32, #tpu.memory_space<vmem>>, vector<1x1x2x16x4xf32>
      %15 = vector.shape_cast %14 : vector<1x1x2x16x4xf32> to vector<2x16x4xf32>
      %c0_21 = arith.constant 0 : index
      %c1 = arith.constant 1 : index
      %c0_22 = arith.constant 0 : index
      %16 = vector.load %alloca[%c0_21, %c1, %c0_22] : memref<12x18x4xf32, #tpu.memory_space<vmem>>, vector<2x16x4xf32>
      tpu.vector_store %alloca[%c0_21, %c1, %c0_22], %15 {strides = array<i32>} : memref<12x18x4xf32, #tpu.memory_space<vmem>>, vector<2x16x4xf32>,
      %c0_23 = arith.constant 0 : index
      %c0_24 = arith.constant 0 : index
      %c0_25 = arith.constant 0 : index
      %c0_26 = arith.constant 0 : index
      %17 = vector.load %arg2[%c0_23, %c0_24, %c0_25, %c0_26] : memref<1x8x16x4xf32, #tpu.memory_space<vmem>>, vector<1x8x16x4xf32>
      %18 = vector.shape_cast %17 : vector<1x8x16x4xf32> to vector<8x16x4xf32>
      %c2 = arith.constant 2 : index
      %c1_27 = arith.constant 1 : index
      %c0_28 = arith.constant 0 : index
      %19 = vector.load %alloca[%c2, %c1_27, %c0_28] : memref<12x18x4xf32, #tpu.memory_space<vmem>>, vector<8x16x4xf32>
      tpu.vector_store %alloca[%c2, %c1_27, %c0_28], %18 {strides = array<i32>} : memref<12x18x4xf32, #tpu.memory_space<vmem>>, vector<8x16x4xf32>,
      %c0_29 = arith.constant 0 : index
      %c0_30 = arith.constant 0 : index
      %c0_31 = arith.constant 0 : index
      %c0_32 = arith.constant 0 : index
      %c0_33 = arith.constant 0 : index
      %20 = vector.load %arg4[%c0_29, %c0_30, %c0_31, %c0_32, %c0_33] : memref<1x1x2x16x4xf32, #tpu.memory_space<vmem>>, vector<1x1x2x16x4xf32>
      %21 = vector.shape_cast %20 : vector<1x1x2x16x4xf32> to vector<2x16x4xf32>
      %c10 = arith.constant 10 : index
      %c1_34 = arith.constant 1 : index
      %c0_35 = arith.constant 0 : index
      %22 = vector.load %alloca[%c10, %c1_34, %c0_35] : memref<12x18x4xf32, #tpu.memory_space<vmem>>, vector<2x16x4xf32>
      tpu.vector_store %alloca[%c10, %c1_34, %c0_35], %21 {strides = array<i32>} : memref<12x18x4xf32, #tpu.memory_space<vmem>>, vector<2x16x4xf32>,
      %c0_36 = arith.constant 0 : index
      %c0_37 = arith.constant 0 : index
      %c0_38 = arith.constant 0 : index
      %23 = vector.load %alloca[%c0_36, %c0_37, %c0_38] : memref<12x18x4xf32, #tpu.memory_space<vmem>>, vector<10x16x4xf32>
      %c0_39 = arith.constant 0 : index
      %c0_40 = arith.constant 0 : index
      %c0_41 = arith.constant 0 : index
      %24 = vector.load %alloca_7[%c0_39, %c0_40, %c0_41] : memref<10x16x36xf32, #tpu.memory_space<vmem>>, vector<10x16x4xf32>
      tpu.vector_store %alloca_7[%c0_39, %c0_40, %c0_41], %23 {strides = array<i32>} : memref<10x16x36xf32, #tpu.memory_space<vmem>>, vector<10x16x4xf32>,
      %c0_42 = arith.constant 0 : index
      %c1_43 = arith.constant 1 : index
      %c0_44 = arith.constant 0 : index
      %25 = vector.load %alloca[%c0_42, %c1_43, %c0_44] : memref<12x18x4xf32, #tpu.memory_space<vmem>>, vector<10x16x4xf32>
      %c0_45 = arith.constant 0 : index
      %c0_46 = arith.constant 0 : index
      %c4 = arith.constant 4 : index
      %26 = vector.load %alloca_7[%c0_45, %c0_46, %c4] : memref<10x16x36xf32, #tpu.memory_space<vmem>>, vector<10x16x4xf32>
      tpu.vector_store %alloca_7[%c0_45, %c0_46, %c4], %25 {strides = array<i32>} : memref<10x16x36xf32, #tpu.memory_space<vmem>>, vector<10x16x4xf32>,
      %c0_47 = arith.constant 0 : index
      %c2_48 = arith.constant 2 : index
      %c0_49 = arith.constant 0 : index
      %27 = vector.load %alloca[%c0_47, %c2_48, %c0_49] : memref<12x18x4xf32, #tpu.memory_space<vmem>>, vector<10x16x4xf32>
      %c0_50 = arith.constant 0 : index
      %c0_51 = arith.constant 0 : index
      %c8 = arith.constant 8 : index
      %28 = vector.load %alloca_7[%c0_50, %c0_51, %c8] : memref<10x16x36xf32, #tpu.memory_space<vmem>>, vector<10x16x4xf32>
      tpu.vector_store %alloca_7[%c0_50, %c0_51, %c8], %27 {strides = array<i32>} : memref<10x16x36xf32, #tpu.memory_space<vmem>>, vector<10x16x4xf32>,
      %c1_52 = arith.constant 1 : index
      %c0_53 = arith.constant 0 : index
      %c0_54 = arith.constant 0 : index
      %29 = vector.load %alloca[%c1_52, %c0_53, %c0_54] : memref<12x18x4xf32, #tpu.memory_space<vmem>>, vector<10x16x4xf32>
      %c0_55 = arith.constant 0 : index
      %c0_56 = arith.constant 0 : index
      %c12 = arith.constant 12 : index
      %30 = vector.load %alloca_7[%c0_55, %c0_56, %c12] : memref<10x16x36xf32, #tpu.memory_space<vmem>>, vector<10x16x4xf32>
      tpu.vector_store %alloca_7[%c0_55, %c0_56, %c12], %29 {strides = array<i32>} : memref<10x16x36xf32, #tpu.memory_space<vmem>>, vector<10x16x4xf32>,
      %c1_57 = arith.constant 1 : index
      %c1_58 = arith.constant 1 : index
      %c0_59 = arith.constant 0 : index
      %31 = vector.load %alloca[%c1_57, %c1_58, %c0_59] : memref<12x18x4xf32, #tpu.memory_space<vmem>>, vector<10x16x4xf32>
      %c0_60 = arith.constant 0 : index
      %c0_61 = arith.constant 0 : index
      %c16 = arith.constant 16 : index
      %32 = vector.load %alloca_7[%c0_60, %c0_61, %c16] : memref<10x16x36xf32, #tpu.memory_space<vmem>>, vector<10x16x4xf32>
      tpu.vector_store %alloca_7[%c0_60, %c0_61, %c16], %31 {strides = array<i32>} : memref<10x16x36xf32, #tpu.memory_space<vmem>>, vector<10x16x4xf32>,
      %c1_62 = arith.constant 1 : index
      %c2_63 = arith.constant 2 : index
      %c0_64 = arith.constant 0 : index
      %33 = vector.load %alloca[%c1_62, %c2_63, %c0_64] : memref<12x18x4xf32, #tpu.memory_space<vmem>>, vector<10x16x4xf32>
      %c0_65 = arith.constant 0 : index
      %c0_66 = arith.constant 0 : index
      %c20 = arith.constant 20 : index
      %34 = vector.load %alloca_7[%c0_65, %c0_66, %c20] : memref<10x16x36xf32, #tpu.memory_space<vmem>>, vector<10x16x4xf32>
      tpu.vector_store %alloca_7[%c0_65, %c0_66, %c20], %33 {strides = array<i32>} : memref<10x16x36xf32, #tpu.memory_space<vmem>>, vector<10x16x4xf32>,
      %c2_67 = arith.constant 2 : index
      %c0_68 = arith.constant 0 : index
      %c0_69 = arith.constant 0 : index
      %35 = vector.load %alloca[%c2_67, %c0_68, %c0_69] : memref<12x18x4xf32, #tpu.memory_space<vmem>>, vector<10x16x4xf32>
      %c0_70 = arith.constant 0 : index
      %c0_71 = arith.constant 0 : index
      %c24 = arith.constant 24 : index
      %36 = vector.load %alloca_7[%c0_70, %c0_71, %c24] : memref<10x16x36xf32, #tpu.memory_space<vmem>>, vector<10x16x4xf32>
      tpu.vector_store %alloca_7[%c0_70, %c0_71, %c24], %35 {strides = array<i32>} : memref<10x16x36xf32, #tpu.memory_space<vmem>>, vector<10x16x4xf32>,
      %c2_72 = arith.constant 2 : index
      %c1_73 = arith.constant 1 : index
      %c0_74 = arith.constant 0 : index
      %37 = vector.load %alloca[%c2_72, %c1_73, %c0_74] : memref<12x18x4xf32, #tpu.memory_space<vmem>>, vector<10x16x4xf32>
      %c0_75 = arith.constant 0 : index
      %c0_76 = arith.constant 0 : index
      %c28 = arith.constant 28 : index
      %38 = vector.load %alloca_7[%c0_75, %c0_76, %c28] : memref<10x16x36xf32, #tpu.memory_space<vmem>>, vector<10x16x4xf32>
      tpu.vector_store %alloca_7[%c0_75, %c0_76, %c28], %37 {strides = array<i32>} : memref<10x16x36xf32, #tpu.memory_space<vmem>>, vector<10x16x4xf32>,
      %c2_77 = arith.constant 2 : index
      %c2_78 = arith.constant 2 : index
      %c0_79 = arith.constant 0 : index
      %39 = vector.load %alloca[%c2_77, %c2_78, %c0_79] : memref<12x18x4xf32, #tpu.memory_space<vmem>>, vector<10x16x4xf32>
      %c0_80 = arith.constant 0 : index
      %c0_81 = arith.constant 0 : index
      %c32 = arith.constant 32 : index
      %40 = vector.load %alloca_7[%c0_80, %c0_81, %c32] : memref<10x16x36xf32, #tpu.memory_space<vmem>>, vector<10x16x4xf32>
      tpu.vector_store %alloca_7[%c0_80, %c0_81, %c32], %39 {strides = array<i32>} : memref<10x16x36xf32, #tpu.memory_space<vmem>>, vector<10x16x4xf32>,
      %c0_82 = arith.constant 0 : index
      %c0_83 = arith.constant 0 : index
      %41 = vector.load %arg5[%c0_82, %c0_83] : memref<36x8xf32, #tpu.memory_space<vmem>>, vector<36x8xf32>
      %c0_84 = arith.constant 0 : index
      %c0_85 = arith.constant 0 : index
      %c0_86 = arith.constant 0 : index
      %42 = vector.load %alloca_7[%c0_84, %c0_85, %c0_86] : memref<10x16x36xf32, #tpu.memory_space<vmem>>, vector<10x16x36xf32>
      %cst_87 = arith.constant dense<0.000000e+00> : vector<10x16x8xf32>
      %43 = tpu.matmul %42, %41, %cst_87 {dimension_numbers = #tpu.dot_dimension_numbers<[2], [0], [0, 1], [1], [0, 0, 0, 1, 1, 1], [], []>} : vector<10x16x36xf32>, vector<36x8xf32>, vector<10x16x8xf32> -> vector<10x16x8xf32>
      %c0_88 = arith.constant 0 : index
      %c0_89 = arith.constant 0 : index
      %44 = vector.load %arg6[%c0_88, %c0_89] : memref<1x8xf32, #tpu.memory_space<vmem>>, vector<1x8xf32>
      %45 = vector.shape_cast %44 : vector<1x8xf32> to vector<1x1x8xf32>
      %46 = vector.broadcast %45 : vector<1x1x8xf32> to vector<10x16x8xf32>
      %47 = arith.addf %43, %46 : vector<10x16x8xf32>
      %cst_90 = arith.constant 2.000000e-01 : f32
      %48 = vector.broadcast %cst_90 : f32 to vector<10x16x8xf32>
      %49 = arith.mulf %48, %47 : vector<10x16x8xf32>
      %50 = arith.maximumf %47, %49 : vector<10x16x8xf32>
      %c0_91 = arith.constant 0 : index
      %c1_92 = arith.constant 1 : index
      %c0_93 = arith.constant 0 : index
      %51 = vector.load %arg11[%c0_91, %c1_92, %c0_93] : memref<10x18x8xf32, #tpu.memory_space<vmem>>, vector<10x16x8xf32>
      tpu.vector_store %arg11[%c0_91, %c1_92, %c0_93], %50 {strides = array<i32>} : memref<10x18x8xf32, #tpu.memory_space<vmem>>, vector<10x16x8xf32>,
      tpu.yield
    }) : () -> ()
    %cst = arith.constant 0.000000e+00 : f32
    %0 = vector.broadcast %cst : f32 to vector<10x1x8xf32>
    %c0 = arith.constant 0 : index
    %c0_0 = arith.constant 0 : index
    %c0_1 = arith.constant 0 : index
    %1 = vector.load %arg11[%c0, %c0_0, %c0_1] : memref<10x18x8xf32, #tpu.memory_space<vmem>>, vector<10x1x8xf32>
    tpu.vector_store %arg11[%c0, %c0_0, %c0_1], %0 {strides = array<i32>} : memref<10x18x8xf32, #tpu.memory_space<vmem>>, vector<10x1x8xf32>,
    %cst_2 = arith.constant 0.000000e+00 : f32
    %2 = vector.broadcast %cst_2 : f32 to vector<10x1x8xf32>
    %c0_3 = arith.constant 0 : index
    %c17 = arith.constant 17 : index
    %c0_4 = arith.constant 0 : index
    %3 = vector.load %arg11[%c0_3, %c17, %c0_4] : memref<10x18x8xf32, #tpu.memory_space<vmem>>, vector<10x1x8xf32>
    tpu.vector_store %arg11[%c0_3, %c17, %c0_4], %2 {strides = array<i32>} : memref<10x18x8xf32, #tpu.memory_space<vmem>>, vector<10x1x8xf32>,
    %c0_i32 = arith.constant 0 : i32
    %4 = arith.cmpi eq, %arg1, %c0_i32 : i32
    %5 = arith.extui %4 : i1 to i32
    %c0_i32_5 = arith.constant 0 : i32
    %6 = arith.cmpi ne, %5, %c0_i32_5 : i32
    scf.if %6 {
      %cst_7 = arith.constant 0.000000e+00 : f32
      %10 = vector.broadcast %cst_7 : f32 to vector<1x18x8xf32>
      %c0_8 = arith.constant 0 : index
      %c0_9 = arith.constant 0 : index
      %c0_10 = arith.constant 0 : index
      %11 = vector.load %arg11[%c0_8, %c0_9, %c0_10] : memref<10x18x8xf32, #tpu.memory_space<vmem>>, vector<1x18x8xf32>
      tpu.vector_store %arg11[%c0_8, %c0_9, %c0_10], %10 {strides = array<i32>} : memref<10x18x8xf32, #tpu.memory_space<vmem>>, vector<1x18x8xf32>,
    } else {
    }
    %c1_i32 = arith.constant 1 : i32
    %7 = arith.cmpi eq, %arg1, %c1_i32 : i32
    %8 = arith.extui %7 : i1 to i32
    %c0_i32_6 = arith.constant 0 : i32
    %9 = arith.cmpi ne, %8, %c0_i32_6 : i32
    scf.if %9 {
      %cst_7 = arith.constant 0.000000e+00 : f32
      %10 = vector.broadcast %cst_7 : f32 to vector<1x18x8xf32>
      %c9 = arith.constant 9 : index
      %c0_8 = arith.constant 0 : index
      %c0_9 = arith.constant 0 : index
      %11 = vector.load %arg11[%c9, %c0_8, %c0_9] : memref<10x18x8xf32, #tpu.memory_space<vmem>>, vector<1x18x8xf32>
      tpu.vector_store %arg11[%c9, %c0_8, %c0_9], %10 {strides = array<i32>} : memref<10x18x8xf32, #tpu.memory_space<vmem>>, vector<1x18x8xf32>,
    } else {
    }
    "tpu.region"() ({
      %alloca = memref.alloca() : memref<8x16x72xf32, #tpu.memory_space<vmem>>
      %c0_7 = arith.constant 0 : index
      %c0_8 = arith.constant 0 : index
      %c0_9 = arith.constant 0 : index
      %10 = vector.load %arg11[%c0_7, %c0_8, %c0_9] : memref<10x18x8xf32, #tpu.memory_space<vmem>>, vector<8x16x8xf32>
      %c0_10 = arith.constant 0 : index
      %c0_11 = arith.constant 0 : index
      %c0_12 = arith.constant 0 : index
      %11 = vector.load %alloca[%c0_10, %c0_11, %c0_12] : memref<8x16x72xf32, #tpu.memory_space<vmem>>, vector<8x16x8xf32>
      tpu.vector_store %alloca[%c0_10, %c0_11, %c0_12], %10 {strides = array<i32>} : memref<8x16x72xf32, #tpu.memory_space<vmem>>, vector<8x16x8xf32>,
      %c0_13 = arith.constant 0 : index
      %c1 = arith.constant 1 : index
      %c0_14 = arith.constant 0 : index
      %12 = vector.load %arg11[%c0_13, %c1, %c0_14] : memref<10x18x8xf32, #tpu.memory_space<vmem>>, vector<8x16x8xf32>
      %c0_15 = arith.constant 0 : index
      %c0_16 = arith.constant 0 : index
      %c8 = arith.constant 8 : index
      %13 = vector.load %alloca[%c0_15, %c0_16, %c8] : memref<8x16x72xf32, #tpu.memory_space<vmem>>, vector<8x16x8xf32>
      tpu.vector_store %alloca[%c0_15, %c0_16, %c8], %12 {strides = array<i32>} : memref<8x16x72xf32, #tpu.memory_space<vmem>>, vector<8x16x8xf32>,
      %c0_17 = arith.constant 0 : index
      %c2 = arith.constant 2 : index
      %c0_18 = arith.constant 0 : index
      %14 = vector.load %arg11[%c0_17, %c2, %c0_18] : memref<10x18x8xf32, #tpu.memory_space<vmem>>, vector<8x16x8xf32>
      %c0_19 = arith.constant 0 : index
      %c0_20 = arith.constant 0 : index
      %c16 = arith.constant 16 : index
      %15 = vector.load %alloca[%c0_19, %c0_20, %c16] : memref<8x16x72xf32, #tpu.memory_space<vmem>>, vector<8x16x8xf32>
      tpu.vector_store %alloca[%c0_19, %c0_20, %c16], %14 {strides = array<i32>} : memref<8x16x72xf32, #tpu.memory_space<vmem>>, vector<8x16x8xf32>,
      %c1_21 = arith.constant 1 : index
      %c0_22 = arith.constant 0 : index
      %c0_23 = arith.constant 0 : index
      %16 = vector.load %arg11[%c1_21, %c0_22, %c0_23] : memref<10x18x8xf32, #tpu.memory_space<vmem>>, vector<8x16x8xf32>
      %c0_24 = arith.constant 0 : index
      %c0_25 = arith.constant 0 : index
      %c24 = arith.constant 24 : index
      %17 = vector.load %alloca[%c0_24, %c0_25, %c24] : memref<8x16x72xf32, #tpu.memory_space<vmem>>, vector<8x16x8xf32>
      tpu.vector_store %alloca[%c0_24, %c0_25, %c24], %16 {strides = array<i32>} : memref<8x16x72xf32, #tpu.memory_space<vmem>>, vector<8x16x8xf32>,
      %c1_26 = arith.constant 1 : index
      %c1_27 = arith.constant 1 : index
      %c0_28 = arith.constant 0 : index
      %18 = vector.load %arg11[%c1_26, %c1_27, %c0_28] : memref<10x18x8xf32, #tpu.memory_space<vmem>>, vector<8x16x8xf32>
      %c0_29 = arith.constant 0 : index
      %c0_30 = arith.constant 0 : index
      %c32 = arith.constant 32 : index
      %19 = vector.load %alloca[%c0_29, %c0_30, %c32] : memref<8x16x72xf32, #tpu.memory_space<vmem>>, vector<8x16x8xf32>
      tpu.vector_store %alloca[%c0_29, %c0_30, %c32], %18 {strides = array<i32>} : memref<8x16x72xf32, #tpu.memory_space<vmem>>, vector<8x16x8xf32>,
      %c1_31 = arith.constant 1 : index
      %c2_32 = arith.constant 2 : index
      %c0_33 = arith.constant 0 : index
      %20 = vector.load %arg11[%c1_31, %c2_32, %c0_33] : memref<10x18x8xf32, #tpu.memory_space<vmem>>, vector<8x16x8xf32>
      %c0_34 = arith.constant 0 : index
      %c0_35 = arith.constant 0 : index
      %c40 = arith.constant 40 : index
      %21 = vector.load %alloca[%c0_34, %c0_35, %c40] : memref<8x16x72xf32, #tpu.memory_space<vmem>>, vector<8x16x8xf32>
      tpu.vector_store %alloca[%c0_34, %c0_35, %c40], %20 {strides = array<i32>} : memref<8x16x72xf32, #tpu.memory_space<vmem>>, vector<8x16x8xf32>,
      %c2_36 = arith.constant 2 : index
      %c0_37 = arith.constant 0 : index
      %c0_38 = arith.constant 0 : index
      %22 = vector.load %arg11[%c2_36, %c0_37, %c0_38] : memref<10x18x8xf32, #tpu.memory_space<vmem>>, vector<8x16x8xf32>
      %c0_39 = arith.constant 0 : index
      %c0_40 = arith.constant 0 : index
      %c48 = arith.constant 48 : index
      %23 = vector.load %alloca[%c0_39, %c0_40, %c48] : memref<8x16x72xf32, #tpu.memory_space<vmem>>, vector<8x16x8xf32>
      tpu.vector_store %alloca[%c0_39, %c0_40, %c48], %22 {strides = array<i32>} : memref<8x16x72xf32, #tpu.memory_space<vmem>>, vector<8x16x8xf32>,
      %c2_41 = arith.constant 2 : index
      %c1_42 = arith.constant 1 : index
      %c0_43 = arith.constant 0 : index
      %24 = vector.load %arg11[%c2_41, %c1_42, %c0_43] : memref<10x18x8xf32, #tpu.memory_space<vmem>>, vector<8x16x8xf32>
      %c0_44 = arith.constant 0 : index
      %c0_45 = arith.constant 0 : index
      %c56 = arith.constant 56 : index
      %25 = vector.load %alloca[%c0_44, %c0_45, %c56] : memref<8x16x72xf32, #tpu.memory_space<vmem>>, vector<8x16x8xf32>
      tpu.vector_store %alloca[%c0_44, %c0_45, %c56], %24 {strides = array<i32>} : memref<8x16x72xf32, #tpu.memory_space<vmem>>, vector<8x16x8xf32>,
      %c2_46 = arith.constant 2 : index
      %c2_47 = arith.constant 2 : index
      %c0_48 = arith.constant 0 : index
      %26 = vector.load %arg11[%c2_46, %c2_47, %c0_48] : memref<10x18x8xf32, #tpu.memory_space<vmem>>, vector<8x16x8xf32>
      %c0_49 = arith.constant 0 : index
      %c0_50 = arith.constant 0 : index
      %c64 = arith.constant 64 : index
      %27 = vector.load %alloca[%c0_49, %c0_50, %c64] : memref<8x16x72xf32, #tpu.memory_space<vmem>>, vector<8x16x8xf32>
      tpu.vector_store %alloca[%c0_49, %c0_50, %c64], %26 {strides = array<i32>} : memref<8x16x72xf32, #tpu.memory_space<vmem>>, vector<8x16x8xf32>,
      %c0_51 = arith.constant 0 : index
      %c0_52 = arith.constant 0 : index
      %28 = vector.load %arg7[%c0_51, %c0_52] : memref<72x8xf32, #tpu.memory_space<vmem>>, vector<72x8xf32>
      %c0_53 = arith.constant 0 : index
      %c0_54 = arith.constant 0 : index
      %c0_55 = arith.constant 0 : index
      %29 = vector.load %alloca[%c0_53, %c0_54, %c0_55] : memref<8x16x72xf32, #tpu.memory_space<vmem>>, vector<8x16x72xf32>
      %cst_56 = arith.constant dense<0.000000e+00> : vector<8x16x8xf32>
      %30 = tpu.matmul %29, %28, %cst_56 {dimension_numbers = #tpu.dot_dimension_numbers<[2], [0], [0, 1], [1], [0, 0, 0, 1, 1, 1], [], []>} : vector<8x16x72xf32>, vector<72x8xf32>, vector<8x16x8xf32> -> vector<8x16x8xf32>
      %c0_57 = arith.constant 0 : index
      %c0_58 = arith.constant 0 : index
      %31 = vector.load %arg8[%c0_57, %c0_58] : memref<1x8xf32, #tpu.memory_space<vmem>>, vector<1x8xf32>
      %32 = vector.shape_cast %31 : vector<1x8xf32> to vector<1x1x8xf32>
      %33 = vector.broadcast %32 : vector<1x1x8xf32> to vector<8x16x8xf32>
      %34 = arith.addf %30, %33 : vector<8x16x8xf32>
      %cst_59 = arith.constant 2.000000e-01 : f32
      %35 = vector.broadcast %cst_59 : f32 to vector<8x16x8xf32>
      %36 = arith.mulf %35, %34 : vector<8x16x8xf32>
      %37 = arith.maximumf %34, %36 : vector<8x16x8xf32>
      %c0_60 = arith.constant 0 : index
      %c0_61 = arith.constant 0 : index
      %c0_62 = arith.constant 0 : index
      %c0_63 = arith.constant 0 : index
      %38 = vector.load %arg10[%c0_60, %c0_61, %c0_62, %c0_63] : memref<1x8x16x8xf32, #tpu.memory_space<vmem>>, vector<1x8x16x8xf32>
      %39 = vector.shape_cast %38 : vector<1x8x16x8xf32> to vector<8x16x8xf32>
      %40 = vector.shape_cast %37 : vector<8x16x8xf32> to vector<1x8x16x8xf32>
      tpu.vector_store %arg10[%c0_60, %c0_61, %c0_62, %c0_63], %40 {strides = array<i32>} : memref<1x8x16x8xf32, #tpu.memory_space<vmem>>, vector<1x8x16x8xf32>,
      %41 = vector.shape_cast %37 : vector<8x16x8xf32> to vector<4x2x8x2x8xf32>
      %cst_64 = arith.constant dense<0xFF800000> : vector<4x8x8xf32>
      %42 = vector.multi_reduction <maximumf>, %41, %cst_64 [1, 3] : vector<4x2x8x2x8xf32> to vector<4x8x8xf32>
      %c0_65 = arith.constant 0 : index
      %c0_66 = arith.constant 0 : index
      %c0_67 = arith.constant 0 : index
      %c0_68 = arith.constant 0 : index
      %43 = vector.load %arg9[%c0_65, %c0_66, %c0_67, %c0_68] : memref<1x4x8x8xf32, #tpu.memory_space<vmem>>, vector<1x4x8x8xf32>
      %44 = vector.shape_cast %43 : vector<1x4x8x8xf32> to vector<4x8x8xf32>
      %45 = vector.shape_cast %42 : vector<4x8x8xf32> to vector<1x4x8x8xf32>
      tpu.vector_store %arg9[%c0_65, %c0_66, %c0_67, %c0_68], %45 {strides = array<i32>} : memref<1x4x8x8xf32, #tpu.memory_space<vmem>>, vector<1x4x8x8xf32>,
      tpu.yield
    }) : () -> ()
    return
  }
  func.func @transform_0(%arg0: i32, %arg1: i32) -> (i32, i32, i32, i32) {
    %c0_i32 = arith.constant 0 : i32
    %c0_i32_0 = arith.constant 0 : i32
    %c0_i32_1 = arith.constant 0 : i32
    return %arg0, %arg1, %c0_i32, %c0_i32_0 : i32, i32, i32, i32
  }
  func.func @transform_1(%arg0: i32, %arg1: i32) -> (i32, i32, i32, i32, i32) {
    %c0_i32 = arith.constant 0 : i32
    %c0_i32_0 = arith.constant 0 : i32
    %c0_i32_1 = arith.constant 0 : i32
    %c0_i32_2 = arith.constant 0 : i32
    return %arg0, %arg1, %c0_i32, %c0_i32_0, %c0_i32_1 : i32, i32, i32, i32, i32
  }
  func.func @transform_2(%arg0: i32, %arg1: i32) -> (i32, i32, i32, i32, i32) {
    %c0_i32 = arith.constant 0 : i32
    %c0_i32_0 = arith.constant 0 : i32
    %c0_i32_1 = arith.constant 0 : i32
    %c0_i32_2 = arith.constant 0 : i32
    return %arg0, %arg1, %c0_i32, %c0_i32_0, %c0_i32_1 : i32, i32, i32, i32, i32
  }
  func.func @transform_3(%arg0: i32, %arg1: i32) -> (i32, i32) {
    %c0_i32 = arith.constant 0 : i32
    %c0_i32_0 = arith.constant 0 : i32
    %c0_i32_1 = arith.constant 0 : i32
    return %c0_i32, %c0_i32_0 : i32, i32
  }
  func.func @transform_4(%arg0: i32, %arg1: i32) -> (i32, i32) {
    %c0_i32 = arith.constant 0 : i32
    %c0_i32_0 = arith.constant 0 : i32
    %c0_i32_1 = arith.constant 0 : i32
    return %c0_i32, %c0_i32_0 : i32, i32
  }
  func.func @transform_5(%arg0: i32, %arg1: i32) -> (i32, i32) {
    %c0_i32 = arith.constant 0 : i32
    %c0_i32_0 = arith.constant 0 : i32
    %c0_i32_1 = arith.constant 0 : i32
    return %c0_i32, %c0_i32_0 : i32, i32
  }
  func.func @transform_6(%arg0: i32, %arg1: i32) -> (i32, i32) {
    %c0_i32 = arith.constant 0 : i32
    %c0_i32_0 = arith.constant 0 : i32
    %c0_i32_1 = arith.constant 0 : i32
    return %c0_i32, %c0_i32_0 : i32, i32
  }
  func.func @transform_7(%arg0: i32, %arg1: i32) -> (i32, i32, i32, i32) {
    %c0_i32 = arith.constant 0 : i32
    %c0_i32_0 = arith.constant 0 : i32
    %c0_i32_1 = arith.constant 0 : i32
    return %arg0, %arg1, %c0_i32, %c0_i32_0 : i32, i32, i32, i32
  }
  func.func @transform_8(%arg0: i32, %arg1: i32) -> (i32, i32, i32, i32) {
    %c0_i32 = arith.constant 0 : i32
    %c0_i32_0 = arith.constant 0 : i32
    %c0_i32_1 = arith.constant 0 : i32
    return %arg0, %arg1, %c0_i32, %c0_i32_0 : i32, i32, i32, i32
  }
}

</mosaic_0001>

<bundles_post_ra>
// kernel: tpu_custom_call.1
= control target key start
LH: loop header
LB: loop body
LE: loop exit
PB: predicated region body
PF: predicated region fallthrough
CT: control target
= control target key end

     0   :  { %s5666_s0 = inlined_call_operand.vmem [shape: f32[2,16,16,4], index: 0, kind: input, shape index: {}]   ;;  %s5667_s1 = inlined_call_operand.vmem [shape: f32[2,2,2,16,4], index: 1, kind: input, shape index: {}]   ;;  %s5668_s2 = inlined_call_operand.vmem [shape: f32[2,2,2,16,4], index: 2, kind: input, shape index: {}]   ;;  %s5669_s3 = inlined_call_operand.vmem [shape: f32[36,8], index: 3, kind: input, shape index: {}]   ;;  %s5670_s4 = inlined_call_operand.vmem [shape: f32[1,8], index: 4, kind: input, shape index: {}]   ;;  %s5671_s5 = inlined_call_operand.vmem [shape: f32[72,8], index: 5, kind: input, shape index: {}]   ;;  %s5672_s6 = inlined_call_operand.vmem [shape: f32[1,8], index: 6, kind: input, shape index: {}]   ;;  %s5673_s7 = inlined_call_operand.hbm [shape: f32[2,8,8,8], index: 7, kind: output, shape index: {0}]   ;;  %s5674_s8 = inlined_call_operand.vmem [shape: f32[2,16,16,8], index: 8, kind: output, shape index: {1}]  }
   0x1   :  { %5686 = sst [smem:[#allocation18_spill]] %s5673_s7 }
   0x2   :  { %14 = vsyncpa [#allocation4], 0 }
   0x3   :  { %16 = vsyncpa [#allocation4 + $0x1], 0  ;;  %s4362_s27 = smov 0   ;;  %s4364_s28 = smov 0  }
   0x4   :  { %s4366_s29 = smov 0   ;;  %s4368_s30 = smov 0  }
   0x5   :  { %s4370_s9 = smov 0   ;;  %s4372_s10 = smov 0  }
   0x6   :  { %s4374_s11 = smov 0   ;;  %s4376_s12 = smov 0  }
   0x7 LB: > { %5687 = sst [smem:[#allocation9_spill]] %s4263_s27  ;;  %s3880_s13 = sadd.s32 4294967295, %s4291_s12   ;;  %s4291_s12 = sphi %s4376_s12, %s22_s12   ;;  %s4287_s11 = sphi %s4374_s11, %s5708_s11   ;;  %s4283_s10 = sphi %s4372_s10, %s5707_s10   ;;  %s4279_s9 = sphi %s4370_s9, %s5706_s9   ;;  %s4275_s30 = sphi %s4368_s30, %s5705_s30   ;;  %s4271_s29 = sphi %s4366_s29, %s5704_s29   ;;  %s4267_s28 = sphi %s4364_s28, %s5710_s28   ;;  %s4263_s27 = sphi %s4362_s27, %s5709_s27  }
   0x8   : > { %5688 = sst [smem:[#allocation10_spill]] %s4271_s29  ;;  %s3881_s14 = sadd.s32 4294967294, %s4291_s12  }
   0x9   : > { %5689 = sst [smem:[#allocation11_spill]] %s4283_s10  ;;  %s31_s15 = sadd.s32 1, %s4283_s10 }
   0xa   : > { %5690 = sst [smem:[#allocation12_spill]] %s4287_s11  ;;  %p32_p0 = scmp.ge.s32.totalorder %s31_s15, 2 }
   0xb   : > { %5691 = sst [smem:[#allocation13_spill]] %s4291_s12  ;;  %s34_s16 = sadd.s32 1, %s4287_s11 }
   0xc   : > { %p221_p1 = scmp.ne.s32.totalorder %s4271_s29, %s4267_s28  ;;  %p222_p2 = scmp.eq.s32.totalorder %s3880_s13, 3 }
   0xd   : > { %s5712_s15 = smov (%p32_p0, %s31_s15), 0  ;;  %s5714_s16 = smov (!%p32_p0, %s34_s16), %s4287_s11 }
   0xe   : > { %5692 = sst [smem:[#allocation14_spill]] %s5712_s15  ;;  %s207_s17 = ssub.s32 %s4283_s10, %s5712_s15 }
   0xf   : > { %p4413_p3 = por %p222_p2, %p221_p1  ;;  %p36_p4 = scmp.ge.s32.totalorder %s5714_s16, 2 }
  0x10   : > { %p227_p5 = scmp.ne.s32.totalorder %s4267_s28, %s4263_s27  ;;  %p228_p6 = scmp.eq.s32.totalorder %s3881_s14, 3 }
  0x11   : > { %p3884_p7 = scmp.ge.s32.totalorder %s4291_s12, 1  ;;  %s5716_s16 = smov (%p36_p4, %s5714_s16), 0 }
  0x12   : > { %5694 = sst [smem:[#allocation15_spill]] %s5716_s16  ;;  %p4422_p8 = por %p228_p6, %p227_p5 }
  0x13   : > { %p324_p9 = scmp.lt.s32.totalorder %s4291_s12, 5  ;;  %s206_s20 = ssub.s32 %s4287_s11, %s5716_s16 }
  0x14   : > { %s5695_s19 = scalar_select %p4422_p8, 1, 0 }
  0x15   : > { %s211_s21 = sadd.s32 1, %s4271_s29  ;;  %s208_s22 = sor.u32 %s207_s17, %s206_s20 }
  0x16   : > { %5696 = sst [smem:[#allocation16_spill]] %s5695_s19  ;;  %p325_p10 = pnand %p3884_p7, %p324_p9 }
  0x17   : > { %p209_p11 = scmp.eq.s32.totalorder %s208_s22, 0  ;;  %s5680_s24 = sand.u32 (!%p325_p10), 1, %s4267_s28  }
  0x18   : > { %328 = sbr.rel (%p325_p10) target bundleno = 1372 (0x55c), region = 48  ;;  %s3886_s25 = sshll.u32 (!%p325_p10), %s4275_s30, 3 }
  0x19   : > { %s4431_s23 = scalar_select %p209_p11, %s4271_s29, %s211_s21  }
  0x1a   : > { %s3885_s26 = sshll.u32 (!%p325_p10), %s5680_s24, 5  ;;  %p392_p12 = scmp.lt.s32.totalorder (!%p325_p10), %s4279_s9, 1 }
  0x1b   : > { %5697 = sst [smem:[#allocation17_spill]] %s4431_s23  ;;  %p394_p13 = scmp.lt.s32.totalorder (!%p325_p10), %s3886_s25, 15 }
  0x1c   : > { %p404_p0 = scmp.lt.s32.totalorder (!%p325_p10), %s4275_s30, 1  ;;  %s4459_s15 = scalar_lea.vmem (!%p325_p10), [#allocation3], %s3885_s26 }
  0x1f   : > { %s393_s13 = scalar_select %p392_p12, %s4279_s9, 1 }
  0x20   : > { %s5718_s25 = smov (!%p394_p13, %s3886_s25), 15 }
  0x21   : > { %s3888_s14 = sshll.u32 %s393_s13, 5  ;;  %s3887_s17 = sshll.u32 %s5718_s25, 1 }
  0x22   : > { %s398_s20 = sadd.s32 %s3888_s14, %s3887_s17  ;;  %s3891_s22 = sshll.u32 %s393_s13, 3 }
  0x23   : > { %s3889_s21 = sshll.u32 %s398_s20, 3 }
  0x24   : > { %s4443_s11 = scalar_lea.vmem %s5666_s0, %s3889_s21  ;;  %s4448_s29 = scalar_lea.vmem %s5674_s8, %s3889_s21 }
  0x25   : > { %s405_s24 = scalar_select %p404_p0, %s4275_s30, 1 }
  0x27   : > { %s3890_s19 = sshll.u32 %s405_s24, 2 }
  0x28   : > { %s408_s27 = sadd.s32 %s3891_s22, %s3890_s19 }
  0x29   : > { %s3892_s12 = sshll.u32 %s408_s27, 3 }
  0x2a   : > { %s410_s14 = scalar_lea.vmem %s5667_s1, %s3892_s12  ;;  %s4457_s20 = scalar_lea.vmem %s5668_s2, %s3892_s12 }
  0x2b   : > { %v457_v0 = vld [vmem:[%s410_s14] sm:$0xff]  ;;  %v458_v1 = vld [vmem:[%s410_s14 + $0x8] sm:$0xff]  ;;  %vm461_vm0 = vcmask 31744   ;;  %vm432_vm1 = vcmask 24576   ;;  %v459_v2 = vld [vmem:[%s410_s14 + $0x10] sm:$0xff]  ;;  %v4293_v5 = vmov 0.0  }
  0x2c   : > { %462 = vst.msk [vmem:[#allocation5 + $0x1] sm:$0xff] %vm461_vm0, %v457_v0  ;;  %463 = vst.msk [vmem:[#allocation5 + $0x9] sm:$0xff] %vm461_vm0, %v458_v1  ;;  %v460_v3 = vld [vmem:[%s410_s14 + $0x18] sm:$0xff]  ;;  %v466_v4 = vld [vmem:[%s4443_s11] sm:$0xff]  ;;  %s4294_s7 = smov 8   ;;  %s4295_s27 = smov 4  }
  0x2d   : > { %445 = vst.msk [vmem:[#allocation5 + $0x11] sm:$0x1] %vm432_vm1, %v4293_v5  ;;  %433 = vst.msk [vmem:[#allocation5] sm:$0x1] %vm432_vm1, %v4293_v5  ;;  %v467_v6 = vld [vmem:[%s4443_s11 + $0x8] sm:$0xff]  ;;  %v468_v7 = vld [vmem:[%s4443_s11 + $0x10] sm:$0xff] }
  0x2e   : > { %434 = vst.msk [vmem:[#allocation5 + $0x12] sm:$0x1] %vm432_vm1, %v4293_v5  ;;  %435 = vst.msk [vmem:[#allocation5 + $0x24] sm:$0x1] %vm432_vm1, %v4293_v5  ;;  %v469_v8 = vld [vmem:[%s4443_s11 + $0x18] sm:$0xff]  ;;  %v470_v9 = vld [vmem:[%s4443_s11 + $0x20] sm:$0xff] }
  0x2f   : > { %436 = vst.msk [vmem:[#allocation5 + $0x36] sm:$0x1] %vm432_vm1, %v4293_v5  ;;  %437 = vst.msk [vmem:[#allocation5 + $0x48] sm:$0x1] %vm432_vm1, %v4293_v5  ;;  %v471_v10 = vld [vmem:[%s4443_s11 + $0x28] sm:$0xff]  ;;  %v472_v11 = vld [vmem:[%s4443_s11 + $0x30] sm:$0xff] }
  0x30   : > { %438 = vst.msk [vmem:[#allocation5 + $0x5a] sm:$0x1] %vm432_vm1, %v4293_v5  ;;  %439 = vst.msk [vmem:[#allocation5 + $0x6c] sm:$0x1] %vm432_vm1, %v4293_v5  ;;  %v473_v12 = vld [vmem:[%s4443_s11 + $0x38] sm:$0xff]  ;;  %s4296_s10 = smov 12  }
  0x31   : > { %440 = vst.msk [vmem:[#allocation5 + $0x7e] sm:$0x1] %vm432_vm1, %v4293_v5  ;;  %441 = vst.msk [vmem:[#allocation5 + $0x90] sm:$0x1] %vm432_vm1, %v4293_v5  ;;  %s4297_s12 = smov 16   ;;  %v474_v32 = vld [vmem:[%s4443_s11 + $0x40] sm:$0xff] }
  0x32   : > { %442 = vst.msk [vmem:[#allocation5 + $0xa2] sm:$0x1] %vm432_vm1, %v4293_v5  ;;  %443 = vst.msk [vmem:[#allocation5 + $0xb4] sm:$0x1] %vm432_vm1, %v4293_v5  ;;  %s4298_s16 = smov 20   ;;  %v475_v35 = vld [vmem:[%s4443_s11 + $0x48] sm:$0xff] }
  0x33   : > { %444 = vst.msk [vmem:[#allocation5 + $0xc6] sm:$0x1] %vm432_vm1, %v4293_v5  ;;  %446 = vst.msk [vmem:[#allocation5 + $0x23] sm:$0x1] %vm432_vm1, %v4293_v5  ;;  %v669_v13 = vld [vmem:[#allocation5 + $0x2] sm:$0xff]  ;;  %s4299_s19 = smov 24  }
  0x34   : > { %447 = vst.msk [vmem:[#allocation5 + $0x35] sm:$0x1] %vm432_vm1, %v4293_v5  ;;  %448 = vst.msk [vmem:[#allocation5 + $0x47] sm:$0x1] %vm432_vm1, %v4293_v5  ;;  %v548_v14 = vld [vmem:[#allocation5 + $0x1] sm:$0xff]  ;;  %709 = vrot.lane.b32.xlu1 %v669_v13, %s4294_s7  ;;  %v549_v17 = vld [vmem:[#allocation5 + $0x9] sm:$0xff] }
  0x35   : > { %449 = vst.msk [vmem:[#allocation5 + $0x59] sm:$0x1] %vm432_vm1, %v4293_v5  ;;  %450 = vst.msk [vmem:[#allocation5 + $0x6b] sm:$0x1] %vm432_vm1, %v4293_v5  ;;  %588 = vrot.lane.b32.xlu0 %v548_v14, %s4295_s27  ;;  %v670_v18 = vld [vmem:[#allocation5 + $0xa] sm:$0xff]  ;;  %v508_v25 = vld [vmem:[#allocation5] sm:$0xff] }
  0x36   : > { %451 = vst.msk [vmem:[#allocation5 + $0x7d] sm:$0x1] %vm432_vm1, %v4293_v5  ;;  %452 = vst.msk [vmem:[#allocation5 + $0x8f] sm:$0x1] %vm432_vm1, %v4293_v5  ;;  %v509_v26 = vld [vmem:[#allocation5 + $0x8] sm:$0xff]  ;;  %v1517_v37 = vld [vmem:[%s5669_s3] sm:$0xff] }
  0x37   : > { %453 = vst.msk [vmem:[#allocation5 + $0xa1] sm:$0x1] %vm432_vm1, %v4293_v5  ;;  %454 = vst.msk [vmem:[#allocation5 + $0xb3] sm:$0x1] %vm432_vm1, %v4293_v5  ;;  %v1518_v38 = vld [vmem:[%s5669_s3 + $0x8] sm:$0xff]  ;;  %s4300_s22 = smov 28  }
  0x38   : > { %455 = vst.msk [vmem:[#allocation5 + $0xc5] sm:$0x1] %vm432_vm1, %v4293_v5  ;;  %456 = vst.msk [vmem:[#allocation5 + $0xd7] sm:$0x1] %vm432_vm1, %v4293_v5  ;;  %711 = vrot.lane.b32.xlu1 %v670_v18, %s4294_s7  ;;  %v4079_v40 = vpack.c.bf16 %v1518_v38, %v1517_v37  ;;  %v1519_v41 = vld [vmem:[%s5669_s3 + $0x10] sm:$0xff]  ;;  %v1520_v42 = vld [vmem:[%s5669_s3 + $0x18] sm:$0xff] }
  0x39   : > { %464 = vst.msk [vmem:[#allocation5 + $0x13] sm:$0xff] %vm461_vm0, %v459_v2  ;;  %465 = vst.msk [vmem:[#allocation5 + $0x1b] sm:$0xff] %vm461_vm0, %v460_v3  ;;  %590 = vrot.lane.b32.xlu0 %v549_v17, %s4295_s27  ;;  %v4083_v43 = vpack.c.bf16 %v1520_v42, %v1519_v41  ;;  %s4301_s23 = smov 32   ;;  %v1521_v46 = vld [vmem:[%s5669_s3 + $0x20] sm:$0xf]  ;;  %vm1610_vm2 = vcmask 1043456  }
  0x3a   : > { %483 = vst.msk [vmem:[#allocation5 + $0x25] sm:$0xff] %vm461_vm0, %v466_v4  ;;  %484 = vst.msk [vmem:[#allocation5 + $0x2d] sm:$0xff] %vm461_vm0, %v467_v6  ;;  %4080 = vmatprep.subr.bf16.mxu0 %v4079_v40  ;;  %v476_v48 = vld [vmem:[%s4443_s11 + $0x50] sm:$0xff]  ;;  %v477_v50 = vld [vmem:[%s4443_s11 + $0x58] sm:$0xff]  ;;  %vm648_vm3 = vcmask 64544   ;;  %vm769_vm4 = vcmask 97344  }
  0x3b   : > { %485 = vst.msk [vmem:[#allocation5 + $0x37] sm:$0xff] %vm461_vm0, %v468_v7  ;;  %486 = vst.msk [vmem:[#allocation5 + $0x3f] sm:$0xff] %vm461_vm0, %v469_v8  ;;  %4082 = vmatpush3.bf16.msra.mxu0 %v4079_v40  ;;  %v478_v56 = vld [vmem:[%s4443_s11 + $0x60] sm:$0xff]  ;;  %v479_v58 = vld [vmem:[%s4443_s11 + $0x68] sm:$0xff]  ;;  %vm891_vm5 = vcmask 130144   ;;  %vm1012_vm6 = vcmask 162944  }
  0x3c   : > { %487 = vst.msk [vmem:[#allocation5 + $0x49] sm:$0xff] %vm461_vm0, %v470_v9  ;;  %488 = vst.msk [vmem:[#allocation5 + $0x51] sm:$0xff] %vm461_vm0, %v471_v10  ;;  %4084 = vmatprep.subr.bf16.mxu0 %v4083_v43  ;;  %v480_v0 = vld [vmem:[%s4443_s11 + $0x70] sm:$0xff]  ;;  %v481_v6 = vld [vmem:[%s4443_s11 + $0x78] sm:$0xff]  ;;  %vm1133_vm7 = vcmask 195744   ;;  %vm1254_vm8 = vcmask 228544  }
  0x3d   : > { %489 = vst.msk [vmem:[#allocation5 + $0x5b] sm:$0xff] %vm461_vm0, %v472_v11  ;;  %490 = vst.msk [vmem:[#allocation5 + $0x63] sm:$0xff] %vm461_vm0, %v473_v12  ;;  %vm1375_vm9 = vcmask 261344   ;;  %vm1496_vm10 = vcmask 294144   ;;  %vm1549_vm11 = vcmask 293888   ;;  %vm1819_vm12 = vcmask 64512  }
  0x3e   : > { %528 = vst.msk [vmem:[#allocation6] sm:$0xff] %vm461_vm0, %v508_v25  ;;  %529 = vst.msk [vmem:[#allocation6 + $0x8] sm:$0xff] %vm461_vm0, %v509_v26  ;;  %vm1840_vm13 = vcmask 57344   ;;  %p3922_p1 = scmp.ne.s32.totalorder %s4275_s30, 0 }
  0x3f   : > { %491 = vst.msk [vmem:[#allocation5 + $0x6d] sm:$0xff] %vm461_vm0, %v474_v32  ;;  %492 = vst.msk [vmem:[#allocation5 + $0x75] sm:$0xff] %vm461_vm0, %v475_v35  ;;  %4086 = vmatpush3.bf16.msra.mxu0 %v4083_v43  ;;  %vm1868_vm14 = vcmask (!%p3922_p1), 58368  }
  0x40   : > { %v792_v15 = vld [vmem:[#allocation5 + $0x1a] sm:$0xff]  ;;  %v791_v16 = vld [vmem:[#allocation5 + $0x12] sm:$0xff]  ;;  %4005 = vmatprep.subr.msk.mxu0 %vm1610_vm2, %v1521_v46  ;;  %493 = vst.msk [vmem:[#allocation5 + $0x7f] sm:$0xff] %vm461_vm0, %v476_v48  ;;  %494 = vst.msk [vmem:[#allocation5 + $0x87] sm:$0xff] %vm461_vm0, %v477_v50 }
  0x41   : > { %530 = vst.msk [vmem:[#allocation6 + $0x10] sm:$0xff] %vm461_vm0, %v791_v16  ;;  %531 = vst.msk [vmem:[#allocation6 + $0x18] sm:$0xff] %vm461_vm0, %v792_v15  ;;  %v1154_v19 = vld [vmem:[#allocation5 + $0x24] sm:$0xff]  ;;  %v1155_v20 = vld [vmem:[#allocation5 + $0x2c] sm:$0xff]  ;;  %833 = vrot.lane.b32.xlu1 %v792_v15, %s4296_s10  ;;  %831 = vrot.lane.b32.xlu0 %v791_v16, %s4296_s10 }
  0x42   : > { %532 = vst.msk [vmem:[#allocation6 + $0x20] sm:$0xff] %vm461_vm0, %v1154_v19  ;;  %v4512_v21 = vld [vmem:[#allocation5 + $0x36] sm:$0xff]  ;;  %533 = vst.msk [vmem:[#allocation6 + $0x28] sm:$0xff] %vm461_vm0, %v1155_v20  ;;  %v4515_v22 = vld [vmem:[#allocation5 + $0x3e] sm:$0xff] }
  0x43   : > { %534 = vst.msk [vmem:[#allocation6 + $0x30] sm:$0xff] %vm461_vm0, %v4512_v21  ;;  %v4519_v23 = vld [vmem:[#allocation5 + $0x48] sm:$0xff]  ;;  %535 = vst.msk [vmem:[#allocation6 + $0x38] sm:$0xff] %vm461_vm0, %v4515_v22  ;;  %v4523_v24 = vld [vmem:[#allocation5 + $0x50] sm:$0xff]  ;;  %4006 = vmatpush3.msk.msra.mxu0 %vm1610_vm2, %v1521_v46 }
  0x44   : > { %536 = vst.msk [vmem:[#allocation6 + $0x40] sm:$0xff] %vm461_vm0, %v4519_v23  ;;  %537 = vst.msk [vmem:[#allocation6 + $0x48] sm:$0xff] %vm461_vm0, %v4523_v24  ;;  %v550_v27 = vld [vmem:[#allocation5 + $0x13] sm:$0xff]  ;;  %v4535_v29 = vld [vmem:[#allocation5 + $0x62] sm:$0xff] }
  0x45   : > { %v4533_v28 = vld [vmem:[#allocation5 + $0x5a] sm:$0xff]  ;;  %539 = vst.msk [vmem:[#allocation6 + $0x58] sm:$0xff] %vm461_vm0, %v4535_v29  ;;  %592 = vrot.lane.b32.xlu1 %v550_v27, %s4295_s27  ;;  %952 = vrot.lane.b32.xlu0 %v550_v27, %s4297_s12  ;;  %v1275_v36 = vld [vmem:[#allocation5 + $0x25] sm:$0xff]  ;;  %v1276_v45 = vld [vmem:[#allocation5 + $0x2d] sm:$0xff] }
  0x46   : > { %538 = vst.msk [vmem:[#allocation6 + $0x50] sm:$0xff] %vm461_vm0, %v4533_v28  ;;  %v1033_v30 = vld [vmem:[#allocation5 + $0x14] sm:$0xff]  ;;  %v1034_v33 = vld [vmem:[#allocation5 + $0x1c] sm:$0xff]  ;;  %v4549_v34 = vld [vmem:[#allocation5 + $0x6c] sm:$0xff] }
  0x47   : > { %v913_v31 = vld [vmem:[#allocation5 + $0x1b] sm:$0xff]  ;;  %540 = vst.msk [vmem:[#allocation6 + $0x60] sm:$0xff] %vm461_vm0, %v4549_v34  ;;  %v1396_v44 = vld [vmem:[#allocation5 + $0x26] sm:$0xff]  ;;  %v1397_v47 = vld [vmem:[#allocation5 + $0x2e] sm:$0xff] }
  0x48   : > { %v4565_v39 = vld [vmem:[#allocation5 + $0x74] sm:$0xff]  ;;  %v4592_v49 = vld [vmem:[#allocation5 + $0x7e] sm:$0xff]  ;;  %v4604_v52 = vld [vmem:[#allocation5 + $0x86] sm:$0xff]  ;;  %495 = vst.msk [vmem:[#allocation5 + $0x91] sm:$0xff] %vm461_vm0, %v478_v56 }
  0x49   : > { %1073 = vrot.lane.b32.xlu1 %v1033_v30, %s4298_s16  ;;  %954 = vrot.lane.b32.xlu0 %v913_v31, %s4297_s12  ;;  %541 = vst.msk [vmem:[#allocation6 + $0x68] sm:$0xff] %vm461_vm0, %v4565_v39  ;;  %542 = vst.msk [vmem:[#allocation6 + $0x70] sm:$0xff] %vm461_vm0, %v4592_v49  ;;  %v1277_v51 = vld [vmem:[#allocation5 + $0x37] sm:$0xff]  ;;  %v1278_v54 = vld [vmem:[#allocation5 + $0x3f] sm:$0xff] }
  0x4a   : > { %543 = vst.msk [vmem:[#allocation6 + $0x78] sm:$0xff] %vm461_vm0, %v4604_v52  ;;  %v1398_v53 = vld [vmem:[#allocation5 + $0x38] sm:$0xff]  ;;  %v1399_v55 = vld [vmem:[#allocation5 + $0x40] sm:$0xff]  ;;  %496 = vst.msk [vmem:[#allocation5 + $0x99] sm:$0xff] %vm461_vm0, %v479_v58 }
  0x4b   : > { %v1279_v59 = vld [vmem:[#allocation5 + $0x49] sm:$0xff]  ;;  %v1280_v62 = vld [vmem:[#allocation5 + $0x51] sm:$0xff]  ;;  %497 = vst.msk [vmem:[#allocation5 + $0xa3] sm:$0xff] %vm461_vm0, %v480_v0  ;;  %498 = vst.msk [vmem:[#allocation5 + $0xab] sm:$0xff] %vm461_vm0, %v481_v6 }
  0x4c   : > { %v1400_v61 = vld [vmem:[#allocation5 + $0x4a] sm:$0xff]  ;;  %v1401_v63 = vld [vmem:[#allocation5 + $0x52] sm:$0xff]  ;;  %v1281_v9 = vld [vmem:[#allocation5 + $0x5b] sm:$0xff] }
  0x4d   : > { %713 = vrot.lane.b32.xlu1 %v1033_v30, %s4294_s7  ;;  %594 = vrot.lane.b32.xlu0 %v913_v31, %s4295_s27  ;;  %v1402_v15 = vld [vmem:[#allocation5 + $0x5c] sm:$0xff]  ;;  %v1283_v32 = vld [vmem:[#allocation5 + $0x6d] sm:$0xff] }
  0x4e   : > { %v1282_v16 = vld [vmem:[#allocation5 + $0x63] sm:$0xff]  ;;  %v1284_v40 = vld [vmem:[#allocation5 + $0x75] sm:$0xff] }
  0x4f   : > { %v4624_v57 = vld [vmem:[#allocation5 + $0x90] sm:$0xff]  ;;  %v502_v46 = vld [vmem:[%s4457_s20 + $0x18] sm:$0xff] }
  0x50   : > { %544 = vst.msk [vmem:[#allocation6 + $0x80] sm:$0xff] %vm461_vm0, %v4624_v57  ;;  %507 = vst.msk [vmem:[#allocation5 + $0xcf] sm:$0xff] %vm461_vm0, %v502_v46 }
  0x51   : > { %1194 = vrot.lane.b32.xlu1 %v1154_v19, %s4299_s19  ;;  %1075 = vrot.lane.b32.xlu0 %v1034_v33, %s4298_s16  ;;  %v4636_v60 = vld [vmem:[#allocation5 + $0x98] sm:$0xff] }
  0x52   : > { %545 = vst.msk [vmem:[#allocation6 + $0x88] sm:$0xff] %vm461_vm0, %v4636_v60  ;;  %v4659_v5 = vld [vmem:[#allocation5 + $0xa2] sm:$0xff]  ;;  %v4676_v12 = vld [vmem:[#allocation5 + $0xaa] sm:$0xff] }
  0x53   : > { %546 = vst.msk [vmem:[#allocation6 + $0x90] sm:$0xff] %vm461_vm0, %v4659_v5  ;;  %547 = vst.msk [vmem:[#allocation6 + $0x98] sm:$0xff] %vm461_vm0, %v4676_v12 }
  0x55   : > { %835 = vrot.lane.b32.xlu1 %v1154_v19, %s4296_s10  ;;  %715 = vrot.lane.b32.xlu0 %v1034_v33, %s4294_s7 }
  0x59   : > { %1315 = vrot.lane.b32.xlu1 %v1275_v36, %s4300_s22  ;;  %1196 = vrot.lane.b32.xlu0 %v1155_v20, %s4299_s19 }
  0x5d   : > { %956 = vrot.lane.b32.xlu1 %v1275_v36, %s4297_s12  ;;  %837 = vrot.lane.b32.xlu0 %v1155_v20, %s4296_s10 }
  0x61   : > { %1436 = vrot.lane.b32.xlu1 %v1396_v44, %s4301_s23  ;;  %1317 = vrot.lane.b32.xlu0 %v1276_v45, %s4300_s22 }
  0x65   : > { %958 = vrot.lane.b32.xlu1 %v1276_v45, %s4297_s12  ;;  %596 = vrot.lane.b32.xlu0 %v1275_v36, %s4295_s27 }
  0x69   : > { %1438 = vrot.lane.b32.xlu1 %v1397_v47, %s4301_s23  ;;  %1077 = vrot.lane.b32.xlu0 %v1396_v44, %s4298_s16 }
  0x6d   : > { %717 = vrot.lane.b32.xlu1 %v1396_v44, %s4294_s7  ;;  %598 = vrot.lane.b32.xlu0 %v1276_v45, %s4295_s27 }
  0x71   : > { %1198 = vrot.lane.b32.xlu1 %v4512_v21, %s4299_s19  ;;  %1079 = vrot.lane.b32.xlu0 %v1397_v47, %s4298_s16 }
  0x75   : > { %839 = vrot.lane.b32.xlu1 %v4512_v21, %s4296_s10  ;;  %719 = vrot.lane.b32.xlu0 %v1397_v47, %s4294_s7  ;;  %v1403_v21 = vld [vmem:[#allocation5 + $0x64] sm:$0xff]  ;;  %v1405_v47 = vld [vmem:[#allocation5 + $0x76] sm:$0xff] }
  0x79   : > { %1319 = vrot.lane.b32.xlu1 %v1277_v51, %s4300_s22  ;;  %1200 = vrot.lane.b32.xlu0 %v4515_v22, %s4299_s19 }
  0x7d   : > { %960 = vrot.lane.b32.xlu1 %v1277_v51, %s4297_s12  ;;  %841 = vrot.lane.b32.xlu0 %v4515_v22, %s4296_s10 }
  0x81   : > { %1440 = vrot.lane.b32.xlu1 %v1398_v53, %s4301_s23  ;;  %1321 = vrot.lane.b32.xlu0 %v1278_v54, %s4300_s22 }
  0x85   : > { %962 = vrot.lane.b32.xlu1 %v1278_v54, %s4297_s12  ;;  %600 = vrot.lane.b32.xlu0 %v1277_v51, %s4295_s27 }
  0x89   : > { %1442 = vrot.lane.b32.xlu1 %v1399_v55, %s4301_s23  ;;  %1081 = vrot.lane.b32.xlu0 %v1398_v53, %s4298_s16 }
  0x8d   : > { %721 = vrot.lane.b32.xlu1 %v1398_v53, %s4294_s7  ;;  %602 = vrot.lane.b32.xlu0 %v1278_v54, %s4295_s27 }
  0x91   : > { %1202 = vrot.lane.b32.xlu1 %v4519_v23, %s4299_s19  ;;  %1083 = vrot.lane.b32.xlu0 %v1399_v55, %s4298_s16 }
  0x95   : > { %843 = vrot.lane.b32.xlu1 %v4519_v23, %s4296_s10  ;;  %723 = vrot.lane.b32.xlu0 %v1399_v55, %s4294_s7 }
  0x99   : > { %1323 = vrot.lane.b32.xlu1 %v1279_v59, %s4300_s22  ;;  %1204 = vrot.lane.b32.xlu0 %v4523_v24, %s4299_s19 }
  0x9d   : > { %964 = vrot.lane.b32.xlu1 %v1279_v59, %s4297_s12  ;;  %845 = vrot.lane.b32.xlu0 %v4523_v24, %s4296_s10  ;;  %v499_v24 = vld [vmem:[%s4457_s20] sm:$0xff] }
  0x9e   : > { %504 = vst.msk [vmem:[#allocation5 + $0xb5] sm:$0xff] %vm461_vm0, %v499_v24  ;;  %v1288_v24 = vld [vmem:[#allocation5 + $0x99] sm:$0xff] }
  0xa1   : > { %1444 = vrot.lane.b32.xlu1 %v1400_v61, %s4301_s23  ;;  %1325 = vrot.lane.b32.xlu0 %v1280_v62, %s4300_s22 }
  0xa5   : > { %966 = vrot.lane.b32.xlu1 %v1280_v62, %s4297_s12  ;;  %604 = vrot.lane.b32.xlu0 %v1279_v59, %s4295_s27  ;;  %v1285_v59 = vld [vmem:[#allocation5 + $0x7f] sm:$0xff] }
  0xa6   : > { %v710_v1 = vpop.permute.xlu1 %709 }
  0xa7   : > { %v589_v2 = vpop.permute.xlu0 %588 }
  0xa8   : > { %649 = vst.msk [vmem:[#allocation6] sm:$0xff] %vm648_vm3, %v589_v2  ;;  %v1286_v2 = vld [vmem:[#allocation5 + $0x87] sm:$0xff] }
  0xa9   : > { %1446 = vrot.lane.b32.xlu1 %v1401_v63, %s4301_s23  ;;  %1085 = vrot.lane.b32.xlu0 %v1400_v61, %s4298_s16  ;;  %770 = vst.msk [vmem:[#allocation6] sm:$0xff] %vm769_vm4, %v710_v1 }
  0xaa   : > { %v712_v4 = vpop.permute.xlu1 %711 }
  0xab   : > { %v591_v3 = vpop.permute.xlu0 %590 }
  0xac   : > { %650 = vst.msk [vmem:[#allocation6 + $0x8] sm:$0xff] %vm648_vm3, %v591_v3 }
  0xad   : > { %725 = vrot.lane.b32.xlu1 %v1400_v61, %s4294_s7  ;;  %606 = vrot.lane.b32.xlu0 %v1280_v62, %s4295_s27  ;;  %771 = vst.msk [vmem:[#allocation6 + $0x8] sm:$0xff] %vm769_vm4, %v712_v4 }
  0xb1   : > { %1206 = vrot.lane.b32.xlu1 %v4533_v28, %s4299_s19  ;;  %1087 = vrot.lane.b32.xlu0 %v1401_v63, %s4298_s16 }
  0xb3   : > { %v834_v7 = vpop.permute.xlu1 %833  ;;  %v832_v8 = vpop.permute.xlu0 %831 }
  0xb4   : > { %893 = vst.msk [vmem:[#allocation6 + $0x8] sm:$0xff] %vm891_vm5, %v834_v7  ;;  %892 = vst.msk [vmem:[#allocation6] sm:$0xff] %vm891_vm5, %v832_v8 }
  0xb5   : > { %847 = vrot.lane.b32.xlu1 %v4533_v28, %s4296_s10  ;;  %727 = vrot.lane.b32.xlu0 %v1401_v63, %s4294_s7 }
  0xb7   : > { %v593_v10 = vpop.permute.xlu1 %592  ;;  %v953_v11 = vpop.permute.xlu0 %952 }
  0xb8   : > { %651 = vst.msk [vmem:[#allocation6 + $0x10] sm:$0xff] %vm648_vm3, %v593_v10 }
  0xb9   : > { %1013 = vst.msk [vmem:[#allocation6] sm:$0xff] %vm1012_vm6, %v953_v11  ;;  %1327 = vrot.lane.b32.xlu1 %v1281_v9, %s4300_s22  ;;  %1208 = vrot.lane.b32.xlu0 %v4535_v29, %s4299_s19 }
  0xbb   : > { %v1074_v13 = vpop.permute.xlu1 %1073  ;;  %v955_v14 = vpop.permute.xlu0 %954 }
  0xbc   : > { %1134 = vst.msk [vmem:[#allocation6] sm:$0xff] %vm1133_vm7, %v1074_v13 }
  0xbd   : > { %1014 = vst.msk [vmem:[#allocation6 + $0x8] sm:$0xff] %vm1012_vm6, %v955_v14  ;;  %968 = vrot.lane.b32.xlu1 %v1281_v9, %s4297_s12  ;;  %849 = vrot.lane.b32.xlu0 %v4535_v29, %s4296_s10  ;;  %v500_v29 = vld [vmem:[%s4457_s20 + $0x8] sm:$0xff] }
  0xbe   : > { %505 = vst.msk [vmem:[#allocation5 + $0xbd] sm:$0xff] %vm461_vm0, %v500_v29 }
  0xbf   : > { %v714_v17 = vpop.permute.xlu1 %713  ;;  %v595_v18 = vpop.permute.xlu0 %594 }
  0xc0   : > { %772 = vst.msk [vmem:[#allocation6 + $0x10] sm:$0xff] %vm769_vm4, %v714_v17 }
  0xc1   : > { %652 = vst.msk [vmem:[#allocation6 + $0x18] sm:$0xff] %vm648_vm3, %v595_v18  ;;  %1448 = vrot.lane.b32.xlu1 %v1402_v15, %s4301_s23  ;;  %1329 = vrot.lane.b32.xlu0 %v1282_v16, %s4300_s22  ;;  %v1287_v18 = vld [vmem:[#allocation5 + $0x91] sm:$0xff] }
  0xc3   : > { %v1195_v19 = vpop.permute.xlu1 %1194  ;;  %v1076_v20 = vpop.permute.xlu0 %1075 }
  0xc4   : > { %1255 = vst.msk [vmem:[#allocation6] sm:$0xff] %vm1254_vm8, %v1195_v19 }
  0xc5   : > { %1135 = vst.msk [vmem:[#allocation6 + $0x8] sm:$0xff] %vm1133_vm7, %v1076_v20  ;;  %970 = vrot.lane.b32.xlu1 %v1282_v16, %s4297_s12  ;;  %608 = vrot.lane.b32.xlu0 %v1281_v9, %s4295_s27 }
  0xc7   : > { %v836_v22 = vpop.permute.xlu1 %835  ;;  %v716_v23 = vpop.permute.xlu0 %715 }
  0xc8   : > { %894 = vst.msk [vmem:[#allocation6 + $0x10] sm:$0xff] %vm891_vm5, %v836_v22 }
  0xc9   : > { %773 = vst.msk [vmem:[#allocation6 + $0x18] sm:$0xff] %vm769_vm4, %v716_v23  ;;  %1450 = vrot.lane.b32.xlu1 %v1403_v21, %s4301_s23  ;;  %1089 = vrot.lane.b32.xlu0 %v1402_v15, %s4298_s16 }
  0xcb   : > { %v1316_v25 = vpop.permute.xlu1 %1315  ;;  %v1197_v26 = vpop.permute.xlu0 %1196 }
  0xcc   : > { %1376 = vst.msk [vmem:[#allocation6] sm:$0xff] %vm1375_vm9, %v1316_v25 }
  0xcd   : > { %1256 = vst.msk [vmem:[#allocation6 + $0x8] sm:$0xff] %vm1254_vm8, %v1197_v26  ;;  %729 = vrot.lane.b32.xlu1 %v1402_v15, %s4294_s7  ;;  %610 = vrot.lane.b32.xlu0 %v1282_v16, %s4295_s27 }
  0xcf   : > { %v957_v27 = vpop.permute.xlu1 %956  ;;  %v838_v28 = vpop.permute.xlu0 %837 }
  0xd0   : > { %1015 = vst.msk [vmem:[#allocation6 + $0x10] sm:$0xff] %vm1012_vm6, %v957_v27 }
  0xd1   : > { %895 = vst.msk [vmem:[#allocation6 + $0x18] sm:$0xff] %vm891_vm5, %v838_v28  ;;  %1210 = vrot.lane.b32.xlu1 %v4549_v34, %s4299_s19  ;;  %1091 = vrot.lane.b32.xlu0 %v1403_v21, %s4298_s16 }
  0xd3   : > { %v1437_v30 = vpop.permute.xlu1 %1436  ;;  %v1318_v31 = vpop.permute.xlu0 %1317 }
  0xd4   : > { %1497 = vst.msk [vmem:[#allocation6] sm:$0xff] %vm1496_vm10, %v1437_v30 }
  0xd5   : > { %1377 = vst.msk [vmem:[#allocation6 + $0x8] sm:$0xff] %vm1375_vm9, %v1318_v31  ;;  %851 = vrot.lane.b32.xlu1 %v4549_v34, %s4296_s10  ;;  %731 = vrot.lane.b32.xlu0 %v1403_v21, %s4294_s7  ;;  %v1404_v34 = vld [vmem:[#allocation5 + $0x6e] sm:$0xff] }
  0xd7   : > { %v959_v33 = vpop.permute.xlu1 %958  ;;  %v597_v35 = vpop.permute.xlu0 %596 }
  0xd8   : > { %1016 = vst.msk [vmem:[#allocation6 + $0x18] sm:$0xff] %vm1012_vm6, %v959_v33 }
  0xd9   : > { %653 = vst.msk [vmem:[#allocation6 + $0x20] sm:$0xff] %vm648_vm3, %v597_v35  ;;  %1331 = vrot.lane.b32.xlu1 %v1283_v32, %s4300_s22  ;;  %1212 = vrot.lane.b32.xlu0 %v4565_v39, %s4299_s19 }
  0xdb   : > { %v1439_v36 = vpop.permute.xlu1 %1438  ;;  %v1078_v37 = vpop.permute.xlu0 %1077  ;;  %v1522_v38 = vld [vmem:[#allocation6] sm:$0xff] }
  0xdc   : > { %1498 = vst.msk [vmem:[#allocation6 + $0x8] sm:$0xff] %vm1496_vm10, %v1439_v36  ;;  %4007 = vmatprep.mubr.msk.f32.mxu0 %vm1549_vm11, %v1522_v38 }
  0xdd   : > { %1136 = vst.msk [vmem:[#allocation6 + $0x10] sm:$0xff] %vm1133_vm7, %v1078_v37  ;;  %972 = vrot.lane.b32.xlu1 %v1283_v32, %s4297_s12  ;;  %853 = vrot.lane.b32.xlu0 %v4565_v39, %s4296_s10  ;;  %v501_v39 = vld [vmem:[%s4457_s20 + $0x10] sm:$0xff] }
  0xde   : > { %506 = vst.msk [vmem:[#allocation5 + $0xc7] sm:$0xff] %vm461_vm0, %v501_v39 }
  0xdf   : > { %v718_v41 = vpop.permute.xlu1 %717  ;;  %v599_v42 = vpop.permute.xlu0 %598 }
  0xe0   : > { %774 = vst.msk [vmem:[#allocation6 + $0x20] sm:$0xff] %vm769_vm4, %v718_v41 }
  0xe1   : > { %654 = vst.msk [vmem:[#allocation6 + $0x28] sm:$0xff] %vm648_vm3, %v599_v42  ;;  %1452 = vrot.lane.b32.xlu1 %v1404_v34, %s4301_s23  ;;  %1333 = vrot.lane.b32.xlu0 %v1284_v40, %s4300_s22 }
  0xe3   : > { %v1199_v43 = vpop.permute.xlu1 %1198  ;;  %v1080_v44 = vpop.permute.xlu0 %1079  ;;  %v1523_v45 = vld [vmem:[#allocation6 + $0x8] sm:$0xff] }
  0xe4   : > { %1257 = vst.msk [vmem:[#allocation6 + $0x10] sm:$0xff] %vm1254_vm8, %v1199_v43  ;;  %4008 = vmatmul.mubr.msk.f32.vlgmr.msra.gmra.mrb[0].mxu0 %vm1549_vm11, %v1523_v45  ;;  %v1290_v45 = vld [vmem:[#allocation5 + $0xab] sm:$0xff] }
  0xe5   : > { %1137 = vst.msk [vmem:[#allocation6 + $0x18] sm:$0xff] %vm1133_vm7, %v1080_v44  ;;  %974 = vrot.lane.b32.xlu1 %v1284_v40, %s4297_s12  ;;  %612 = vrot.lane.b32.xlu0 %v1283_v32, %s4295_s27 }
  0xe7   : > { %v840_v48 = vpop.permute.xlu1 %839  ;;  %v720_v50 = vpop.permute.xlu0 %719 }
  0xe8   : > { %896 = vst.msk [vmem:[#allocation6 + $0x20] sm:$0xff] %vm891_vm5, %v840_v48 }
  0xe9   : > { %775 = vst.msk [vmem:[#allocation6 + $0x28] sm:$0xff] %vm769_vm4, %v720_v50  ;;  %1454 = vrot.lane.b32.xlu1 %v1405_v47, %s4301_s23  ;;  %1093 = vrot.lane.b32.xlu0 %v1404_v34, %s4298_s16 }
  0xeb   : > { %v1320_v51 = vpop.permute.xlu1 %1319  ;;  %v1201_v53 = vpop.permute.xlu0 %1200 }
  0xec   : > { %1378 = vst.msk [vmem:[#allocation6 + $0x10] sm:$0xff] %vm1375_vm9, %v1320_v51 }
  0xed   : > { %1258 = vst.msk [vmem:[#allocation6 + $0x18] sm:$0xff] %vm1254_vm8, %v1201_v53  ;;  %733 = vrot.lane.b32.xlu1 %v1404_v34, %s4294_s7  ;;  %614 = vrot.lane.b32.xlu0 %v1284_v40, %s4295_s27  ;;  %v1289_v34 = vld [vmem:[#allocation5 + $0xa3] sm:$0xff] }
  0xef   : > { %v961_v54 = vpop.permute.xlu1 %960  ;;  %v842_v55 = vpop.permute.xlu0 %841 }
  0xf0   : > { %1017 = vst.msk [vmem:[#allocation6 + $0x20] sm:$0xff] %vm1012_vm6, %v961_v54 }
  0xf1   : > { %897 = vst.msk [vmem:[#allocation6 + $0x28] sm:$0xff] %vm891_vm5, %v842_v55  ;;  %1214 = vrot.lane.b32.xlu1 %v4592_v49, %s4299_s19  ;;  %1095 = vrot.lane.b32.xlu0 %v1405_v47, %s4298_s16 }
  0xf3   : > { %v1441_v56 = vpop.permute.xlu1 %1440  ;;  %v1322_v58 = vpop.permute.xlu0 %1321 }
  0xf4   : > { %1499 = vst.msk [vmem:[#allocation6 + $0x10] sm:$0xff] %vm1496_vm10, %v1441_v56  ;;  %v1170_v56 = vld [vmem:[#allocation5 + $0xb4] sm:$0xff] }
  0xf5   : > { %1379 = vst.msk [vmem:[#allocation6 + $0x18] sm:$0xff] %vm1375_vm9, %v1322_v58  ;;  %855 = vrot.lane.b32.xlu1 %v4592_v49, %s4296_s10  ;;  %735 = vrot.lane.b32.xlu0 %v1405_v47, %s4294_s7  ;;  %v1406_v49 = vld [vmem:[#allocation5 + $0x80] sm:$0xff] }
  0xf7   : > { %v963_v61 = vpop.permute.xlu1 %962  ;;  %v601_v62 = vpop.permute.xlu0 %600 }
  0xf8   : > { %1018 = vst.msk [vmem:[#allocation6 + $0x28] sm:$0xff] %vm1012_vm6, %v963_v61 }
  0xf9   : > { %655 = vst.msk [vmem:[#allocation6 + $0x30] sm:$0xff] %vm648_vm3, %v601_v62  ;;  %1335 = vrot.lane.b32.xlu1 %v1285_v59, %s4300_s22  ;;  %1216 = vrot.lane.b32.xlu0 %v4604_v52, %s4299_s19 }
  0xfb   : > { %v1443_v63 = vpop.permute.xlu1 %1442  ;;  %v1082_v0 = vpop.permute.xlu0 %1081  ;;  %v1524_v1 = vld [vmem:[#allocation6 + $0x10] sm:$0xff] }
  0xfc   : > { %1500 = vst.msk [vmem:[#allocation6 + $0x18] sm:$0xff] %vm1496_vm10, %v1443_v63  ;;  %4010 = vmatprep.mubr.msk.f32.mxu0 %vm1549_vm11, %v1524_v1  ;;  %v1171_v63 = vld [vmem:[#allocation5 + $0xbc] sm:$0xff] }
  0xfd   : > { %1138 = vst.msk [vmem:[#allocation6 + $0x20] sm:$0xff] %vm1133_vm7, %v1082_v0  ;;  %976 = vrot.lane.b32.xlu1 %v1285_v59, %s4297_s12  ;;  %857 = vrot.lane.b32.xlu0 %v4604_v52, %s4296_s10  ;;  %v1407_v52 = vld [vmem:[#allocation5 + $0x88] sm:$0xff]  ;;  %v1291_v0 = vld [vmem:[#allocation5 + $0xb5] sm:$0xff] }
  0xff   : > { %v722_v3 = vpop.permute.xlu1 %721  ;;  %v603_v4 = vpop.permute.xlu0 %602 }
 0x100   : > { %776 = vst.msk [vmem:[#allocation6 + $0x30] sm:$0xff] %vm769_vm4, %v722_v3 }
 0x101   : > { %656 = vst.msk [vmem:[#allocation6 + $0x38] sm:$0xff] %vm648_vm3, %v603_v4  ;;  %1456 = vrot.lane.b32.xlu1 %v1406_v49, %s4301_s23  ;;  %1337 = vrot.lane.b32.xlu0 %v1286_v2, %s4300_s22 }
 0x103   : > { %v1203_v6 = vpop.permute.xlu1 %1202  ;;  %v1084_v7 = vpop.permute.xlu0 %1083  ;;  %v1525_v8 = vld [vmem:[#allocation6 + $0x18] sm:$0xff] }
 0x104   : > { %1259 = vst.msk [vmem:[#allocation6 + $0x20] sm:$0xff] %vm1254_vm8, %v1203_v6  ;;  %4011 = vmatmul.mubr.msk.f32.gmra.mrb[2].mxu0 %vm1549_vm11, %v1525_v8  ;;  %v1292_v6 = vld [vmem:[#allocation5 + $0xbd] sm:$0xff] }
 0x105   : > { %1139 = vst.msk [vmem:[#allocation6 + $0x28] sm:$0xff] %vm1133_vm7, %v1084_v7  ;;  %978 = vrot.lane.b32.xlu1 %v1286_v2, %s4297_s12  ;;  %616 = vrot.lane.b32.xlu0 %v1285_v59, %s4295_s27  ;;  %v1412_v7 = vld [vmem:[#allocation5 + $0xb6] sm:$0xff] }
 0x107   : > { %v844_v9 = vpop.permute.xlu1 %843  ;;  %v724_v10 = vpop.permute.xlu0 %723 }
 0x108   : > { %898 = vst.msk [vmem:[#allocation6 + $0x30] sm:$0xff] %vm891_vm5, %v844_v9 }
 0x109   : > { %777 = vst.msk [vmem:[#allocation6 + $0x38] sm:$0xff] %vm769_vm4, %v724_v10  ;;  %1458 = vrot.lane.b32.xlu1 %v1407_v52, %s4301_s23  ;;  %1097 = vrot.lane.b32.xlu0 %v1406_v49, %s4298_s16 }
 0x10b   : > { %v1324_v11 = vpop.permute.xlu1 %1323  ;;  %v1205_v13 = vpop.permute.xlu0 %1204 }
 0x10c   : > { %1380 = vst.msk [vmem:[#allocation6 + $0x20] sm:$0xff] %vm1375_vm9, %v1324_v11 }
 0x10d   : > { %1260 = vst.msk [vmem:[#allocation6 + $0x28] sm:$0xff] %vm1254_vm8, %v1205_v13  ;;  %737 = vrot.lane.b32.xlu1 %v1406_v49, %s4294_s7  ;;  %618 = vrot.lane.b32.xlu0 %v1286_v2, %s4295_s27  ;;  %v1413_v13 = vld [vmem:[#allocation5 + $0xbe] sm:$0xff] }
 0x10f   : > { %v965_v14 = vpop.permute.xlu1 %964  ;;  %v846_v15 = vpop.permute.xlu0 %845 }
 0x110   : > { %1019 = vst.msk [vmem:[#allocation6 + $0x30] sm:$0xff] %vm1012_vm6, %v965_v14 }
 0x111   : > { %899 = vst.msk [vmem:[#allocation6 + $0x38] sm:$0xff] %vm891_vm5, %v846_v15  ;;  %1218 = vrot.lane.b32.xlu1 %v4624_v57, %s4299_s19  ;;  %1099 = vrot.lane.b32.xlu0 %v1407_v52, %s4298_s16 }
 0x113   : > { %v1445_v16 = vpop.permute.xlu1 %1444  ;;  %v1326_v17 = vpop.permute.xlu0 %1325 }
 0x114   : > { %1501 = vst.msk [vmem:[#allocation6 + $0x20] sm:$0xff] %vm1496_vm10, %v1445_v16  ;;  %v1172_v16 = vld [vmem:[#allocation5 + $0xc6] sm:$0xff] }
 0x115   : > { %1381 = vst.msk [vmem:[#allocation6 + $0x28] sm:$0xff] %vm1375_vm9, %v1326_v17  ;;  %859 = vrot.lane.b32.xlu1 %v4624_v57, %s4296_s10  ;;  %739 = vrot.lane.b32.xlu0 %v1407_v52, %s4294_s7  ;;  %v1408_v57 = vld [vmem:[#allocation5 + $0x92] sm:$0xff] }
 0x116   : > { %v1173_v17 = vld [vmem:[#allocation5 + $0xce] sm:$0xff] }
 0x117   : > { %v967_v19 = vpop.permute.xlu1 %966  ;;  %v605_v20 = vpop.permute.xlu0 %604 }
 0x118   : > { %1020 = vst.msk [vmem:[#allocation6 + $0x38] sm:$0xff] %vm1012_vm6, %v967_v19 }
 0x119   : > { %657 = vst.msk [vmem:[#allocation6 + $0x40] sm:$0xff] %vm648_vm3, %v605_v20  ;;  %1339 = vrot.lane.b32.xlu1 %v1287_v18, %s4300_s22  ;;  %1220 = vrot.lane.b32.xlu0 %v4636_v60, %s4299_s19  ;;  %v1293_v20 = vld [vmem:[#allocation5 + $0xc7] sm:$0xff] }
 0x11b   : > { %v1447_v21 = vpop.permute.xlu1 %1446  ;;  %v1086_v22 = vpop.permute.xlu0 %1085  ;;  %v1526_v23 = vld [vmem:[#allocation6 + $0x20] sm:$0xff] }
 0x11c   : > { %1502 = vst.msk [vmem:[#allocation6 + $0x28] sm:$0xff] %vm1496_vm10, %v1447_v21  ;;  %4013 = vmatprep.mubr.msk.f32.mxu0 %vm1549_vm11, %v1526_v23  ;;  %v1294_v21 = vld [vmem:[#allocation5 + $0xcf] sm:$0xff] }
 0x11d   : > { %1140 = vst.msk [vmem:[#allocation6 + $0x30] sm:$0xff] %vm1133_vm7, %v1086_v22  ;;  %980 = vrot.lane.b32.xlu1 %v1287_v18, %s4297_s12  ;;  %861 = vrot.lane.b32.xlu0 %v4636_v60, %s4296_s10  ;;  %v1409_v60 = vld [vmem:[#allocation5 + $0x9a] sm:$0xff] }
 0x11f   : > { %v726_v25 = vpop.permute.xlu1 %725  ;;  %v607_v26 = vpop.permute.xlu0 %606 }
 0x120   : > { %778 = vst.msk [vmem:[#allocation6 + $0x40] sm:$0xff] %vm769_vm4, %v726_v25 }
 0x121   : > { %658 = vst.msk [vmem:[#allocation6 + $0x48] sm:$0xff] %vm648_vm3, %v607_v26  ;;  %1460 = vrot.lane.b32.xlu1 %v1408_v57, %s4301_s23  ;;  %1341 = vrot.lane.b32.xlu0 %v1288_v24, %s4300_s22 }
 0x123   : > { %v1207_v27 = vpop.permute.xlu1 %1206  ;;  %v1088_v28 = vpop.permute.xlu0 %1087  ;;  %v1527_v29 = vld [vmem:[#allocation6 + $0x28] sm:$0xff] }
 0x124   : > { %1261 = vst.msk [vmem:[#allocation6 + $0x30] sm:$0xff] %vm1254_vm8, %v1207_v27  ;;  %4014 = vmatmul.mubr.msk.f32.gmra.mrb[4].mxu0 %vm1549_vm11, %v1527_v29 }
 0x125   : > { %1141 = vst.msk [vmem:[#allocation6 + $0x38] sm:$0xff] %vm1133_vm7, %v1088_v28  ;;  %982 = vrot.lane.b32.xlu1 %v1288_v24, %s4297_s12  ;;  %620 = vrot.lane.b32.xlu0 %v1287_v18, %s4295_s27 }
 0x127   : > { %v848_v30 = vpop.permute.xlu1 %847  ;;  %v728_v31 = vpop.permute.xlu0 %727 }
 0x128   : > { %900 = vst.msk [vmem:[#allocation6 + $0x40] sm:$0xff] %vm891_vm5, %v848_v30 }
 0x129   : > { %779 = vst.msk [vmem:[#allocation6 + $0x48] sm:$0xff] %vm769_vm4, %v728_v31  ;;  %1462 = vrot.lane.b32.xlu1 %v1409_v60, %s4301_s23  ;;  %1101 = vrot.lane.b32.xlu0 %v1408_v57, %s4298_s16 }
 0x12b   : > { %v1328_v32 = vpop.permute.xlu1 %1327  ;;  %v1209_v33 = vpop.permute.xlu0 %1208 }
 0x12c   : > { %1382 = vst.msk [vmem:[#allocation6 + $0x30] sm:$0xff] %vm1375_vm9, %v1328_v32 }
 0x12d   : > { %1262 = vst.msk [vmem:[#allocation6 + $0x38] sm:$0xff] %vm1254_vm8, %v1209_v33  ;;  %741 = vrot.lane.b32.xlu1 %v1408_v57, %s4294_s7  ;;  %622 = vrot.lane.b32.xlu0 %v1288_v24, %s4295_s27  ;;  %v1414_v57 = vld [vmem:[#allocation5 + $0xc8] sm:$0xff]  ;;  %v1415_v24 = vld [vmem:[#allocation5 + $0xd0] sm:$0xff] }
 0x12f   : > { %v969_v35 = vpop.permute.xlu1 %968  ;;  %v850_v36 = vpop.permute.xlu0 %849 }
 0x130   : > { %1021 = vst.msk [vmem:[#allocation6 + $0x40] sm:$0xff] %vm1012_vm6, %v969_v35 }
 0x131   : > { %901 = vst.msk [vmem:[#allocation6 + $0x48] sm:$0xff] %vm891_vm5, %v850_v36  ;;  %1222 = vrot.lane.b32.xlu1 %v4659_v5, %s4299_s19  ;;  %1103 = vrot.lane.b32.xlu0 %v1409_v60, %s4298_s16 }
 0x133   : > { %v1449_v37 = vpop.permute.xlu1 %1448  ;;  %v1330_v38 = vpop.permute.xlu0 %1329 }
 0x134   : > { %1503 = vst.msk [vmem:[#allocation6 + $0x30] sm:$0xff] %vm1496_vm10, %v1449_v37 }
 0x135   : > { %1383 = vst.msk [vmem:[#allocation6 + $0x38] sm:$0xff] %vm1375_vm9, %v1330_v38  ;;  %863 = vrot.lane.b32.xlu1 %v4659_v5, %s4296_s10  ;;  %743 = vrot.lane.b32.xlu0 %v1409_v60, %s4294_s7  ;;  %v1410_v5 = vld [vmem:[#allocation5 + $0xa4] sm:$0xff] }
 0x137   : > { %v971_v40 = vpop.permute.xlu1 %970  ;;  %v609_v41 = vpop.permute.xlu0 %608 }
 0x138   : > { %1022 = vst.msk [vmem:[#allocation6 + $0x48] sm:$0xff] %vm1012_vm6, %v971_v40 }
 0x139   : > { %659 = vst.msk [vmem:[#allocation6 + $0x50] sm:$0xff] %vm648_vm3, %v609_v41  ;;  %1343 = vrot.lane.b32.xlu1 %v1289_v34, %s4300_s22  ;;  %1224 = vrot.lane.b32.xlu0 %v4676_v12, %s4299_s19 }
 0x13b   : > { %v1451_v42 = vpop.permute.xlu1 %1450  ;;  %v1090_v43 = vpop.permute.xlu0 %1089  ;;  %v1528_v44 = vld [vmem:[#allocation6 + $0x30] sm:$0xff] }
 0x13c   : > { %1504 = vst.msk [vmem:[#allocation6 + $0x38] sm:$0xff] %vm1496_vm10, %v1451_v42  ;;  %4016 = vmatprep.mubr.msk.f32.mxu0 %vm1549_vm11, %v1528_v44 }
 0x13d   : > { %1142 = vst.msk [vmem:[#allocation6 + $0x40] sm:$0xff] %vm1133_vm7, %v1090_v43  ;;  %984 = vrot.lane.b32.xlu1 %v1289_v34, %s4297_s12  ;;  %865 = vrot.lane.b32.xlu0 %v4676_v12, %s4296_s10  ;;  %v1411_v12 = vld [vmem:[#allocation5 + $0xac] sm:$0xff] }
 0x13f   : > { %v730_v39 = vpop.permute.xlu1 %729  ;;  %v611_v46 = vpop.permute.xlu0 %610 }
 0x140   : > { %780 = vst.msk [vmem:[#allocation6 + $0x50] sm:$0xff] %vm769_vm4, %v730_v39 }
 0x141   : > { %660 = vst.msk [vmem:[#allocation6 + $0x58] sm:$0xff] %vm648_vm3, %v611_v46  ;;  %1464 = vrot.lane.b32.xlu1 %v1410_v5, %s4301_s23  ;;  %1345 = vrot.lane.b32.xlu0 %v1290_v45, %s4300_s22 }
 0x143   : > { %v1211_v47 = vpop.permute.xlu1 %1210  ;;  %v1092_v48 = vpop.permute.xlu0 %1091  ;;  %v1529_v50 = vld [vmem:[#allocation6 + $0x38] sm:$0xff] }
 0x144   : > { %1263 = vst.msk [vmem:[#allocation6 + $0x40] sm:$0xff] %vm1254_vm8, %v1211_v47  ;;  %4017 = vmatmul.mubr.msk.f32.gmra.mrb[6].mxu0 %vm1549_vm11, %v1529_v50 }
 0x145   : > { %1143 = vst.msk [vmem:[#allocation6 + $0x48] sm:$0xff] %vm1133_vm7, %v1092_v48  ;;  %986 = vrot.lane.b32.xlu1 %v1290_v45, %s4297_s12  ;;  %624 = vrot.lane.b32.xlu0 %v1289_v34, %s4295_s27 }
 0x147   : > { %v852_v51 = vpop.permute.xlu1 %851  ;;  %v732_v53 = vpop.permute.xlu0 %731 }
 0x148   : > { %902 = vst.msk [vmem:[#allocation6 + $0x50] sm:$0xff] %vm891_vm5, %v852_v51 }
 0x149   : > { %781 = vst.msk [vmem:[#allocation6 + $0x58] sm:$0xff] %vm769_vm4, %v732_v53  ;;  %1466 = vrot.lane.b32.xlu1 %v1411_v12, %s4301_s23  ;;  %1105 = vrot.lane.b32.xlu0 %v1410_v5, %s4298_s16 }
 0x14b   : > { %v1332_v54 = vpop.permute.xlu1 %1331  ;;  %v1213_v55 = vpop.permute.xlu0 %1212 }
 0x14c   : > { %1384 = vst.msk [vmem:[#allocation6 + $0x40] sm:$0xff] %vm1375_vm9, %v1332_v54 }
 0x14d   : > { %1264 = vst.msk [vmem:[#allocation6 + $0x48] sm:$0xff] %vm1254_vm8, %v1213_v55  ;;  %626 = vrot.lane.b32.xlu0 %v1290_v45, %s4295_s27  ;;  %745 = vrot.lane.b32.xlu1 %v1410_v5, %s4294_s7 }
 0x14f   : > { %v973_v58 = vpop.permute.xlu1 %972  ;;  %v854_v59 = vpop.permute.xlu0 %853 }
 0x150   : > { %1023 = vst.msk [vmem:[#allocation6 + $0x50] sm:$0xff] %vm1012_vm6, %v973_v58 }
 0x151   : > { %903 = vst.msk [vmem:[#allocation6 + $0x58] sm:$0xff] %vm891_vm5, %v854_v59  ;;  %1107 = vrot.lane.b32.xlu0 %v1411_v12, %s4298_s16  ;;  %1226 = vrot.lane.b32.xlu1 %v1170_v56, %s4299_s19 }
 0x153   : > { %v1453_v61 = vpop.permute.xlu1 %1452  ;;  %v1334_v62 = vpop.permute.xlu0 %1333 }
 0x154   : > { %1505 = vst.msk [vmem:[#allocation6 + $0x40] sm:$0xff] %vm1496_vm10, %v1453_v61 }
 0x155   : > { %1385 = vst.msk [vmem:[#allocation6 + $0x48] sm:$0xff] %vm1375_vm9, %v1334_v62  ;;  %747 = vrot.lane.b32.xlu0 %v1411_v12, %s4294_s7  ;;  %867 = vrot.lane.b32.xlu1 %v1170_v56, %s4296_s10 }
 0x157   : > { %v975_v1 = vpop.permute.xlu1 %974  ;;  %v613_v49 = vpop.permute.xlu0 %612 }
 0x158   : > { %1024 = vst.msk [vmem:[#allocation6 + $0x58] sm:$0xff] %vm1012_vm6, %v975_v1 }
 0x159   : > { %661 = vst.msk [vmem:[#allocation6 + $0x60] sm:$0xff] %vm648_vm3, %v613_v49  ;;  %1228 = vrot.lane.b32.xlu0 %v1171_v63, %s4299_s19  ;;  %1347 = vrot.lane.b32.xlu1 %v1291_v0, %s4300_s22 }
 0x15b   : > { %v1455_v2 = vpop.permute.xlu1 %1454  ;;  %v1094_v3 = vpop.permute.xlu0 %1093  ;;  %v1530_v4 = vld [vmem:[#allocation6 + $0x40] sm:$0xff] }
 0x15c   : > { %1506 = vst.msk [vmem:[#allocation6 + $0x48] sm:$0xff] %vm1496_vm10, %v1455_v2  ;;  %4019 = vmatprep.mubr.msk.f32.mxu0 %vm1549_vm11, %v1530_v4 }
 0x15d   : > { %1144 = vst.msk [vmem:[#allocation6 + $0x50] sm:$0xff] %vm1133_vm7, %v1094_v3  ;;  %869 = vrot.lane.b32.xlu0 %v1171_v63, %s4296_s10  ;;  %988 = vrot.lane.b32.xlu1 %v1291_v0, %s4297_s12  ;;  %v4945_v0 = vld [vmem:[%s5670_s4] ss:$0 sm:$0xff] }
 0x15f   : > { %v734_v8 = vpop.permute.xlu1 %733  ;;  %v615_v52 = vpop.permute.xlu0 %614 }
 0x160   : > { %782 = vst.msk [vmem:[#allocation6 + $0x60] sm:$0xff] %vm769_vm4, %v734_v8 }
 0x161   : > { %662 = vst.msk [vmem:[#allocation6 + $0x68] sm:$0xff] %vm648_vm3, %v615_v52  ;;  %1349 = vrot.lane.b32.xlu0 %v1292_v6, %s4300_s22  ;;  %1468 = vrot.lane.b32.xlu1 %v1412_v7, %s4301_s23 }
 0x163   : > { %v1215_v9 = vpop.permute.xlu1 %1214  ;;  %v1096_v10 = vpop.permute.xlu0 %1095  ;;  %v1531_v11 = vld [vmem:[#allocation6 + $0x48] sm:$0xff] }
 0x164   : > { %1265 = vst.msk [vmem:[#allocation6 + $0x50] sm:$0xff] %vm1254_vm8, %v1215_v9  ;;  %4020 = vmatmul.mubr.msk.f32.gmra.mrb[8].mxu0 %vm1549_vm11, %v1531_v11 }
 0x165   : > { %1145 = vst.msk [vmem:[#allocation6 + $0x58] sm:$0xff] %vm1133_vm7, %v1096_v10  ;;  %990 = vrot.lane.b32.xlu0 %v1292_v6, %s4297_s12  ;;  %1109 = vrot.lane.b32.xlu1 %v1412_v7, %s4298_s16 }
 0x167   : > { %v856_v14 = vpop.permute.xlu1 %855  ;;  %v736_v15 = vpop.permute.xlu0 %735 }
 0x168   : > { %904 = vst.msk [vmem:[#allocation6 + $0x60] sm:$0xff] %vm891_vm5, %v856_v14 }
 0x169   : > { %783 = vst.msk [vmem:[#allocation6 + $0x68] sm:$0xff] %vm769_vm4, %v736_v15  ;;  %1470 = vrot.lane.b32.xlu0 %v1413_v13, %s4301_s23  ;;  %1111 = vrot.lane.b32.xlu1 %v1413_v13, %s4298_s16 }
 0x16b   : > { %v1336_v18 = vpop.permute.xlu1 %1335  ;;  %v1217_v19 = vpop.permute.xlu0 %1216 }
 0x16c   : > { %1386 = vst.msk [vmem:[#allocation6 + $0x50] sm:$0xff] %vm1375_vm9, %v1336_v18 }
 0x16d   : > { %1266 = vst.msk [vmem:[#allocation6 + $0x58] sm:$0xff] %vm1254_vm8, %v1217_v19  ;;  %1230 = vrot.lane.b32.xlu0 %v1172_v16, %s4299_s19  ;;  %1232 = vrot.lane.b32.xlu1 %v1173_v17, %s4299_s19 }
 0x16f   : > { %v977_v22 = vpop.permute.xlu1 %976  ;;  %v858_v23 = vpop.permute.xlu0 %857 }
 0x170   : > { %1025 = vst.msk [vmem:[#allocation6 + $0x60] sm:$0xff] %vm1012_vm6, %v977_v22 }
 0x171   : > { %905 = vst.msk [vmem:[#allocation6 + $0x68] sm:$0xff] %vm891_vm5, %v858_v23  ;;  %1351 = vrot.lane.b32.xlu0 %v1293_v20, %s4300_s22  ;;  %1353 = vrot.lane.b32.xlu1 %v1294_v21, %s4300_s22 }
 0x173   : > { %v1457_v25 = vpop.permute.xlu1 %1456  ;;  %v1338_v26 = vpop.permute.xlu0 %1337 }
 0x174   : > { %1507 = vst.msk [vmem:[#allocation6 + $0x50] sm:$0xff] %vm1496_vm10, %v1457_v25 }
 0x175   : > { %1387 = vst.msk [vmem:[#allocation6 + $0x58] sm:$0xff] %vm1375_vm9, %v1338_v26  ;;  %1472 = vrot.lane.b32.xlu0 %v1414_v57, %s4301_s23  ;;  %1474 = vrot.lane.b32.xlu1 %v1415_v24, %s4301_s23 }
 0x177   : > { %v979_v27 = vpop.permute.xlu1 %978  ;;  %v617_v28 = vpop.permute.xlu0 %616 }
 0x178   : > { %1026 = vst.msk [vmem:[#allocation6 + $0x68] sm:$0xff] %vm1012_vm6, %v979_v27 }
 0x179   : > { %663 = vst.msk [vmem:[#allocation6 + $0x70] sm:$0xff] %vm648_vm3, %v617_v28 }
 0x17b   : > { %v1459_v29 = vpop.permute.xlu1 %1458  ;;  %v1098_v60 = vpop.permute.xlu0 %1097  ;;  %v1532_v30 = vld [vmem:[#allocation6 + $0x50] sm:$0xff] }
 0x17c   : > { %1508 = vst.msk [vmem:[#allocation6 + $0x58] sm:$0xff] %vm1496_vm10, %v1459_v29  ;;  %4022 = vmatprep.mubr.msk.f32.mxu0 %vm1549_vm11, %v1532_v30 }
 0x17d   : > { %1146 = vst.msk [vmem:[#allocation6 + $0x60] sm:$0xff] %vm1133_vm7, %v1098_v60 }
 0x17f   : > { %v738_v31 = vpop.permute.xlu1 %737  ;;  %v619_v32 = vpop.permute.xlu0 %618 }
 0x180   : > { %784 = vst.msk [vmem:[#allocation6 + $0x70] sm:$0xff] %vm769_vm4, %v738_v31 }
 0x181   : > { %664 = vst.msk [vmem:[#allocation6 + $0x78] sm:$0xff] %vm648_vm3, %v619_v32 }
 0x183   : > { %v1219_v33 = vpop.permute.xlu1 %1218  ;;  %v1100_v35 = vpop.permute.xlu0 %1099  ;;  %v1533_v36 = vld [vmem:[#allocation6 + $0x58] sm:$0xff] }
 0x184   : > { %1267 = vst.msk [vmem:[#allocation6 + $0x60] sm:$0xff] %vm1254_vm8, %v1219_v33  ;;  %4023 = vmatmul.mubr.msk.f32.gmra.mrb[10].mxu0 %vm1549_vm11, %v1533_v36 }
 0x185   : > { %1147 = vst.msk [vmem:[#allocation6 + $0x68] sm:$0xff] %vm1133_vm7, %v1100_v35 }
 0x187   : > { %v860_v37 = vpop.permute.xlu1 %859  ;;  %v740_v38 = vpop.permute.xlu0 %739 }
 0x188   : > { %906 = vst.msk [vmem:[#allocation6 + $0x70] sm:$0xff] %vm891_vm5, %v860_v37 }
 0x189   : > { %785 = vst.msk [vmem:[#allocation6 + $0x78] sm:$0xff] %vm769_vm4, %v740_v38 }
 0x18b   : > { %v1340_v34 = vpop.permute.xlu1 %1339  ;;  %v1221_v40 = vpop.permute.xlu0 %1220 }
 0x18c   : > { %1388 = vst.msk [vmem:[#allocation6 + $0x60] sm:$0xff] %vm1375_vm9, %v1340_v34 }
 0x18d   : > { %1268 = vst.msk [vmem:[#allocation6 + $0x68] sm:$0xff] %vm1254_vm8, %v1221_v40 }
 0x18f   : > { %v981_v41 = vpop.permute.xlu1 %980  ;;  %v862_v42 = vpop.permute.xlu0 %861 }
 0x190   : > { %1027 = vst.msk [vmem:[#allocation6 + $0x70] sm:$0xff] %vm1012_vm6, %v981_v41 }
 0x191   : > { %907 = vst.msk [vmem:[#allocation6 + $0x78] sm:$0xff] %vm891_vm5, %v862_v42 }
 0x193   : > { %v1461_v43 = vpop.permute.xlu1 %1460  ;;  %v1342_v44 = vpop.permute.xlu0 %1341 }
 0x194   : > { %1509 = vst.msk [vmem:[#allocation6 + $0x60] sm:$0xff] %vm1496_vm10, %v1461_v43 }
 0x195   : > { %1389 = vst.msk [vmem:[#allocation6 + $0x68] sm:$0xff] %vm1375_vm9, %v1342_v44 }
 0x197   : > { %v983_v5 = vpop.permute.xlu1 %982  ;;  %v621_v45 = vpop.permute.xlu0 %620 }
 0x198   : > { %1028 = vst.msk [vmem:[#allocation6 + $0x78] sm:$0xff] %vm1012_vm6, %v983_v5 }
 0x199   : > { %665 = vst.msk [vmem:[#allocation6 + $0x80] sm:$0xff] %vm648_vm3, %v621_v45 }
 0x19b   : > { %v1463_v39 = vpop.permute.xlu1 %1462  ;;  %v1102_v46 = vpop.permute.xlu0 %1101  ;;  %v1534_v47 = vld [vmem:[#allocation6 + $0x60] sm:$0xff] }
 0x19c   : > { %1510 = vst.msk [vmem:[#allocation6 + $0x68] sm:$0xff] %vm1496_vm10, %v1463_v39  ;;  %4025 = vmatprep.mubr.msk.f32.mxu0 %vm1549_vm11, %v1534_v47 }
 0x19d   : > { %1148 = vst.msk [vmem:[#allocation6 + $0x70] sm:$0xff] %vm1133_vm7, %v1102_v46 }
 0x19f   : > { %v742_v48 = vpop.permute.xlu1 %741  ;;  %v623_v50 = vpop.permute.xlu0 %622 }
 0x1a0   : > { %786 = vst.msk [vmem:[#allocation6 + $0x80] sm:$0xff] %vm769_vm4, %v742_v48 }
 0x1a1   : > { %666 = vst.msk [vmem:[#allocation6 + $0x88] sm:$0xff] %vm648_vm3, %v623_v50 }
 0x1a3   : > { %v1223_v12 = vpop.permute.xlu1 %1222  ;;  %v1104_v51 = vpop.permute.xlu0 %1103  ;;  %v1535_v53 = vld [vmem:[#allocation6 + $0x68] sm:$0xff] }
 0x1a4   : > { %1269 = vst.msk [vmem:[#allocation6 + $0x70] sm:$0xff] %vm1254_vm8, %v1223_v12  ;;  %4026 = vmatmul.mubr.msk.f32.gmra.mrb[12].mxu0 %vm1549_vm11, %v1535_v53 }
 0x1a5   : > { %1149 = vst.msk [vmem:[#allocation6 + $0x78] sm:$0xff] %vm1133_vm7, %v1104_v51 }
 0x1a7   : > { %v864_v54 = vpop.permute.xlu1 %863  ;;  %v744_v55 = vpop.permute.xlu0 %743 }
 0x1a8   : > { %908 = vst.msk [vmem:[#allocation6 + $0x80] sm:$0xff] %vm891_vm5, %v864_v54 }
 0x1a9   : > { %787 = vst.msk [vmem:[#allocation6 + $0x88] sm:$0xff] %vm769_vm4, %v744_v55 }
 0x1ab   : > { %v1344_v56 = vpop.permute.xlu1 %1343  ;;  %v1225_v58 = vpop.permute.xlu0 %1224 }
 0x1ac   : > { %1390 = vst.msk [vmem:[#allocation6 + $0x70] sm:$0xff] %vm1375_vm9, %v1344_v56 }
 0x1ad   : > { %1270 = vst.msk [vmem:[#allocation6 + $0x78] sm:$0xff] %vm1254_vm8, %v1225_v58 }
 0x1af   : > { %v985_v59 = vpop.permute.xlu1 %984  ;;  %v866_v61 = vpop.permute.xlu0 %865 }
 0x1b0   : > { %1029 = vst.msk [vmem:[#allocation6 + $0x80] sm:$0xff] %vm1012_vm6, %v985_v59 }
 0x1b1   : > { %909 = vst.msk [vmem:[#allocation6 + $0x88] sm:$0xff] %vm891_vm5, %v866_v61 }
 0x1b3   : > { %v1465_v62 = vpop.permute.xlu1 %1464  ;;  %v1346_v63 = vpop.permute.xlu0 %1345 }
 0x1b4   : > { %1511 = vst.msk [vmem:[#allocation6 + $0x70] sm:$0xff] %vm1496_vm10, %v1465_v62 }
 0x1b5   : > { %1391 = vst.msk [vmem:[#allocation6 + $0x78] sm:$0xff] %vm1375_vm9, %v1346_v63 }
 0x1b7   : > { %v987_v1 = vpop.permute.xlu1 %986  ;;  %v625_v49 = vpop.permute.xlu0 %624 }
 0x1b8   : > { %1030 = vst.msk [vmem:[#allocation6 + $0x88] sm:$0xff] %vm1012_vm6, %v987_v1  ;;  %v4009_v2 = vpop.f32.mrb[0].mxu0 }
 0x1b9   : > { %667 = vst.msk [vmem:[#allocation6 + $0x90] sm:$0xff] %vm648_vm3, %v625_v49  ;;  %v1686_v3 = vadd.f32 %v4009_v2, %v4945_v0  ;;  %v1680_v4 = vpop.f32.mrb[1].mxu0 }
 0x1ba   : > { %v1681_v6 = vadd.f32 %v4945_v0, %v1680_v4 }
 0x1bb   : > { %v1780_v7 = vmul.f32 0.2, %v1686_v3  ;;  %v1467_v8 = vpop.permute.xlu1 %1466  ;;  %v1106_v52 = vpop.permute.xlu0 %1105  ;;  %v1536_v9 = vld [vmem:[#allocation6 + $0x70] sm:$0xff] }
 0x1bc   : > { %v1779_v10 = vmul.f32 0.2, %v1681_v6  ;;  %1512 = vst.msk [vmem:[#allocation6 + $0x78] sm:$0xff] %vm1496_vm10, %v1467_v8  ;;  %4028 = vmatprep.mubr.msk.f32.mxu0 %vm1549_vm11, %v1536_v9 }
 0x1bd   : > { %1150 = vst.msk [vmem:[#allocation6 + $0x80] sm:$0xff] %vm1133_vm7, %v1106_v52  ;;  %v1800_v11 = vmax.f32 %v1686_v3, %v1780_v7 }
 0x1be   : > { %v1799_v13 = vmax.f32 %v1681_v6, %v1779_v10 }
 0x1bf   : > { %1821 = vst.msk [vmem:[#allocation2 + $0x9] sm:$0xff] %vm1819_vm12, %v1800_v11  ;;  %v627_v14 = vpop.permute.xlu0 %626  ;;  %v746_v15 = vpop.permute.xlu1 %745 }
 0x1c0   : > { %1820 = vst.msk [vmem:[#allocation2 + $0x1] sm:$0xff] %vm1819_vm12, %v1799_v13 }
 0x1c1   : > { %668 = vst.msk [vmem:[#allocation6 + $0x98] sm:$0xff] %vm648_vm3, %v627_v14 }
 0x1c2   : > { %788 = vst.msk [vmem:[#allocation6 + $0x90] sm:$0xff] %vm769_vm4, %v746_v15 }
 0x1c3   : > { %v1108_v16 = vpop.permute.xlu0 %1107  ;;  %v1227_v17 = vpop.permute.xlu1 %1226  ;;  %v1537_v18 = vld [vmem:[#allocation6 + $0x78] sm:$0xff] }
 0x1c4   : > { %1151 = vst.msk [vmem:[#allocation6 + $0x88] sm:$0xff] %vm1133_vm7, %v1108_v16  ;;  %4029 = vmatmul.mubr.msk.f32.gmra.mrb[14].mxu0 %vm1549_vm11, %v1537_v18 }
 0x1c5   : > { %1271 = vst.msk [vmem:[#allocation6 + $0x80] sm:$0xff] %vm1254_vm8, %v1227_v17 }
 0x1c7   : > { %v748_v19 = vpop.permute.xlu0 %747  ;;  %v868_v20 = vpop.permute.xlu1 %867 }
 0x1c8   : > { %789 = vst.msk [vmem:[#allocation6 + $0x98] sm:$0xff] %vm769_vm4, %v748_v19 }
 0x1c9   : > { %910 = vst.msk [vmem:[#allocation6 + $0x90] sm:$0xff] %vm891_vm5, %v868_v20 }
 0x1cb   : > { %v1229_v21 = vpop.permute.xlu0 %1228  ;;  %v1348_v22 = vpop.permute.xlu1 %1347 }
 0x1cc   : > { %1272 = vst.msk [vmem:[#allocation6 + $0x88] sm:$0xff] %vm1254_vm8, %v1229_v21 }
 0x1cd   : > { %1392 = vst.msk [vmem:[#allocation6 + $0x80] sm:$0xff] %vm1375_vm9, %v1348_v22 }
 0x1cf   : > { %v870_v23 = vpop.permute.xlu0 %869  ;;  %v989_v57 = vpop.permute.xlu1 %988 }
 0x1d0   : > { %911 = vst.msk [vmem:[#allocation6 + $0x98] sm:$0xff] %vm891_vm5, %v870_v23 }
 0x1d1   : > { %1031 = vst.msk [vmem:[#allocation6 + $0x90] sm:$0xff] %vm1012_vm6, %v989_v57 }
 0x1d3   : > { %v1350_v24 = vpop.permute.xlu0 %1349  ;;  %v1469_v25 = vpop.permute.xlu1 %1468 }
 0x1d4   : > { %1393 = vst.msk [vmem:[#allocation6 + $0x88] sm:$0xff] %vm1375_vm9, %v1350_v24 }
 0x1d5   : > { %1513 = vst.msk [vmem:[#allocation6 + $0x80] sm:$0xff] %vm1496_vm10, %v1469_v25 }
 0x1d7   : > { %v991_v26 = vpop.permute.xlu0 %990  ;;  %v4012_v27 = vpop.f32.mrb[2].mxu0 }
 0x1d8   : > { %1032 = vst.msk [vmem:[#allocation6 + $0x98] sm:$0xff] %vm1012_vm6, %v991_v26  ;;  %v1696_v28 = vadd.f32 %v4012_v27, %v4945_v0  ;;  %v1110_v29 = vpop.permute.xlu1 %1109  ;;  %v1690_v60 = vpop.f32.mrb[3].mxu0 }
 0x1d9   : > { %1152 = vst.msk [vmem:[#allocation6 + $0x90] sm:$0xff] %vm1133_vm7, %v1110_v29  ;;  %v1691_v30 = vadd.f32 %v4945_v0, %v1690_v60 }
 0x1da   : > { %v1782_v31 = vmul.f32 0.2, %v1696_v28 }
 0x1db   : > { %v1781_v32 = vmul.f32 0.2, %v1691_v30  ;;  %v1471_v33 = vpop.permute.xlu0 %1470 }
 0x1dc   : > { %v1538_v35 = vld [vmem:[#allocation6 + $0x80] sm:$0xff]  ;;  %v1802_v36 = vmax.f32 %v1696_v28, %v1782_v31  ;;  %1514 = vst.msk [vmem:[#allocation6 + $0x88] sm:$0xff] %vm1496_vm10, %v1471_v33  ;;  %v1112_v37 = vpop.permute.xlu1 %1111 }
 0x1dd   : > { %4031 = vmatprep.mubr.msk.f32.mxu0 %vm1549_vm11, %v1538_v35  ;;  %v1801_v38 = vmax.f32 %v1691_v30, %v1781_v32  ;;  %1153 = vst.msk [vmem:[#allocation6 + $0x98] sm:$0xff] %vm1133_vm7, %v1112_v37 }
 0x1de   : > { %1823 = vst.msk [vmem:[#allocation2 + $0x21] sm:$0xff] %vm1819_vm12, %v1802_v36 }
 0x1df   : > { %1822 = vst.msk [vmem:[#allocation2 + $0x19] sm:$0xff] %vm1819_vm12, %v1801_v38  ;;  %v1231_v34 = vpop.permute.xlu0 %1230 }
 0x1e0   : > { %1273 = vst.msk [vmem:[#allocation6 + $0x90] sm:$0xff] %vm1254_vm8, %v1231_v34  ;;  %v1233_v40 = vpop.permute.xlu1 %1232 }
 0x1e1   : > { %1274 = vst.msk [vmem:[#allocation6 + $0x98] sm:$0xff] %vm1254_vm8, %v1233_v40 }
 0x1e3   : > { %v1352_v41 = vpop.permute.xlu0 %1351  ;;  %v1539_v42 = vld [vmem:[#allocation6 + $0x88] sm:$0xff] }
 0x1e4   : > { %1394 = vst.msk [vmem:[#allocation6 + $0x90] sm:$0xff] %vm1375_vm9, %v1352_v41  ;;  %v1354_v43 = vpop.permute.xlu1 %1353  ;;  %4032 = vmatmul.mubr.msk.f32.gmra.mrb[16].mxu0 %vm1549_vm11, %v1539_v42 }
 0x1e5   : > { %1395 = vst.msk [vmem:[#allocation6 + $0x98] sm:$0xff] %vm1375_vm9, %v1354_v43 }
 0x1e7   : > { %v1473_v44 = vpop.permute.xlu0 %1472 }
 0x1e8   : > { %1515 = vst.msk [vmem:[#allocation6 + $0x90] sm:$0xff] %vm1496_vm10, %v1473_v44  ;;  %v1475_v5 = vpop.permute.xlu1 %1474 }
 0x1e9   : > { %1516 = vst.msk [vmem:[#allocation6 + $0x98] sm:$0xff] %vm1496_vm10, %v1475_v5 }
 0x1ef   : > { %v1540_v45 = vld [vmem:[#allocation6 + $0x90] sm:$0xff] }
 0x1f0   : > { %4034 = vmatprep.mubr.msk.f32.mxu0 %vm1549_vm11, %v1540_v45  ;;  %v1541_v39 = vld [vmem:[#allocation6 + $0x98] sm:$0xff] }
 0x1f1   : > { %4035 = vmatmul.mubr.msk.f32.gmra.mrb[18].mxu0 %vm1549_vm11, %v1541_v39 }
 0x1f7   : > { %v4015_v46 = vpop.f32.mrb[4].mxu0 }
 0x1f8   : > { %v1706_v47 = vadd.f32 %v4015_v46, %v4945_v0  ;;  %v1700_v48 = vpop.f32.mrb[5].mxu0 }
 0x1f9   : > { %v1701_v50 = vadd.f32 %v4945_v0, %v1700_v48 }
 0x1fa   : > { %v1784_v12 = vmul.f32 0.2, %v1706_v47 }
 0x1fb   : > { %v1783_v51 = vmul.f32 0.2, %v1701_v50 }
 0x1fc   : > { %v1804_v53 = vmax.f32 %v1706_v47, %v1784_v12  ;;  %v4302_v47 = vmov 0.0  }
 0x1fd   : > { %v1803_v54 = vmax.f32 %v1701_v50, %v1783_v51  ;;  %1841 = vst.msk [vmem:[#allocation2] sm:$0x1] %vm1840_vm13, %v4302_v47  ;;  %1842 = vst.msk [vmem:[#allocation2 + $0x18] sm:$0x1] %vm1840_vm13, %v4302_v47 }
 0x1fe   : > { %1825 = vst.msk [vmem:[#allocation2 + $0x39] sm:$0xff] %vm1819_vm12, %v1804_v53 }
 0x1ff   : > { %1824 = vst.msk [vmem:[#allocation2 + $0x31] sm:$0xff] %vm1819_vm12, %v1803_v54 }
 0x200   : > { %1843 = vst.msk [vmem:[#allocation2 + $0x30] sm:$0x1] %vm1840_vm13, %v4302_v47  ;;  %1844 = vst.msk [vmem:[#allocation2 + $0x48] sm:$0x1] %vm1840_vm13, %v4302_v47 }
 0x201   : > { %1845 = vst.msk [vmem:[#allocation2 + $0x60] sm:$0x1] %vm1840_vm13, %v4302_v47  ;;  %1846 = vst.msk [vmem:[#allocation2 + $0x78] sm:$0x1] %vm1840_vm13, %v4302_v47 }
 0x202   : > { %1847 = vst.msk [vmem:[#allocation2 + $0x90] sm:$0x1] %vm1840_vm13, %v4302_v47  ;;  %1848 = vst.msk [vmem:[#allocation2 + $0xa8] sm:$0x1] %vm1840_vm13, %v4302_v47 }
 0x203   : > { %1849 = vst.msk [vmem:[#allocation2 + $0xc0] sm:$0x1] %vm1840_vm13, %v4302_v47  ;;  %1850 = vst.msk [vmem:[#allocation2 + $0xd8] sm:$0x1] %vm1840_vm13, %v4302_v47 }
 0x204   : > { %1851 = vst.msk [vmem:[#allocation2 + $0x11] sm:$0x1] %vm1840_vm13, %v4302_v47  ;;  %1852 = vst.msk [vmem:[#allocation2 + $0x29] sm:$0x1] %vm1840_vm13, %v4302_v47 }
 0x205   : > { %1853 = vst.msk [vmem:[#allocation2 + $0x41] sm:$0x1] %vm1840_vm13, %v4302_v47  ;;  %1854 = vst.msk [vmem:[#allocation2 + $0x59] sm:$0x1] %vm1840_vm13, %v4302_v47 }
 0x206   : > { %1855 = vst.msk [vmem:[#allocation2 + $0x71] sm:$0x1] %vm1840_vm13, %v4302_v47  ;;  %1856 = vst.msk [vmem:[#allocation2 + $0x89] sm:$0x1] %vm1840_vm13, %v4302_v47 }
 0x207   : > { %1857 = vst.msk [vmem:[#allocation2 + $0xa1] sm:$0x1] %vm1840_vm13, %v4302_v47  ;;  %1858 = vst.msk [vmem:[#allocation2 + $0xb9] sm:$0x1] %vm1840_vm13, %v4302_v47 }
 0x208   : > { %1859 = vst.msk [vmem:[#allocation2 + $0xd1] sm:$0x1] %vm1840_vm13, %v4302_v47  ;;  %1860 = vst.msk [vmem:[#allocation2 + $0xe9] sm:$0x1] %vm1840_vm13, %v4302_v47 }
 0x217   : > { %v4018_v55 = vpop.f32.mrb[6].mxu0 }
 0x218   : > { %v1716_v56 = vadd.f32 %v4018_v55, %v4945_v0  ;;  %v1710_v58 = vpop.f32.mrb[7].mxu0 }
 0x219   : > { %v1711_v59 = vadd.f32 %v4945_v0, %v1710_v58 }
 0x21a   : > { %v1786_v61 = vmul.f32 0.2, %v1716_v56 }
 0x21b   : > { %v1785_v62 = vmul.f32 0.2, %v1711_v59 }
 0x21c   : > { %v1806_v63 = vmax.f32 %v1716_v56, %v1786_v61 }
 0x21d   : > { %v1805_v1 = vmax.f32 %v1711_v59, %v1785_v62 }
 0x21e   : > { %1827 = vst.msk [vmem:[#allocation2 + $0x51] sm:$0xff] %vm1819_vm12, %v1806_v63 }
 0x21f   : > { %1826 = vst.msk [vmem:[#allocation2 + $0x49] sm:$0xff] %vm1819_vm12, %v1805_v1 }
 0x237   : > { %v4021_v49 = vpop.f32.mrb[8].mxu0 }
 0x238   : > { %v1726_v2 = vadd.f32 %v4021_v49, %v4945_v0  ;;  %v1720_v3 = vpop.f32.mrb[9].mxu0 }
 0x239   : > { %v1721_v4 = vadd.f32 %v4945_v0, %v1720_v3 }
 0x23a   : > { %v1788_v6 = vmul.f32 0.2, %v1726_v2 }
 0x23b   : > { %v1787_v7 = vmul.f32 0.2, %v1721_v4 }
 0x23c   : > { %v1808_v8 = vmax.f32 %v1726_v2, %v1788_v6 }
 0x23d   : > { %v1807_v52 = vmax.f32 %v1721_v4, %v1787_v7 }
 0x23e   : > { %1829 = vst.msk [vmem:[#allocation2 + $0x69] sm:$0xff] %vm1819_vm12, %v1808_v8 }
 0x23f   : > { %1828 = vst.msk [vmem:[#allocation2 + $0x61] sm:$0xff] %vm1819_vm12, %v1807_v52 }
 0x257   : > { %v4024_v9 = vpop.f32.mrb[10].mxu0 }
 0x258   : > { %v1736_v10 = vadd.f32 %v4024_v9, %v4945_v0  ;;  %v1730_v11 = vpop.f32.mrb[11].mxu0 }
 0x259   : > { %v1731_v13 = vadd.f32 %v4945_v0, %v1730_v11 }
 0x25a   : > { %v1790_v14 = vmul.f32 0.2, %v1736_v10 }
 0x25b   : > { %v1789_v15 = vmul.f32 0.2, %v1731_v13 }
 0x25c   : > { %v1810_v16 = vmax.f32 %v1736_v10, %v1790_v14 }
 0x25d   : > { %v1809_v17 = vmax.f32 %v1731_v13, %v1789_v15 }
 0x25e   : > { %1831 = vst.msk [vmem:[#allocation2 + $0x81] sm:$0xff] %vm1819_vm12, %v1810_v16 }
 0x25f   : > { %1830 = vst.msk [vmem:[#allocation2 + $0x79] sm:$0xff] %vm1819_vm12, %v1809_v17 }
 0x277   : > { %v4027_v18 = vpop.f32.mrb[12].mxu0 }
 0x278   : > { %v1746_v19 = vadd.f32 %v4027_v18, %v4945_v0  ;;  %v1740_v20 = vpop.f32.mrb[13].mxu0 }
 0x279   : > { %v1741_v21 = vadd.f32 %v4945_v0, %v1740_v20 }
 0x27a   : > { %v1792_v22 = vmul.f32 0.2, %v1746_v19 }
 0x27b   : > { %v1791_v23 = vmul.f32 0.2, %v1741_v21 }
 0x27c   : > { %v1812_v57 = vmax.f32 %v1746_v19, %v1792_v22 }
 0x27d   : > { %v1811_v24 = vmax.f32 %v1741_v21, %v1791_v23 }
 0x27e   : > { %1833 = vst.msk [vmem:[#allocation2 + $0x99] sm:$0xff] %vm1819_vm12, %v1812_v57 }
 0x27f   : > { %1832 = vst.msk [vmem:[#allocation2 + $0x91] sm:$0xff] %vm1819_vm12, %v1811_v24 }
 0x297   : > { %v4030_v25 = vpop.f32.mrb[14].mxu0 }
 0x298   : > { %v1756_v26 = vadd.f32 %v4030_v25, %v4945_v0  ;;  %v1750_v27 = vpop.f32.mrb[15].mxu0 }
 0x299   : > { %v1751_v28 = vadd.f32 %v4945_v0, %v1750_v27 }
 0x29a   : > { %v1794_v29 = vmul.f32 0.2, %v1756_v26 }
 0x29b   : > { %v1793_v60 = vmul.f32 0.2, %v1751_v28 }
 0x29c   : > { %v1814_v30 = vmax.f32 %v1756_v26, %v1794_v29 }
 0x29d   : > { %v1813_v31 = vmax.f32 %v1751_v28, %v1793_v60 }
 0x29e   : > { %1835 = vst.msk [vmem:[#allocation2 + $0xb1] sm:$0xff] %vm1819_vm12, %v1814_v30 }
 0x29f   : > { %1834 = vst.msk [vmem:[#allocation2 + $0xa9] sm:$0xff] %vm1819_vm12, %v1813_v31 }
 0x2b7   : > { %v4033_v32 = vpop.f32.mrb[16].mxu0 }
 0x2b8   : > { %v1766_v33 = vadd.f32 %v4033_v32, %v4945_v0  ;;  %v1760_v35 = vpop.f32.mrb[17].mxu0 }
 0x2b9   : > { %v1761_v36 = vadd.f32 %v4945_v0, %v1760_v35 }
 0x2ba   : > { %v1796_v37 = vmul.f32 0.2, %v1766_v33 }
 0x2bb   : > { %v1795_v38 = vmul.f32 0.2, %v1761_v36 }
 0x2bc   : > { %v1816_v34 = vmax.f32 %v1766_v33, %v1796_v37 }
 0x2bd   : > { %v1815_v40 = vmax.f32 %v1761_v36, %v1795_v38 }
 0x2be   : > { %1837 = vst.msk [vmem:[#allocation2 + $0xc9] sm:$0xff] %vm1819_vm12, %v1816_v34 }
 0x2bf   : > { %1836 = vst.msk [vmem:[#allocation2 + $0xc1] sm:$0xff] %vm1819_vm12, %v1815_v40 }
 0x2c4   : > { %v4036_v41 = vpop.f32.mrb[18].mxu0 }
 0x2c5   : > { %v1776_v42 = vadd.f32 %v4036_v41, %v4945_v0  ;;  %v1770_v43 = vpop.f32.mrb[19].mxu0 }
 0x2c6   : > { %v1771_v44 = vadd.f32 %v4945_v0, %v1770_v43  ;;  %1864 = sbr.rel (%p3922_p1) target bundleno = 717 (0x2cd), region = 53  ;;  %v4303_v0 = vmov (!%p3922_p1), 0.0  }
 0x2c7   : > { %v1798_v5 = vmul.f32 0.2, %v1776_v42  ;;  %1866 = vst.msk [vmem:[#allocation2] sm:$0xff] (!%p3922_p1), %vm1819_vm12, %v4303_v0  ;;  %1867 = vst.msk [vmem:[#allocation2 + $0x8] sm:$0xff] (!%p3922_p1), %vm1819_vm12, %v4303_v0 }
 0x2c8   : > { %v1797_v45 = vmul.f32 0.2, %v1771_v44  ;;  %1869 = vst.msk [vmem:[#allocation2 + $0x10] sm:$0x3] (!%p3922_p1), %vm1868_vm14, %v4303_v0 }
 0x2c9   : > { %v1818_v39 = vmax.f32 %v1776_v42, %v1798_v5 }
 0x2ca   : > { %v1817_v46 = vmax.f32 %v1771_v44, %v1797_v45 }
 0x2cb   : > { %1839 = vst.msk [vmem:[#allocation2 + $0xe1] sm:$0xff] %vm1819_vm12, %v1818_v39 }
 0x2cc   : > { %1838 = vst.msk [vmem:[#allocation2 + $0xd9] sm:$0xff] %vm1819_vm12, %v1817_v46 }
 0x2cd PF: > { %p3923_p2 = scmp.ne.s32.totalorder %s4275_s30, 1 }
 0x2ce   : > { %vm1878_vm15 = vcmask (!%p3923_p2), 58368   ;;  %v4304_v48 = vmov (!%p3923_p2), 0.0  }
 0x2cf   : > { %1873 = sbr.rel (%p3923_p2) target bundleno = 726 (0x2d6), region = 57  ;;  %1876 = vst.msk [vmem:[#allocation2 + $0xd8] sm:$0xff] (!%p3923_p2), %vm1819_vm12, %v4304_v48  ;;  %1877 = vst.msk [vmem:[#allocation2 + $0xe0] sm:$0xff] (!%p3923_p2), %vm1819_vm12, %v4304_v48 }
 0x2d0   : > { %1879 = vst.msk [vmem:[#allocation2 + $0xe8] sm:$0x3] (!%p3923_p2), %vm1878_vm15, %v4304_v48 }
 0x2d6 PF: > { %v2010_v50 = vld [vmem:[#allocation2 + $0x2] sm:$0xff]  ;;  %s4305_s7 = smov 16   ;;  %s4306_s27 = smov 8   ;;  %v2108_v53 = vld [vmem:[#allocation2 + $0x18] sm:$0xff]  ;;  %v2011_v54 = vld [vmem:[#allocation2 + $0xa] sm:$0xff]  ;;  %vm1993_vm0 = vcmask 130112  }
 0x2d7   : > { %v1913_v12 = vld [vmem:[#allocation2 + $0x1] sm:$0xff]  ;;  %2042 = vrot.lane.b32.xlu1 %v2010_v50, %s4305_s7  ;;  %v1914_v55 = vld [vmem:[#allocation2 + $0x9] sm:$0xff]  ;;  %1899 = vst.msk [vmem:[#allocation7 + $0x10] sm:$0xff] %vm1819_vm12, %v2108_v53  ;;  %v5049_v58 = vld [vmem:[#allocation2 + $0x38] sm:$0xff]  ;;  %s4307_s10 = smov 24   ;;  %s4308_s12 = smov 32  }
 0x2d8   : > { %1945 = vrot.lane.b32.xlu0 %v1913_v12, %s4306_s27  ;;  %v2109_v51 = vld [vmem:[#allocation2 + $0x20] sm:$0xff]  ;;  %v2400_v56 = vld [vmem:[#allocation2 + $0x30] sm:$0xff]  ;;  %v5054_v59 = vld [vmem:[#allocation2 + $0x48] sm:$0xff]  ;;  %1902 = vst.msk [vmem:[#allocation7 + $0x28] sm:$0xff] %vm1819_vm12, %v5049_v58  ;;  %s4309_s16 = smov 40   ;;  %s4310_s14 = smov 48  }
 0x2d9   : > { %1900 = vst.msk [vmem:[#allocation7 + $0x18] sm:$0xff] %vm1819_vm12, %v2109_v51  ;;  %1901 = vst.msk [vmem:[#allocation7 + $0x20] sm:$0xff] %vm1819_vm12, %v2400_v56  ;;  %v5058_v61 = vld [vmem:[#allocation2 + $0x50] sm:$0xff]  ;;  %v5062_v62 = vld [vmem:[#allocation2 + $0x60] sm:$0xff]  ;;  %s4311_s21 = smov 56   ;;  %s4312_s23 = smov 64  }
 0x2da   : > { %1903 = vst.msk [vmem:[#allocation7 + $0x30] sm:$0xff] %vm1819_vm12, %v5054_v59  ;;  %1904 = vst.msk [vmem:[#allocation7 + $0x38] sm:$0xff] %vm1819_vm12, %v5058_v61  ;;  %v5066_v63 = vld [vmem:[#allocation2 + $0x68] sm:$0xff]  ;;  %v1880_v1 = vld [vmem:[#allocation2] sm:$0xff]  ;;  %vm2090_vm1 = vcmask 195712   ;;  %vm2188_vm2 = vcmask 261312  }
 0x2db   : > { %2044 = vrot.lane.b32.xlu1 %v2011_v54, %s4305_s7  ;;  %1905 = vst.msk [vmem:[#allocation7 + $0x40] sm:$0xff] %vm1819_vm12, %v5062_v62  ;;  %v1881_v49 = vld [vmem:[#allocation2 + $0x8] sm:$0xff]  ;;  %1906 = vst.msk [vmem:[#allocation7 + $0x48] sm:$0xff] %vm1819_vm12, %v5066_v63  ;;  %v1915_v2 = vld [vmem:[#allocation2 + $0x19] sm:$0xff]  ;;  %vm2285_vm3 = vcmask 326912   ;;  %vm2382_vm4 = vcmask 392512  }
 0x2dc   : > { %1947 = vrot.lane.b32.xlu0 %v1914_v55, %s4306_s27  ;;  %1897 = vst.msk [vmem:[#allocation7] sm:$0xff] %vm1819_vm12, %v1880_v1  ;;  %1898 = vst.msk [vmem:[#allocation7 + $0x8] sm:$0xff] %vm1819_vm12, %v1881_v49  ;;  %v5076_v3 = vld [vmem:[#allocation2 + $0x78] sm:$0xff]  ;;  %v5078_v4 = vld [vmem:[#allocation2 + $0x80] sm:$0xff]  ;;  %vm2480_vm5 = vcmask 458112   ;;  %vm2577_vm6 = vcmask 523712  }
 0x2dd   : > { %1907 = vst.msk [vmem:[#allocation7 + $0x50] sm:$0xff] %vm1819_vm12, %v5076_v3  ;;  %1908 = vst.msk [vmem:[#allocation7 + $0x58] sm:$0xff] %vm1819_vm12, %v5078_v4  ;;  %v2302_v6 = vld [vmem:[#allocation2 + $0x1a] sm:$0xff]  ;;  %v2303_v8 = vld [vmem:[#allocation2 + $0x22] sm:$0xff]  ;;  %vm2674_vm7 = vcmask 589312   ;;  %vm2723_vm8 = vcmask 588800  }
 0x2de   : > { %v2206_v7 = vld [vmem:[#allocation2 + $0x21] sm:$0xff]  ;;  %v5096_v10 = vld [vmem:[#allocation2 + $0x90] sm:$0xff]  ;;  %v2694_v14 = vld [vmem:[%s5671_s5 + $0x18] sm:$0xff]  ;;  %vm3317_vm9 = vcmask 58368   ;;  %vm3638_vm10 = vcmask 1041409   ;;  %vm3640_vm11 = vcmask 1042434  }
 0x2df   : > { %2142 = vrot.lane.b32.xlu1 %v2109_v51, %s4307_s10  ;;  %v2691_v52 = vld [vmem:[%s5671_s5] sm:$0xff]  ;;  %v2692_v9 = vld [vmem:[%s5671_s5 + $0x8] sm:$0xff]  ;;  %1909 = vst.msk [vmem:[#allocation7 + $0x60] sm:$0xff] %vm1819_vm12, %v5096_v10  ;;  %v2693_v13 = vld [vmem:[%s5671_s5 + $0x10] sm:$0xff]  ;;  %vm3642_vm13 = vcmask 1043459   ;;  %vm3644_vm14 = vcmask 1044484  }
 0x2e0   : > { %2140 = vrot.lane.b32.xlu0 %v2108_v53, %s4307_s10  ;;  %v4087_v11 = vpack.c.bf16 %v2692_v9, %v2691_v52  ;;  %v4091_v15 = vpack.c.bf16 %v2694_v14, %v2693_v13  ;;  %v2497_v16 = vld [vmem:[#allocation2 + $0x31] sm:$0xff]  ;;  %v2695_v17 = vld [vmem:[%s5671_s5 + $0x20] sm:$0xff]  ;;  %v2696_v18 = vld [vmem:[%s5671_s5 + $0x28] sm:$0xff]  ;;  %vm3646_vm15 = vcmask 1045509   ;;  %s5698_s19 = sld [smem:[#allocation18_spill]]  ;;  %s5699_s22 = sand.u32 1, %s4267_s28  }
 0x2e1   : > { %v5116_v19 = vld [vmem:[#allocation2 + $0x98] sm:$0xff]  ;;  %v4095_v20 = vpack.c.bf16 %v2696_v18, %v2695_v17  ;;  %v2697_v21 = vld [vmem:[%s5671_s5 + $0x30] sm:$0xff]  ;;  %v2699_v25 = vld [vmem:[%s5671_s5 + $0x40] sm:$0xff]  ;;  %s5614_s25 = scalar_lea.sflag [#allocation4], %s5699_s22 }
 0x2e2   : > { %4088 = vmatprep.subr.bf16.mxu1 %v4087_v11  ;;  %1910 = vst.msk [vmem:[#allocation7 + $0x68] sm:$0xff] %vm1819_vm12, %v5116_v19  ;;  %v2698_v22 = vld [vmem:[%s5671_s5 + $0x38] sm:$0xff]  ;;  %v5143_v27 = vld [vmem:[#allocation2 + $0xa8] sm:$0xff]  ;;  %v5153_v29 = vld [vmem:[#allocation2 + $0xb0] sm:$0xff] }
 0x2e3   : > { %1949 = vrot.lane.b32.xlu1 %v1915_v2, %s4306_s27  ;;  %4090 = vmatpush3.bf16.msra.mxu1 %v4087_v11  ;;  %v4099_v23 = vpack.c.bf16 %v2698_v22, %v2697_v21  ;;  %v2594_v57 = vld [vmem:[#allocation2 + $0x32] sm:$0xff]  ;;  %v2595_v26 = vld [vmem:[#allocation2 + $0x3a] sm:$0xff]  ;;  %1911 = vst.msk [vmem:[#allocation7 + $0x70] sm:$0xff] %vm1819_vm12, %v5143_v27  ;;  %v2499_v28 = vld [vmem:[#allocation2 + $0x49] sm:$0xff] }
 0x2e4   : > { %2237 = vrot.lane.b32.xlu0 %v1915_v2, %s4308_s12  ;;  %4092 = vmatprep.subr.bf16.mxu1 %v4091_v15  ;;  %v2498_v24 = vld [vmem:[#allocation2 + $0x39] sm:$0xff]  ;;  %1912 = vst.msk [vmem:[#allocation7 + $0x78] sm:$0xff] %vm1819_vm12, %v5153_v29  ;;  %v2596_v60 = vld [vmem:[#allocation2 + $0x4a] sm:$0xff]  ;;  %v2501_v32 = vld [vmem:[#allocation2 + $0x61] sm:$0xff] }
 0x2e5   : > { %v2500_v30 = vld [vmem:[#allocation2 + $0x51] sm:$0xff]  ;;  %v2598_v33 = vld [vmem:[#allocation2 + $0x62] sm:$0xff]  ;;  %v2503_v43 = vld [vmem:[#allocation2 + $0x79] sm:$0xff] }
 0x2e6   : > { %v2597_v31 = vld [vmem:[#allocation2 + $0x52] sm:$0xff]  ;;  %v2502_v35 = vld [vmem:[#allocation2 + $0x69] sm:$0xff]  ;;  %v2600_v46 = vld [vmem:[#allocation2 + $0x7a] sm:$0xff] }
 0x2e7   : > { %2334 = vrot.lane.b32.xlu1 %v2302_v6, %s4309_s16  ;;  %4094 = vmatpush3.bf16.msra.mxu1 %v4091_v15  ;;  %v2599_v36 = vld [vmem:[#allocation2 + $0x6a] sm:$0xff]  ;;  %v2504_v47 = vld [vmem:[#allocation2 + $0x81] sm:$0xff] }
 0x2e8   : > { %2239 = vrot.lane.b32.xlu0 %v2206_v7, %s4308_s12  ;;  %4096 = vmatprep.subr.bf16.mxu1 %v4095_v20  ;;  %v2601_v51 = vld [vmem:[#allocation2 + $0x82] sm:$0xff]  ;;  %v2603_v13 = vld [vmem:[#allocation2 + $0x9a] sm:$0xff] }
 0x2e9   : > { %v2507_v22 = vld [vmem:[#allocation2 + $0xa9] sm:$0xff] }
 0x2eb   : > { %2046 = vrot.lane.b32.xlu1 %v2302_v6, %s4305_s7  ;;  %4098 = vmatpush3.bf16.msra.mxu1 %v4095_v20  ;;  %v2602_v6 = vld [vmem:[#allocation2 + $0x92] sm:$0xff] }
 0x2ec   : > { %1951 = vrot.lane.b32.xlu0 %v2206_v7, %s4306_s27  ;;  %4100 = vmatprep.subr.bf16.mxu1 %v4099_v23  ;;  %v2506_v7 = vld [vmem:[#allocation2 + $0x99] sm:$0xff] }
 0x2ef   : > { %2432 = vrot.lane.b32.xlu1 %v2400_v56, %s4310_s14  ;;  %4102 = vmatpush3.bf16.msra.mxu1 %v4099_v23 }
 0x2f0   : > { %2336 = vrot.lane.b32.xlu0 %v2303_v8, %s4309_s16  ;;  %4053 = vmatprep.subr.mxu1 %v2699_v25 }
 0x2f3   : > { %2144 = vrot.lane.b32.xlu1 %v2400_v56, %s4307_s10  ;;  %4054 = vmatpush3.msra.mxu1 %v2699_v25 }
 0x2f4   : > { %2048 = vrot.lane.b32.xlu0 %v2303_v8, %s4305_s7 }
 0x2f7   : > { %2529 = vrot.lane.b32.xlu1 %v2497_v16, %s4311_s21 }
 0x2f8   : > { %2434 = vrot.lane.b32.xlu0 %v5049_v58, %s4310_s14 }
 0x2fb   : > { %2241 = vrot.lane.b32.xlu1 %v2497_v16, %s4308_s12 }
 0x2fc   : > { %2146 = vrot.lane.b32.xlu0 %v5049_v58, %s4307_s10 }
 0x2ff   : > { %2626 = vrot.lane.b32.xlu1 %v2594_v57, %s4312_s23 }
 0x300   : > { %2531 = vrot.lane.b32.xlu0 %v2498_v24, %s4311_s21 }
 0x303   : > { %2243 = vrot.lane.b32.xlu1 %v2498_v24, %s4308_s12 }
 0x304   : > { %1953 = vrot.lane.b32.xlu0 %v2497_v16, %s4306_s27 }
 0x307   : > { %2628 = vrot.lane.b32.xlu1 %v2595_v26, %s4312_s23 }
 0x308   : > { %2338 = vrot.lane.b32.xlu0 %v2594_v57, %s4309_s16 }
 0x30b   : > { %2050 = vrot.lane.b32.xlu1 %v2594_v57, %s4305_s7 }
 0x30c   : > { %1955 = vrot.lane.b32.xlu0 %v2498_v24, %s4306_s27 }
 0x30f   : > { %2436 = vrot.lane.b32.xlu1 %v5054_v59, %s4310_s14 }
 0x310   : > { %2340 = vrot.lane.b32.xlu0 %v2595_v26, %s4309_s16 }
 0x313   : > { %2148 = vrot.lane.b32.xlu1 %v5054_v59, %s4307_s10 }
 0x314   : > { %2052 = vrot.lane.b32.xlu0 %v2595_v26, %s4305_s7 }
 0x317   : > { %2533 = vrot.lane.b32.xlu1 %v2499_v28, %s4311_s21 }
 0x318   : > { %2438 = vrot.lane.b32.xlu0 %v5058_v61, %s4310_s14 }
 0x31b   : > { %2245 = vrot.lane.b32.xlu1 %v2499_v28, %s4308_s12 }
 0x31c   : > { %2150 = vrot.lane.b32.xlu0 %v5058_v61, %s4307_s10 }
 0x31f   : > { %2630 = vrot.lane.b32.xlu1 %v2596_v60, %s4312_s23 }
 0x320   : > { %2535 = vrot.lane.b32.xlu0 %v2500_v30, %s4311_s21 }
 0x323   : > { %2247 = vrot.lane.b32.xlu1 %v2500_v30, %s4308_s12 }
 0x324   : > { %1957 = vrot.lane.b32.xlu0 %v2499_v28, %s4306_s27  ;;  %v2508_v28 = vld [vmem:[#allocation2 + $0xb1] sm:$0xff] }
 0x327   : > { %2632 = vrot.lane.b32.xlu1 %v2597_v31, %s4312_s23 }
 0x328   : > { %2342 = vrot.lane.b32.xlu0 %v2596_v60, %s4309_s16 }
 0x32b   : > { %2054 = vrot.lane.b32.xlu1 %v2596_v60, %s4305_s7 }
 0x32c   : > { %1959 = vrot.lane.b32.xlu0 %v2500_v30, %s4306_s27 }
 0x32f   : > { %2440 = vrot.lane.b32.xlu1 %v5062_v62, %s4310_s14 }
 0x330   : > { %2344 = vrot.lane.b32.xlu0 %v2597_v31, %s4309_s16 }
 0x333   : > { %2152 = vrot.lane.b32.xlu1 %v5062_v62, %s4307_s10 }
 0x334   : > { %2056 = vrot.lane.b32.xlu0 %v2597_v31, %s4305_s7 }
 0x337   : > { %2537 = vrot.lane.b32.xlu1 %v2501_v32, %s4311_s21 }
 0x338   : > { %2442 = vrot.lane.b32.xlu0 %v5066_v63, %s4310_s14 }
 0x33b   : > { %2249 = vrot.lane.b32.xlu1 %v2501_v32, %s4308_s12 }
 0x33c   : > { %2154 = vrot.lane.b32.xlu0 %v5066_v63, %s4307_s10  ;;  %v2505_v63 = vld [vmem:[#allocation2 + $0x91] sm:$0xff] }
 0x33f   : > { %2634 = vrot.lane.b32.xlu1 %v2598_v33, %s4312_s23 }
 0x340   : > { %2539 = vrot.lane.b32.xlu0 %v2502_v35, %s4311_s21 }
 0x343   : > { %2251 = vrot.lane.b32.xlu1 %v2502_v35, %s4308_s12 }
 0x344   : > { %1961 = vrot.lane.b32.xlu0 %v2501_v32, %s4306_s27 }
 0x347   : > { %2636 = vrot.lane.b32.xlu1 %v2599_v36, %s4312_s23 }
 0x348   : > { %2346 = vrot.lane.b32.xlu0 %v2598_v33, %s4309_s16 }
 0x349   : > { %v2043_v37 = vpop.permute.xlu1 %2042 }
 0x34a   : > { %v1946_v38 = vpop.permute.xlu0 %1945 }
 0x34b   : > { %1994 = vst.msk [vmem:[#allocation7] sm:$0xff] %vm1993_vm0, %v1946_v38  ;;  %2058 = vrot.lane.b32.xlu1 %v2598_v33, %s4305_s7 }
 0x34c   : > { %1963 = vrot.lane.b32.xlu0 %v2502_v35, %s4306_s27  ;;  %2091 = vst.msk [vmem:[#allocation7] sm:$0xff] %vm2090_vm1, %v2043_v37 }
 0x34d   : > { %v2045_v34 = vpop.permute.xlu1 %2044 }
 0x34e   : > { %v1948_v40 = vpop.permute.xlu0 %1947 }
 0x34f   : > { %1995 = vst.msk [vmem:[#allocation7 + $0x8] sm:$0xff] %vm1993_vm0, %v1948_v40  ;;  %2444 = vrot.lane.b32.xlu1 %v5076_v3, %s4310_s14 }
 0x350   : > { %2348 = vrot.lane.b32.xlu0 %v2599_v36, %s4309_s16  ;;  %2092 = vst.msk [vmem:[#allocation7 + $0x8] sm:$0xff] %vm2090_vm1, %v2045_v34  ;;  %v2412_v34 = vld [vmem:[#allocation2 + $0xc0] sm:$0xff] }
 0x351   : > { %v2143_v41 = vpop.permute.xlu1 %2142 }
 0x352   : > { %v2141_v42 = vpop.permute.xlu0 %2140  ;;  %2190 = vst.msk [vmem:[#allocation7 + $0x8] sm:$0xff] %vm2188_vm2, %v2143_v41 }
 0x353   : > { %2189 = vst.msk [vmem:[#allocation7] sm:$0xff] %vm2188_vm2, %v2141_v42  ;;  %2156 = vrot.lane.b32.xlu1 %v5076_v3, %s4307_s10 }
 0x354   : > { %2060 = vrot.lane.b32.xlu0 %v2599_v36, %s4305_s7 }
 0x355   : > { %v1950_v44 = vpop.permute.xlu1 %1949 }
 0x356   : > { %v2238_v5 = vpop.permute.xlu0 %2237  ;;  %1996 = vst.msk [vmem:[#allocation7 + $0x10] sm:$0xff] %vm1993_vm0, %v1950_v44  ;;  %v2413_v44 = vld [vmem:[#allocation2 + $0xc8] sm:$0xff] }
 0x357   : > { %2286 = vst.msk [vmem:[#allocation7] sm:$0xff] %vm2285_vm3, %v2238_v5  ;;  %2541 = vrot.lane.b32.xlu1 %v2503_v43, %s4311_s21  ;;  %v2509_v5 = vld [vmem:[#allocation2 + $0xc1] sm:$0xff] }
 0x358   : > { %2446 = vrot.lane.b32.xlu0 %v5078_v4, %s4310_s14 }
 0x359   : > { %v2335_v45 = vpop.permute.xlu1 %2334 }
 0x35a   : > { %v2240_v39 = vpop.permute.xlu0 %2239  ;;  %2383 = vst.msk [vmem:[#allocation7] sm:$0xff] %vm2382_vm4, %v2335_v45 }
 0x35b   : > { %2287 = vst.msk [vmem:[#allocation7 + $0x8] sm:$0xff] %vm2285_vm3, %v2240_v39  ;;  %2253 = vrot.lane.b32.xlu1 %v2503_v43, %s4308_s12 }
 0x35c   : > { %2158 = vrot.lane.b32.xlu0 %v5078_v4, %s4307_s10 }
 0x35d   : > { %v2047_v0 = vpop.permute.xlu1 %2046 }
 0x35e   : > { %v1952_v48 = vpop.permute.xlu0 %1951  ;;  %2093 = vst.msk [vmem:[#allocation7 + $0x10] sm:$0xff] %vm2090_vm1, %v2047_v0 }
 0x35f   : > { %1997 = vst.msk [vmem:[#allocation7 + $0x18] sm:$0xff] %vm1993_vm0, %v1952_v48  ;;  %2638 = vrot.lane.b32.xlu1 %v2600_v46, %s4312_s23  ;;  %v2510_v48 = vld [vmem:[#allocation2 + $0xc9] sm:$0xff] }
 0x360   : > { %2543 = vrot.lane.b32.xlu0 %v2504_v47, %s4311_s21 }
 0x361   : > { %v2433_v50 = vpop.permute.xlu1 %2432 }
 0x362   : > { %v2337_v12 = vpop.permute.xlu0 %2336  ;;  %2481 = vst.msk [vmem:[#allocation7] sm:$0xff] %vm2480_vm5, %v2433_v50  ;;  %v2606_v50 = vld [vmem:[#allocation2 + $0xc2] sm:$0xff] }
 0x363   : > { %2384 = vst.msk [vmem:[#allocation7 + $0x8] sm:$0xff] %vm2382_vm4, %v2337_v12  ;;  %2255 = vrot.lane.b32.xlu1 %v2504_v47, %s4308_s12 }
 0x364   : > { %1965 = vrot.lane.b32.xlu0 %v2503_v43, %s4306_s27 }
 0x365   : > { %v2145_v53 = vpop.permute.xlu1 %2144 }
 0x366   : > { %v2049_v54 = vpop.permute.xlu0 %2048  ;;  %2191 = vst.msk [vmem:[#allocation7 + $0x10] sm:$0xff] %vm2188_vm2, %v2145_v53 }
 0x367   : > { %2094 = vst.msk [vmem:[#allocation7 + $0x18] sm:$0xff] %vm2090_vm1, %v2049_v54  ;;  %2640 = vrot.lane.b32.xlu1 %v2601_v51, %s4312_s23 }
 0x368   : > { %2350 = vrot.lane.b32.xlu0 %v2600_v46, %s4309_s16 }
 0x369   : > { %v2530_v55 = vpop.permute.xlu1 %2529 }
 0x36a   : > { %v2435_v56 = vpop.permute.xlu0 %2434  ;;  %2578 = vst.msk [vmem:[#allocation7] sm:$0xff] %vm2577_vm6, %v2530_v55 }
 0x36b   : > { %2482 = vst.msk [vmem:[#allocation7 + $0x8] sm:$0xff] %vm2480_vm5, %v2435_v56  ;;  %2062 = vrot.lane.b32.xlu1 %v2600_v46, %s4305_s7  ;;  %v2607_v56 = vld [vmem:[#allocation2 + $0xca] sm:$0xff] }
 0x36c   : > { %1967 = vrot.lane.b32.xlu0 %v2504_v47, %s4306_s27 }
 0x36d   : > { %v2242_v58 = vpop.permute.xlu1 %2241 }
 0x36e   : > { %v2147_v59 = vpop.permute.xlu0 %2146  ;;  %2288 = vst.msk [vmem:[#allocation7 + $0x10] sm:$0xff] %vm2285_vm3, %v2242_v58 }
 0x36f   : > { %2192 = vst.msk [vmem:[#allocation7 + $0x18] sm:$0xff] %vm2188_vm2, %v2147_v59  ;;  %2448 = vrot.lane.b32.xlu1 %v5096_v10, %s4310_s14 }
 0x370   : > { %2352 = vrot.lane.b32.xlu0 %v2601_v51, %s4309_s16 }
 0x371   : > { %v2627_v61 = vpop.permute.xlu1 %2626 }
 0x372   : > { %v2532_v62 = vpop.permute.xlu0 %2531  ;;  %2675 = vst.msk [vmem:[#allocation7] sm:$0xff] %vm2674_vm7, %v2627_v61  ;;  %v2414_v61 = vld [vmem:[#allocation2 + $0xd8] sm:$0xff] }
 0x373   : > { %2579 = vst.msk [vmem:[#allocation7 + $0x8] sm:$0xff] %vm2577_vm6, %v2532_v62  ;;  %2160 = vrot.lane.b32.xlu1 %v5096_v10, %s4307_s10  ;;  %v2415_v62 = vld [vmem:[#allocation2 + $0xe0] sm:$0xff] }
 0x374   : > { %2064 = vrot.lane.b32.xlu0 %v2601_v51, %s4305_s7 }
 0x375   : > { %v2244_v1 = vpop.permute.xlu1 %2243 }
 0x376   : > { %v1954_v49 = vpop.permute.xlu0 %1953  ;;  %2289 = vst.msk [vmem:[#allocation7 + $0x18] sm:$0xff] %vm2285_vm3, %v2244_v1 }
 0x377   : > { %1998 = vst.msk [vmem:[#allocation7 + $0x20] sm:$0xff] %vm1993_vm0, %v1954_v49  ;;  %2545 = vrot.lane.b32.xlu1 %v2505_v63, %s4311_s21  ;;  %v2511_v49 = vld [vmem:[#allocation2 + $0xd9] sm:$0xff] }
 0x378   : > { %2450 = vrot.lane.b32.xlu0 %v5116_v19, %s4310_s14 }
 0x379   : > { %v2629_v2 = vpop.permute.xlu1 %2628  ;;  %v2700_v4 = vld [vmem:[#allocation7] sm:$0xff] }
 0x37a   : > { %v2339_v3 = vpop.permute.xlu0 %2338  ;;  %2676 = vst.msk [vmem:[#allocation7 + $0x8] sm:$0xff] %vm2674_vm7, %v2629_v2  ;;  %4055 = vmatprep.mubr.msk.f32.mxu1 %vm2723_vm8, %v2700_v4  ;;  %v2512_v2 = vld [vmem:[#allocation2 + $0xe1] sm:$0xff] }
 0x37b   : > { %2385 = vst.msk [vmem:[#allocation7 + $0x10] sm:$0xff] %vm2382_vm4, %v2339_v3  ;;  %2257 = vrot.lane.b32.xlu1 %v2505_v63, %s4308_s12 }
 0x37c   : > { %2162 = vrot.lane.b32.xlu0 %v5116_v19, %s4307_s10 }
 0x37d   : > { %v2051_v8 = vpop.permute.xlu1 %2050 }
 0x37e   : > { %v1956_v52 = vpop.permute.xlu0 %1955  ;;  %2095 = vst.msk [vmem:[#allocation7 + $0x20] sm:$0xff] %vm2090_vm1, %v2051_v8 }
 0x37f   : > { %1999 = vst.msk [vmem:[#allocation7 + $0x28] sm:$0xff] %vm1993_vm0, %v1956_v52  ;;  %2642 = vrot.lane.b32.xlu1 %v2602_v6, %s4312_s23 }
 0x380   : > { %2547 = vrot.lane.b32.xlu0 %v2506_v7, %s4311_s21 }
 0x381   : > { %v2437_v9 = vpop.permute.xlu1 %2436  ;;  %v2701_v11 = vld [vmem:[#allocation7 + $0x8] sm:$0xff] }
 0x382   : > { %v2341_v10 = vpop.permute.xlu0 %2340  ;;  %2483 = vst.msk [vmem:[#allocation7 + $0x10] sm:$0xff] %vm2480_vm5, %v2437_v9  ;;  %4056 = vmatmul.mubr.msk.f32.vlgmr.msra.gmra.mrb[0].mxu1 %vm2723_vm8, %v2701_v11 }
 0x383   : > { %2386 = vst.msk [vmem:[#allocation7 + $0x18] sm:$0xff] %vm2382_vm4, %v2341_v10  ;;  %2259 = vrot.lane.b32.xlu1 %v2506_v7, %s4308_s12 }
 0x384   : > { %1969 = vrot.lane.b32.xlu0 %v2505_v63, %s4306_s27 }
 0x385   : > { %v2149_v14 = vpop.permute.xlu1 %2148 }
 0x386   : > { %v2053_v15 = vpop.permute.xlu0 %2052  ;;  %2193 = vst.msk [vmem:[#allocation7 + $0x20] sm:$0xff] %vm2188_vm2, %v2149_v14 }
 0x387   : > { %2096 = vst.msk [vmem:[#allocation7 + $0x28] sm:$0xff] %vm2090_vm1, %v2053_v15  ;;  %2644 = vrot.lane.b32.xlu1 %v2603_v13, %s4312_s23 }
 0x388   : > { %2354 = vrot.lane.b32.xlu0 %v2602_v6, %s4309_s16 }
 0x389   : > { %v2534_v16 = vpop.permute.xlu1 %2533 }
 0x38a   : > { %v2439_v17 = vpop.permute.xlu0 %2438  ;;  %2580 = vst.msk [vmem:[#allocation7 + $0x10] sm:$0xff] %vm2577_vm6, %v2534_v16 }
 0x38b   : > { %2484 = vst.msk [vmem:[#allocation7 + $0x18] sm:$0xff] %vm2480_vm5, %v2439_v17  ;;  %2066 = vrot.lane.b32.xlu1 %v2602_v6, %s4305_s7  ;;  %v2608_v6 = vld [vmem:[#allocation2 + $0xda] sm:$0xff] }
 0x38c   : > { %1971 = vrot.lane.b32.xlu0 %v2506_v7, %s4306_s27  ;;  %v2609_v7 = vld [vmem:[#allocation2 + $0xe2] sm:$0xff] }
 0x38d   : > { %v2246_v18 = vpop.permute.xlu1 %2245 }
 0x38e   : > { %v2151_v19 = vpop.permute.xlu0 %2150  ;;  %2290 = vst.msk [vmem:[#allocation7 + $0x20] sm:$0xff] %vm2285_vm3, %v2246_v18 }
 0x38f   : > { %2194 = vst.msk [vmem:[#allocation7 + $0x28] sm:$0xff] %vm2188_vm2, %v2151_v19  ;;  %2452 = vrot.lane.b32.xlu1 %v5143_v27, %s4310_s14 }
 0x390   : > { %2356 = vrot.lane.b32.xlu0 %v2603_v13, %s4309_s16 }
 0x391   : > { %v2631_v20 = vpop.permute.xlu1 %2630 }
 0x392   : > { %v2536_v21 = vpop.permute.xlu0 %2535  ;;  %2677 = vst.msk [vmem:[#allocation7 + $0x10] sm:$0xff] %vm2674_vm7, %v2631_v20 }
 0x393   : > { %2581 = vst.msk [vmem:[#allocation7 + $0x18] sm:$0xff] %vm2577_vm6, %v2536_v21  ;;  %2164 = vrot.lane.b32.xlu1 %v5143_v27, %s4307_s10  ;;  %v2604_v27 = vld [vmem:[#allocation2 + $0xaa] sm:$0xff] }
 0x394   : > { %2068 = vrot.lane.b32.xlu0 %v2603_v13, %s4305_s7 }
 0x395   : > { %v2248_v23 = vpop.permute.xlu1 %2247 }
 0x396   : > { %v1958_v57 = vpop.permute.xlu0 %1957  ;;  %2291 = vst.msk [vmem:[#allocation7 + $0x28] sm:$0xff] %vm2285_vm3, %v2248_v23 }
 0x397   : > { %2000 = vst.msk [vmem:[#allocation7 + $0x30] sm:$0xff] %vm1993_vm0, %v1958_v57  ;;  %2549 = vrot.lane.b32.xlu1 %v2507_v22, %s4311_s21 }
 0x398   : > { %2454 = vrot.lane.b32.xlu0 %v5153_v29, %s4310_s14 }
 0x399   : > { %v2633_v24 = vpop.permute.xlu1 %2632  ;;  %v2702_v26 = vld [vmem:[#allocation7 + $0x10] sm:$0xff] }
 0x39a   : > { %v2343_v25 = vpop.permute.xlu0 %2342  ;;  %2678 = vst.msk [vmem:[#allocation7 + $0x18] sm:$0xff] %vm2674_vm7, %v2633_v24  ;;  %4058 = vmatprep.mubr.msk.f32.mxu1 %vm2723_vm8, %v2702_v26 }
 0x39b   : > { %2387 = vst.msk [vmem:[#allocation7 + $0x20] sm:$0xff] %vm2382_vm4, %v2343_v25  ;;  %2261 = vrot.lane.b32.xlu1 %v2507_v22, %s4308_s12 }
 0x39c   : > { %2166 = vrot.lane.b32.xlu0 %v5153_v29, %s4307_s10  ;;  %v2605_v29 = vld [vmem:[#allocation2 + $0xb2] sm:$0xff] }
 0x39d   : > { %v2055_v60 = vpop.permute.xlu1 %2054 }
 0x39e   : > { %v1960_v30 = vpop.permute.xlu0 %1959  ;;  %2097 = vst.msk [vmem:[#allocation7 + $0x30] sm:$0xff] %vm2090_vm1, %v2055_v60 }
 0x39f   : > { %2001 = vst.msk [vmem:[#allocation7 + $0x38] sm:$0xff] %vm1993_vm0, %v1960_v30  ;;  %2646 = vrot.lane.b32.xlu1 %v2604_v27, %s4312_s23 }
 0x3a0   : > { %2551 = vrot.lane.b32.xlu0 %v2508_v28, %s4311_s21 }
 0x3a1   : > { %v2441_v31 = vpop.permute.xlu1 %2440  ;;  %v2703_v33 = vld [vmem:[#allocation7 + $0x18] sm:$0xff] }
 0x3a2   : > { %v2345_v32 = vpop.permute.xlu0 %2344  ;;  %2485 = vst.msk [vmem:[#allocation7 + $0x20] sm:$0xff] %vm2480_vm5, %v2441_v31  ;;  %4059 = vmatmul.mubr.msk.f32.gmra.mrb[2].mxu1 %vm2723_vm8, %v2703_v33 }
 0x3a3   : > { %2388 = vst.msk [vmem:[#allocation7 + $0x28] sm:$0xff] %vm2382_vm4, %v2345_v32  ;;  %2263 = vrot.lane.b32.xlu1 %v2508_v28, %s4308_s12 }
 0x3a4   : > { %1973 = vrot.lane.b32.xlu0 %v2507_v22, %s4306_s27 }
 0x3a5   : > { %v2153_v35 = vpop.permute.xlu1 %2152 }
 0x3a6   : > { %v2057_v36 = vpop.permute.xlu0 %2056  ;;  %2195 = vst.msk [vmem:[#allocation7 + $0x30] sm:$0xff] %vm2188_vm2, %v2153_v35 }
 0x3a7   : > { %2098 = vst.msk [vmem:[#allocation7 + $0x38] sm:$0xff] %vm2090_vm1, %v2057_v36  ;;  %2648 = vrot.lane.b32.xlu1 %v2605_v29, %s4312_s23 }
 0x3a8   : > { %2358 = vrot.lane.b32.xlu0 %v2604_v27, %s4309_s16 }
 0x3a9   : > { %v2538_v37 = vpop.permute.xlu1 %2537 }
 0x3aa   : > { %v2443_v38 = vpop.permute.xlu0 %2442  ;;  %2582 = vst.msk [vmem:[#allocation7 + $0x20] sm:$0xff] %vm2577_vm6, %v2538_v37 }
 0x3ab   : > { %2486 = vst.msk [vmem:[#allocation7 + $0x28] sm:$0xff] %vm2480_vm5, %v2443_v38  ;;  %2070 = vrot.lane.b32.xlu1 %v2604_v27, %s4305_s7 }
 0x3ac   : > { %1975 = vrot.lane.b32.xlu0 %v2508_v28, %s4306_s27 }
 0x3ad   : > { %v2250_v40 = vpop.permute.xlu1 %2249 }
 0x3ae   : > { %v2155_v41 = vpop.permute.xlu0 %2154  ;;  %2292 = vst.msk [vmem:[#allocation7 + $0x30] sm:$0xff] %vm2285_vm3, %v2250_v40 }
 0x3af   : > { %2196 = vst.msk [vmem:[#allocation7 + $0x38] sm:$0xff] %vm2188_vm2, %v2155_v41  ;;  %2456 = vrot.lane.b32.xlu1 %v2412_v34, %s4310_s14 }
 0x3b0   : > { %2360 = vrot.lane.b32.xlu0 %v2605_v29, %s4309_s16 }
 0x3b1   : > { %v2635_v42 = vpop.permute.xlu1 %2634 }
 0x3b2   : > { %v2540_v43 = vpop.permute.xlu0 %2539  ;;  %2679 = vst.msk [vmem:[#allocation7 + $0x20] sm:$0xff] %vm2674_vm7, %v2635_v42 }
 0x3b3   : > { %2583 = vst.msk [vmem:[#allocation7 + $0x28] sm:$0xff] %vm2577_vm6, %v2540_v43  ;;  %2168 = vrot.lane.b32.xlu1 %v2412_v34, %s4307_s10 }
 0x3b4   : > { %2072 = vrot.lane.b32.xlu0 %v2605_v29, %s4305_s7 }
 0x3b5   : > { %v2252_v45 = vpop.permute.xlu1 %2251 }
 0x3b6   : > { %v1962_v39 = vpop.permute.xlu0 %1961  ;;  %2293 = vst.msk [vmem:[#allocation7 + $0x38] sm:$0xff] %vm2285_vm3, %v2252_v45 }
 0x3b7   : > { %2002 = vst.msk [vmem:[#allocation7 + $0x40] sm:$0xff] %vm1993_vm0, %v1962_v39  ;;  %2553 = vrot.lane.b32.xlu1 %v2509_v5, %s4311_s21 }
 0x3b8   : > { %2458 = vrot.lane.b32.xlu0 %v2413_v44, %s4310_s14 }
 0x3b9   : > { %v2637_v46 = vpop.permute.xlu1 %2636  ;;  %v2704_v0 = vld [vmem:[#allocation7 + $0x20] sm:$0xff] }
 0x3ba   : > { %v2347_v47 = vpop.permute.xlu0 %2346  ;;  %2680 = vst.msk [vmem:[#allocation7 + $0x28] sm:$0xff] %vm2674_vm7, %v2637_v46  ;;  %4061 = vmatprep.mubr.msk.f32.mxu1 %vm2723_vm8, %v2704_v0 }
 0x3bb   : > { %2389 = vst.msk [vmem:[#allocation7 + $0x30] sm:$0xff] %vm2382_vm4, %v2347_v47  ;;  %2265 = vrot.lane.b32.xlu1 %v2509_v5, %s4308_s12 }
 0x3bc   : > { %2170 = vrot.lane.b32.xlu0 %v2413_v44, %s4307_s10  ;;  %s3943_s10 = sshll.u32 %s4279_s9, 3 }
 0x3bd   : > { %v2059_v12 = vpop.permute.xlu1 %2058 }
 0x3be   : > { %v1964_v51 = vpop.permute.xlu0 %1963  ;;  %2099 = vst.msk [vmem:[#allocation7 + $0x40] sm:$0xff] %vm2090_vm1, %v2059_v12 }
 0x3bf   : > { %2003 = vst.msk [vmem:[#allocation7 + $0x48] sm:$0xff] %vm1993_vm0, %v1964_v51  ;;  %2650 = vrot.lane.b32.xlu1 %v2606_v50, %s4312_s23 }
 0x3c0   : > { %2555 = vrot.lane.b32.xlu0 %v2510_v48, %s4311_s21 }
 0x3c1   : > { %v2445_v53 = vpop.permute.xlu1 %2444  ;;  %v2705_v55 = vld [vmem:[#allocation7 + $0x28] sm:$0xff] }
 0x3c2   : > { %v2349_v54 = vpop.permute.xlu0 %2348  ;;  %2487 = vst.msk [vmem:[#allocation7 + $0x30] sm:$0xff] %vm2480_vm5, %v2445_v53  ;;  %4062 = vmatmul.mubr.msk.f32.gmra.mrb[4].mxu1 %vm2723_vm8, %v2705_v55 }
 0x3c3   : > { %2390 = vst.msk [vmem:[#allocation7 + $0x38] sm:$0xff] %vm2382_vm4, %v2349_v54  ;;  %2362 = vrot.lane.b32.xlu1 %v2606_v50, %s4309_s16 }
 0x3c4   : > { %2267 = vrot.lane.b32.xlu0 %v2510_v48, %s4308_s12  ;;  %s3707_s12 = sshll.u32 %s4459_s15, 4  ;;  %s5605_s12 = int_to_ptr.vmem [resolvable:$true] %s3707_s12 }
 0x3c5   : > { %v2157_v58 = vpop.permute.xlu1 %2156  ;;  %s4197_s17 = scalar_lea.vmem %s5605_s12, 512 }
 0x3c6   : > { %v2061_v59 = vpop.permute.xlu0 %2060  ;;  %2197 = vst.msk [vmem:[#allocation7 + $0x40] sm:$0xff] %vm2188_vm2, %v2157_v58  ;;  %p4198_p4 = scmp.ne.s32.totalorder %s5605_s12, %s4197_s17 }
 0x3c7   : > { %2100 = vst.msk [vmem:[#allocation7 + $0x48] sm:$0xff] %vm2090_vm1, %v2061_v59  ;;  %2364 = vrot.lane.b32.xlu1 %v2607_v56, %s4309_s16 }
 0x3c8   : > { %2652 = vrot.lane.b32.xlu0 %v2607_v56, %s4312_s23  ;;  %p4199_p5 = pnand %p4198_p4, %p4413_p3 }
 0x3c9   : > { %v2542_v63 = vpop.permute.xlu1 %2541 }
 0x3ca   : > { %v2447_v1 = vpop.permute.xlu0 %2446  ;;  %2584 = vst.msk [vmem:[#allocation7 + $0x30] sm:$0xff] %vm2577_vm6, %v2542_v63  ;;  %p4200_p6 = pneg %p4199_p5 }
 0x3cb   : > { %2488 = vst.msk [vmem:[#allocation7 + $0x38] sm:$0xff] %vm2480_vm5, %v2447_v1  ;;  %2462 = vrot.lane.b32.xlu1 %v2415_v62, %s4310_s14 }
 0x3cc   : > { %2460 = vrot.lane.b32.xlu0 %v2414_v61, %s4310_s14 }
 0x3cd   : > { %v2254_v3 = vpop.permute.xlu1 %2253 }
 0x3ce   : > { %v2159_v4 = vpop.permute.xlu0 %2158  ;;  %2294 = vst.msk [vmem:[#allocation7 + $0x40] sm:$0xff] %vm2285_vm3, %v2254_v3 }
 0x3cf   : > { %2198 = vst.msk [vmem:[#allocation7 + $0x48] sm:$0xff] %vm2188_vm2, %v2159_v4  ;;  %2559 = vrot.lane.b32.xlu1 %v2512_v2, %s4311_s21 }
 0x3d0   : > { %2557 = vrot.lane.b32.xlu0 %v2511_v49, %s4311_s21 }
 0x3d1   : > { %v2639_v8 = vpop.permute.xlu1 %2638 }
 0x3d2   : > { %v2544_v52 = vpop.permute.xlu0 %2543  ;;  %2681 = vst.msk [vmem:[#allocation7 + $0x30] sm:$0xff] %vm2674_vm7, %v2639_v8 }
 0x3d3   : > { %2585 = vst.msk [vmem:[#allocation7 + $0x38] sm:$0xff] %vm2577_vm6, %v2544_v52  ;;  %2656 = vrot.lane.b32.xlu1 %v2609_v7, %s4312_s23 }
 0x3d4   : > { %2654 = vrot.lane.b32.xlu0 %v2608_v6, %s4312_s23 }
 0x3d5   : > { %v2256_v9 = vpop.permute.xlu1 %2255 }
 0x3d6   : > { %v1966_v10 = vpop.permute.xlu0 %1965  ;;  %2295 = vst.msk [vmem:[#allocation7 + $0x48] sm:$0xff] %vm2285_vm3, %v2256_v9 }
 0x3d7   : > { %2004 = vst.msk [vmem:[#allocation7 + $0x50] sm:$0xff] %vm1993_vm0, %v1966_v10 }
 0x3d9   : > { %v2641_v11 = vpop.permute.xlu1 %2640  ;;  %v2706_v14 = vld [vmem:[#allocation7 + $0x30] sm:$0xff] }
 0x3da   : > { %v2351_v13 = vpop.permute.xlu0 %2350  ;;  %2682 = vst.msk [vmem:[#allocation7 + $0x38] sm:$0xff] %vm2674_vm7, %v2641_v11  ;;  %4064 = vmatprep.mubr.msk.f32.mxu1 %vm2723_vm8, %v2706_v14  ;;  %v5418_v14 = vld [vmem:[%s5672_s6] ss:$0 sm:$0xff] }
 0x3db   : > { %2391 = vst.msk [vmem:[#allocation7 + $0x40] sm:$0xff] %vm2382_vm4, %v2351_v13 }
 0x3dd   : > { %v2063_v15 = vpop.permute.xlu1 %2062 }
 0x3de   : > { %v1968_v16 = vpop.permute.xlu0 %1967  ;;  %2101 = vst.msk [vmem:[#allocation7 + $0x50] sm:$0xff] %vm2090_vm1, %v2063_v15 }
 0x3df   : > { %2005 = vst.msk [vmem:[#allocation7 + $0x58] sm:$0xff] %vm1993_vm0, %v1968_v16 }
 0x3e1   : > { %v2449_v17 = vpop.permute.xlu1 %2448  ;;  %v2707_v19 = vld [vmem:[#allocation7 + $0x38] sm:$0xff] }
 0x3e2   : > { %v2353_v18 = vpop.permute.xlu0 %2352  ;;  %2489 = vst.msk [vmem:[#allocation7 + $0x40] sm:$0xff] %vm2480_vm5, %v2449_v17  ;;  %4065 = vmatmul.mubr.msk.f32.gmra.mrb[6].mxu1 %vm2723_vm8, %v2707_v19 }
 0x3e3   : > { %2392 = vst.msk [vmem:[#allocation7 + $0x48] sm:$0xff] %vm2382_vm4, %v2353_v18 }
 0x3e5   : > { %v2161_v20 = vpop.permute.xlu1 %2160 }
 0x3e6   : > { %v2065_v21 = vpop.permute.xlu0 %2064  ;;  %2199 = vst.msk [vmem:[#allocation7 + $0x50] sm:$0xff] %vm2188_vm2, %v2161_v20 }
 0x3e7   : > { %2102 = vst.msk [vmem:[#allocation7 + $0x58] sm:$0xff] %vm2090_vm1, %v2065_v21 }
 0x3e9   : > { %v2546_v22 = vpop.permute.xlu1 %2545 }
 0x3ea   : > { %v2451_v23 = vpop.permute.xlu0 %2450  ;;  %2586 = vst.msk [vmem:[#allocation7 + $0x40] sm:$0xff] %vm2577_vm6, %v2546_v22 }
 0x3eb   : > { %2490 = vst.msk [vmem:[#allocation7 + $0x48] sm:$0xff] %vm2480_vm5, %v2451_v23  ;;  %v4313_v23 = vmov 1983009808  }
 0x3ed   : > { %v2258_v57 = vpop.permute.xlu1 %2257 }
 0x3ee   : > { %v2163_v24 = vpop.permute.xlu0 %2162  ;;  %2296 = vst.msk [vmem:[#allocation7 + $0x50] sm:$0xff] %vm2285_vm3, %v2258_v57  ;;  %v2983_v57 = vunpack.c.l.s4 %v4313_v23 }
 0x3ef   : > { %2200 = vst.msk [vmem:[#allocation7 + $0x58] sm:$0xff] %vm2188_vm2, %v2163_v24  ;;  %v2985_v24 = vlaneseq }
 0x3f1   : > { %v2643_v25 = vpop.permute.xlu1 %2642 }
 0x3f2   : > { %v2548_v26 = vpop.permute.xlu0 %2547  ;;  %2683 = vst.msk [vmem:[#allocation7 + $0x40] sm:$0xff] %vm2674_vm7, %v2643_v25  ;;  %v2984_v25 = vunpack.c.0.s8 %v2983_v57 }
 0x3f3   : > { %2587 = vst.msk [vmem:[#allocation7 + $0x48] sm:$0xff] %vm2577_vm6, %v2548_v26  ;;  %v2986_v26 = vshrl.u32 %v2985_v24, 7 }
 0x3f5   : > { %v2260_v27 = vpop.permute.xlu1 %2259 }
 0x3f6   : > { %v1970_v28 = vpop.permute.xlu0 %1969  ;;  %2297 = vst.msk [vmem:[#allocation7 + $0x58] sm:$0xff] %vm2285_vm3, %v2260_v27  ;;  %v5426_v27 = vsub.s32 %v2984_v25, %v2986_v26 }
 0x3f7   : > { %2006 = vst.msk [vmem:[#allocation7 + $0x60] sm:$0xff] %vm1993_vm0, %v1970_v28 }
 0x3f9   : > { %v2645_v60 = vpop.permute.xlu1 %2644  ;;  %v2708_v31 = vld [vmem:[#allocation7 + $0x40] sm:$0xff] }
 0x3fa   : > { %v2355_v30 = vpop.permute.xlu0 %2354  ;;  %2684 = vst.msk [vmem:[#allocation7 + $0x48] sm:$0xff] %vm2674_vm7, %v2645_v60  ;;  %4067 = vmatprep.mubr.msk.f32.mxu1 %vm2723_vm8, %v2708_v31 }
 0x3fb   : > { %2393 = vst.msk [vmem:[#allocation7 + $0x50] sm:$0xff] %vm2382_vm4, %v2355_v30 }
 0x3fd   : > { %v2067_v32 = vpop.permute.xlu1 %2066 }
 0x3fe   : > { %v1972_v33 = vpop.permute.xlu0 %1971  ;;  %2103 = vst.msk [vmem:[#allocation7 + $0x60] sm:$0xff] %vm2090_vm1, %v2067_v32 }
 0x3ff   : > { %2007 = vst.msk [vmem:[#allocation7 + $0x68] sm:$0xff] %vm1993_vm0, %v1972_v33 }
 0x401   : > { %v2453_v29 = vpop.permute.xlu1 %2452  ;;  %v2709_v36 = vld [vmem:[#allocation7 + $0x48] sm:$0xff] }
 0x402   : > { %v2357_v35 = vpop.permute.xlu0 %2356  ;;  %2491 = vst.msk [vmem:[#allocation7 + $0x50] sm:$0xff] %vm2480_vm5, %v2453_v29  ;;  %4068 = vmatmul.mubr.msk.f32.gmra.mrb[8].mxu1 %vm2723_vm8, %v2709_v36 }
 0x403   : > { %2394 = vst.msk [vmem:[#allocation7 + $0x58] sm:$0xff] %vm2382_vm4, %v2357_v35 }
 0x405   : > { %v2165_v37 = vpop.permute.xlu1 %2164 }
 0x406   : > { %v2069_v38 = vpop.permute.xlu0 %2068  ;;  %2201 = vst.msk [vmem:[#allocation7 + $0x60] sm:$0xff] %vm2188_vm2, %v2165_v37 }
 0x407   : > { %2104 = vst.msk [vmem:[#allocation7 + $0x68] sm:$0xff] %vm2090_vm1, %v2069_v38 }
 0x409   : > { %v2550_v34 = vpop.permute.xlu1 %2549 }
 0x40a   : > { %v2455_v40 = vpop.permute.xlu0 %2454  ;;  %2588 = vst.msk [vmem:[#allocation7 + $0x50] sm:$0xff] %vm2577_vm6, %v2550_v34 }
 0x40b   : > { %2492 = vst.msk [vmem:[#allocation7 + $0x58] sm:$0xff] %vm2480_vm5, %v2455_v40 }
 0x40d   : > { %v2262_v41 = vpop.permute.xlu1 %2261 }
 0x40e   : > { %v2167_v42 = vpop.permute.xlu0 %2166  ;;  %2298 = vst.msk [vmem:[#allocation7 + $0x60] sm:$0xff] %vm2285_vm3, %v2262_v41 }
 0x40f   : > { %2202 = vst.msk [vmem:[#allocation7 + $0x68] sm:$0xff] %vm2188_vm2, %v2167_v42 }
 0x411   : > { %v2647_v43 = vpop.permute.xlu1 %2646 }
 0x412   : > { %v2552_v44 = vpop.permute.xlu0 %2551  ;;  %2685 = vst.msk [vmem:[#allocation7 + $0x50] sm:$0xff] %vm2674_vm7, %v2647_v43 }
 0x413   : > { %2589 = vst.msk [vmem:[#allocation7 + $0x58] sm:$0xff] %vm2577_vm6, %v2552_v44 }
 0x415   : > { %v2264_v5 = vpop.permute.xlu1 %2263 }
 0x416   : > { %v1974_v45 = vpop.permute.xlu0 %1973  ;;  %2299 = vst.msk [vmem:[#allocation7 + $0x68] sm:$0xff] %vm2285_vm3, %v2264_v5 }
 0x417   : > { %2008 = vst.msk [vmem:[#allocation7 + $0x70] sm:$0xff] %vm1993_vm0, %v1974_v45 }
 0x419   : > { %v2649_v39 = vpop.permute.xlu1 %2648  ;;  %v2710_v47 = vld [vmem:[#allocation7 + $0x50] sm:$0xff] }
 0x41a   : > { %v2359_v46 = vpop.permute.xlu0 %2358  ;;  %2686 = vst.msk [vmem:[#allocation7 + $0x58] sm:$0xff] %vm2674_vm7, %v2649_v39  ;;  %4070 = vmatprep.mubr.msk.f32.mxu1 %vm2723_vm8, %v2710_v47 }
 0x41b   : > { %2395 = vst.msk [vmem:[#allocation7 + $0x60] sm:$0xff] %vm2382_vm4, %v2359_v46 }
 0x41d   : > { %v2071_v48 = vpop.permute.xlu1 %2070 }
 0x41e   : > { %v1976_v0 = vpop.permute.xlu0 %1975  ;;  %2105 = vst.msk [vmem:[#allocation7 + $0x70] sm:$0xff] %vm2090_vm1, %v2071_v48 }
 0x41f   : > { %2009 = vst.msk [vmem:[#allocation7 + $0x78] sm:$0xff] %vm1993_vm0, %v1976_v0  ;;  %vm3648_vm0 = vcmask 1046534  }
 0x421   : > { %v2457_v12 = vpop.permute.xlu1 %2456  ;;  %v2711_v51 = vld [vmem:[#allocation7 + $0x58] sm:$0xff] }
 0x422   : > { %v2361_v50 = vpop.permute.xlu0 %2360  ;;  %2493 = vst.msk [vmem:[#allocation7 + $0x60] sm:$0xff] %vm2480_vm5, %v2457_v12  ;;  %4071 = vmatmul.mubr.msk.f32.gmra.mrb[10].mxu1 %vm2723_vm8, %v2711_v51 }
 0x423   : > { %2396 = vst.msk [vmem:[#allocation7 + $0x68] sm:$0xff] %vm2382_vm4, %v2361_v50 }
 0x425   : > { %v2169_v54 = vpop.permute.xlu1 %2168 }
 0x426   : > { %v2073_v53 = vpop.permute.xlu0 %2072  ;;  %2203 = vst.msk [vmem:[#allocation7 + $0x70] sm:$0xff] %vm2188_vm2, %v2169_v54 }
 0x427   : > { %2106 = vst.msk [vmem:[#allocation7 + $0x78] sm:$0xff] %vm2090_vm1, %v2073_v53  ;;  %vm3650_vm1 = vcmask 1047559  }
 0x429   : > { %v2554_v56 = vpop.permute.xlu1 %2553 }
 0x42a   : > { %v2459_v55 = vpop.permute.xlu0 %2458  ;;  %2590 = vst.msk [vmem:[#allocation7 + $0x60] sm:$0xff] %vm2577_vm6, %v2554_v56 }
 0x42b   : > { %2494 = vst.msk [vmem:[#allocation7 + $0x68] sm:$0xff] %vm2480_vm5, %v2459_v55 }
 0x42d   : > { %v2266_v59 = vpop.permute.xlu1 %2265 }
 0x42e   : > { %v2171_v58 = vpop.permute.xlu0 %2170  ;;  %2300 = vst.msk [vmem:[#allocation7 + $0x70] sm:$0xff] %vm2285_vm3, %v2266_v59 }
 0x42f   : > { %2204 = vst.msk [vmem:[#allocation7 + $0x78] sm:$0xff] %vm2188_vm2, %v2171_v58 }
 0x431   : > { %v2651_v62 = vpop.permute.xlu1 %2650 }
 0x432   : > { %v2556_v61 = vpop.permute.xlu0 %2555  ;;  %2687 = vst.msk [vmem:[#allocation7 + $0x60] sm:$0xff] %vm2674_vm7, %v2651_v62 }
 0x433   : > { %2591 = vst.msk [vmem:[#allocation7 + $0x68] sm:$0xff] %vm2577_vm6, %v2556_v61 }
 0x435   : > { %v2363_v1 = vpop.permute.xlu1 %2362 }
 0x436   : > { %v2268_v63 = vpop.permute.xlu0 %2267  ;;  %2397 = vst.msk [vmem:[#allocation7 + $0x70] sm:$0xff] %vm2382_vm4, %v2363_v1 }
 0x437   : > { %2301 = vst.msk [vmem:[#allocation7 + $0x78] sm:$0xff] %vm2285_vm3, %v2268_v63 }
 0x439   : > { %v2365_v2 = vpop.permute.xlu1 %2364  ;;  %v2712_v3 = vld [vmem:[#allocation7 + $0x60] sm:$0xff] }
 0x43a   : > { %v2653_v49 = vpop.permute.xlu0 %2652  ;;  %2398 = vst.msk [vmem:[#allocation7 + $0x78] sm:$0xff] %vm2382_vm4, %v2365_v2  ;;  %4073 = vmatprep.mubr.msk.f32.mxu1 %vm2723_vm8, %v2712_v3 }
 0x43b   : > { %2688 = vst.msk [vmem:[#allocation7 + $0x68] sm:$0xff] %vm2674_vm7, %v2653_v49 }
 0x43d   : > { %v2463_v6 = vpop.permute.xlu1 %2462 }
 0x43e   : > { %v2461_v4 = vpop.permute.xlu0 %2460  ;;  %2496 = vst.msk [vmem:[#allocation7 + $0x78] sm:$0xff] %vm2480_vm5, %v2463_v6 }
 0x43f   : > { %2495 = vst.msk [vmem:[#allocation7 + $0x70] sm:$0xff] %vm2480_vm5, %v2461_v4 }
 0x441   : > { %v2560_v8 = vpop.permute.xlu1 %2559 }
 0x442   : > { %v2558_v7 = vpop.permute.xlu0 %2557  ;;  %v2713_v52 = vld [vmem:[#allocation7 + $0x68] sm:$0xff]  ;;  %2593 = vst.msk [vmem:[#allocation7 + $0x78] sm:$0xff] %vm2577_vm6, %v2560_v8 }
 0x443   : > { %2592 = vst.msk [vmem:[#allocation7 + $0x70] sm:$0xff] %vm2577_vm6, %v2558_v7  ;;  %4074 = vmatmul.mubr.msk.f32.gmra.mrb[12].mxu1 %vm2723_vm8, %v2713_v52 }
 0x445   : > { %v2657_v10 = vpop.permute.xlu1 %2656 }
 0x446   : > { %v2655_v9 = vpop.permute.xlu0 %2654  ;;  %2690 = vst.msk [vmem:[#allocation7 + $0x78] sm:$0xff] %vm2674_vm7, %v2657_v10 }
 0x447   : > { %2689 = vst.msk [vmem:[#allocation7 + $0x70] sm:$0xff] %vm2674_vm7, %v2655_v9 }
 0x44d   : > { %v2715_v13 = vld [vmem:[#allocation7 + $0x78] sm:$0xff] }
 0x44e   : > { %v2714_v11 = vld [vmem:[#allocation7 + $0x70] sm:$0xff] }
 0x44f   : > { %4076 = vmatprep.mubr.msk.f32.mxu1 %vm2723_vm8, %v2714_v11 }
 0x450   : > { %4077 = vmatmul.mubr.msk.f32.gmra.mrb[14].mxu1 %vm2723_vm8, %v2715_v13 }
 0x455   : > { %v4057_v15 = vpop.f32.mrb[0].mxu1 }
 0x456   : > { %v2844_v16 = vadd.f32 %v4057_v15, %v5418_v14  ;;  %v2838_v17 = vpop.f32.mrb[1].mxu1 }
 0x457   : > { %v2839_v18 = vadd.f32 %v5418_v14, %v2838_v17 }
 0x458   : > { %v2918_v19 = vmul.f32 0.2, %v2844_v16 }
 0x459   : > { %v2917_v20 = vmul.f32 0.2, %v2839_v18 }
 0x45a   : > { %v2934_v21 = vmax.f32 %v2844_v16, %v2918_v19 }
 0x45b   : > { %v2933_v22 = vmax.f32 %v2839_v18, %v2917_v20 }
 0x45c   : > { %2950 = vst.msk [vmem:[%s4448_s29 + $0x8] sm:$0xff] %vm1819_vm12, %v2934_v21  ;;  %v2998_v28 = vcombine.high %v2934_v21, %v2934_v21  ;;  %v3005_v60 = vrot.slane %v2934_v21, %v5426_v27 }
 0x45d   : > { %2949 = vst.msk [vmem:[%s4448_s29] sm:$0xff] %vm1819_vm12, %v2933_v22  ;;  %v2981_v30 = vcombine.high %v2933_v22, %v2933_v22  ;;  %v2988_v31 = vrot.slane %v2933_v22, %v5426_v27 }
 0x45e   : > { %v3012_v33 = vrot.slane %v2998_v28, %v5426_v27  ;;  %v3013_v36 = vcombine.high %v3005_v60, %v3005_v60  ;;  %v3354_v44 = vsel %vm3317_vm9, %v3005_v60, -inf }
 0x45f   : > { %v2995_v38 = vrot.slane %v2981_v30, %v5426_v27  ;;  %v2996_v40 = vcombine.high %v2988_v31, %v2988_v31  ;;  %v3318_v45 = vsel %vm3317_vm9, %v2988_v31, -inf }
 0x460   : > { %v3014_v42 = vcombine.high %v3012_v33, %v3012_v33  ;;  %v3363_v5 = vsel %vm3317_vm9, %v3013_v36, -inf  ;;  %v3372_v46 = vsel %vm3317_vm9, %v3012_v33, -inf }
 0x461   : > { %v2997_v47 = vcombine.high %v2995_v38, %v2995_v38  ;;  %v3327_v50 = vsel %vm3317_vm9, %v2996_v40, -inf  ;;  %v3336_v12 = vsel %vm3317_vm9, %v2995_v38, -inf }
 0x462   : > { %v3381_v54 = vsel %vm3317_vm9, %v3014_v42, -inf }
 0x463   : > { %v3345_v22 = vsel %vm3317_vm9, %v2997_v47, -inf }
 0x475   : > { %v4060_v32 = vpop.f32.mrb[2].mxu1 }
 0x476   : > { %v2854_v29 = vadd.f32 %v4060_v32, %v5418_v14  ;;  %v2848_v35 = vpop.f32.mrb[3].mxu1 }
 0x477   : > { %v2849_v37 = vadd.f32 %v5418_v14, %v2848_v35 }
 0x478   : > { %v2920_v34 = vmul.f32 0.2, %v2854_v29 }
 0x479   : > { %v2919_v41 = vmul.f32 0.2, %v2849_v37 }
 0x47a   : > { %v2936_v43 = vmax.f32 %v2854_v29, %v2920_v34 }
 0x47b   : > { %v2935_v39 = vmax.f32 %v2849_v37, %v2919_v41 }
 0x47c   : > { %2952 = vst.msk [vmem:[%s4448_s29 + $0x18] sm:$0xff] %vm1819_vm12, %v2936_v43  ;;  %v3032_v0 = vcombine.high %v2936_v43, %v2936_v43  ;;  %v3039_v48 = vrot.slane %v2936_v43, %v5426_v27 }
 0x47d   : > { %2951 = vst.msk [vmem:[%s4448_s29 + $0x10] sm:$0xff] %vm1819_vm12, %v2935_v39  ;;  %v3015_v51 = vcombine.high %v2935_v39, %v2935_v39  ;;  %v3022_v53 = vrot.slane %v2935_v39, %v5426_v27 }
 0x47e   : > { %v3046_v55 = vrot.slane %v3032_v0, %v5426_v27  ;;  %v3047_v56 = vcombine.high %v3039_v48, %v3039_v48  ;;  %v3355_v58 = vsel %vm3317_vm9, %v3039_v48, -inf }
 0x47f   : > { %v3356_v59 = vmax.f32 %v3354_v44, %v3355_v58  ;;  %v3029_v61 = vrot.slane %v3015_v51, %v5426_v27  ;;  %v3030_v62 = vcombine.high %v3022_v53, %v3022_v53  ;;  %v3319_v63 = vsel %vm3317_vm9, %v3022_v53, -inf }
 0x480   : > { %v3048_v1 = vcombine.high %v3046_v55, %v3046_v55  ;;  %v3364_v49 = vsel %vm3317_vm9, %v3047_v56, -inf  ;;  %v3373_v2 = vsel %vm3317_vm9, %v3046_v55, -inf  ;;  %v3320_v3 = vmax.f32 %v3318_v45, %v3319_v63 }
 0x481   : > { %v3357_v4 = vrot.slane %v3356_v59, 4  ;;  %v3365_v6 = vmax.f32 %v3363_v5, %v3364_v49  ;;  %v3374_v7 = vmax.f32 %v3372_v46, %v3373_v2  ;;  %v3031_v8 = vcombine.high %v3029_v61, %v3029_v61 }
 0x482   : > { %v3382_v52 = vsel %vm3317_vm9, %v3048_v1, -inf  ;;  %v3321_v9 = vrot.slane %v3320_v3, 4  ;;  %v3328_v10 = vsel %vm3317_vm9, %v3030_v62, -inf  ;;  %v3337_v11 = vsel %vm3317_vm9, %v3029_v61, -inf }
 0x483   : > { %v3358_v13 = vmax.f32 %v3356_v59, %v3357_v4  ;;  %v3366_v15 = vrot.slane %v3365_v6, 4  ;;  %v3375_v16 = vrot.slane %v3374_v7, 4  ;;  %v3383_v17 = vmax.f32 %v3381_v54, %v3382_v52 }
 0x484   : > { %v3322_v18 = vmax.f32 %v3320_v3, %v3321_v9  ;;  %v3329_v19 = vmax.f32 %v3327_v50, %v3328_v10  ;;  %v3338_v20 = vmax.f32 %v3336_v12, %v3337_v11  ;;  %v3346_v21 = vsel %vm3317_vm9, %v3031_v8, -inf }
 0x485   : > { %v3367_v23 = vmax.f32 %v3365_v6, %v3366_v15  ;;  %v3376_v57 = vmax.f32 %v3374_v7, %v3375_v16  ;;  %v3384_v24 = vrot.slane %v3383_v17, 4  ;;  %v3347_v60 = vmax.f32 %v3345_v22, %v3346_v21 }
 0x486   : > { %v3323_v25 = vrot.slane %v3322_v18, 2  ;;  %v3330_v26 = vrot.slane %v3329_v19, 4  ;;  %v3339_v28 = vrot.slane %v3338_v20, 4  ;;  %v3359_v30 = vrot.slane %v3358_v13, 2 }
 0x487   : > { %v3368_v31 = vrot.slane %v3367_v23, 2  ;;  %v3385_v32 = vmax.f32 %v3383_v17, %v3384_v24  ;;  %v3348_v36 = vrot.slane %v3347_v60, 4  ;;  %v3377_v37 = vrot.slane %v3376_v57, 2 }
 0x488   : > { %v3324_v33 = vmax.f32 %v3322_v18, %v3323_v25  ;;  %v3331_v29 = vmax.f32 %v3329_v19, %v3330_v26  ;;  %v3340_v35 = vmax.f32 %v3338_v20, %v3339_v28  ;;  %v3360_v42 = vmax.f32 %v3358_v13, %v3359_v30 }
 0x489   : > { %v3386_v38 = vrot.slane %v3385_v32, 2  ;;  %v3349_v41 = vmax.f32 %v3347_v60, %v3348_v36  ;;  %v3369_v43 = vmax.f32 %v3367_v23, %v3368_v31  ;;  %v3378_v46 = vmax.f32 %v3376_v57, %v3377_v37 }
 0x48a   : > { %v3332_v34 = vrot.slane %v3331_v29, 2  ;;  %v3341_v40 = vrot.slane %v3340_v35, 2  ;;  %v3325_v44 = vrot.slane %v3324_v33, 1  ;;  %v3361_v12 = vrot.slane %v3360_v42, 1 }
 0x48b   : > { %v3350_v39 = vrot.slane %v3349_v41, 2  ;;  %v3387_v47 = vmax.f32 %v3385_v32, %v3386_v38  ;;  %v3370_v51 = vrot.slane %v3369_v43, 1  ;;  %v3379_v58 = vrot.slane %v3378_v46, 1 }
 0x48c   : > { %v3333_v5 = vmax.f32 %v3331_v29, %v3332_v34  ;;  %v3342_v45 = vmax.f32 %v3340_v35, %v3341_v40  ;;  %v3326_v53 = vmax.f32 %v3324_v33, %v3325_v44  ;;  %v3362_v63 = vmax.f32 %v3360_v42, %v3361_v12 }
 0x48d   : > { %v3351_v50 = vmax.f32 %v3349_v41, %v3350_v39  ;;  %v3388_v59 = vrot.slane %v3387_v47, 1  ;;  %v3371_v49 = vmax.f32 %v3369_v43, %v3370_v51  ;;  %v3380_v3 = vmax.f32 %v3378_v46, %v3379_v58 }
 0x48e   : > { %v3334_v0 = vrot.slane %v3333_v5, 1  ;;  %v3343_v48 = vrot.slane %v3342_v45, 1 }
 0x48f   : > { %v3352_v56 = vrot.slane %v3351_v50, 1  ;;  %v3389_v7 = vmax.f32 %v3387_v47, %v3388_v59 }
 0x490   : > { %v3335_v54 = vmax.f32 %v3333_v5, %v3334_v0  ;;  %v3344_v55 = vmax.f32 %v3342_v45, %v3343_v48 }
 0x491   : > { %v3353_v61 = vmax.f32 %v3351_v50, %v3352_v56 }
 0x492   : > { %v3639_v62 = vsel %vm3638_vm10, %v3335_v54, %v3326_v53 }
 0x493   : > { %v3641_v1 = vsel %vm3640_vm11, %v3344_v55, %v3639_v62 }
 0x494   : > { %v3643_v2 = vsel %vm3642_vm13, %v3353_v61, %v3641_v1 }
 0x495   : > { %v3645_v4 = vsel %vm3644_vm14, %v3362_v63, %v3643_v2  ;;  %v4063_v6 = vpop.f32.mrb[4].mxu1 }
 0x496   : > { %v3647_v8 = vsel %vm3646_vm15, %v3371_v49, %v3645_v4  ;;  %v2864_v52 = vadd.f32 %v4063_v6, %v5418_v14  ;;  %v2858_v9 = vpop.f32.mrb[5].mxu1 }
 0x497   : > { %v3649_v10 = vsel %vm3648_vm0, %v3380_v3, %v3647_v8  ;;  %v2859_v11 = vadd.f32 %v5418_v14, %v2858_v9 }
 0x498   : > { %v3651_v13 = vsel %vm3650_vm1, %v3389_v7, %v3649_v10  ;;  %v2922_v15 = vmul.f32 0.2, %v2864_v52 }
 0x499   : > { %3677 = vst.msk [vmem:[%s4459_s15] sm:$0xff] %vm1819_vm12, %v3651_v13  ;;  %v2921_v16 = vmul.f32 0.2, %v2859_v11 }
 0x49a   : > { %v2938_v17 = vmax.f32 %v2864_v52, %v2922_v15 }
 0x49b   : > { %v2937_v18 = vmax.f32 %v2859_v11, %v2921_v16 }
 0x49c   : > { %2954 = vst.msk [vmem:[%s4448_s29 + $0x28] sm:$0xff] %vm1819_vm12, %v2938_v17  ;;  %v3066_v19 = vcombine.high %v2938_v17, %v2938_v17  ;;  %v3073_v20 = vrot.slane %v2938_v17, %v5426_v27 }
 0x49d   : > { %2953 = vst.msk [vmem:[%s4448_s29 + $0x20] sm:$0xff] %vm1819_vm12, %v2937_v18  ;;  %v3049_v21 = vcombine.high %v2937_v18, %v2937_v18  ;;  %v3056_v22 = vrot.slane %v2937_v18, %v5426_v27 }
 0x49e   : > { %v3080_v57 = vrot.slane %v3066_v19, %v5426_v27  ;;  %v3081_v26 = vcombine.high %v3073_v20, %v3073_v20  ;;  %v3426_v35 = vsel %vm3317_vm9, %v3073_v20, -inf }
 0x49f   : > { %v3063_v60 = vrot.slane %v3049_v21, %v5426_v27  ;;  %v3064_v31 = vcombine.high %v3056_v22, %v3056_v22  ;;  %v3390_v37 = vsel %vm3317_vm9, %v3056_v22, -inf }
 0x4a0   : > { %v3082_v33 = vcombine.high %v3080_v57, %v3080_v57  ;;  %v3435_v36 = vsel %vm3317_vm9, %v3081_v26, -inf  ;;  %v3444_v34 = vsel %vm3317_vm9, %v3080_v57, -inf }
 0x4a1   : > { %v3065_v40 = vcombine.high %v3063_v60, %v3063_v60  ;;  %v3399_v43 = vsel %vm3317_vm9, %v3064_v31, -inf  ;;  %v3408_v44 = vsel %vm3317_vm9, %v3063_v60, -inf }
 0x4a2   : > { %v3453_v39 = vsel %vm3317_vm9, %v3082_v33, -inf }
 0x4a3   : > { %v3417_v11 = vsel %vm3317_vm9, %v3065_v40, -inf }
 0x4b5   : > { %v4066_v23 = vpop.f32.mrb[6].mxu1 }
 0x4b6   : > { %v2874_v24 = vadd.f32 %v4066_v23, %v5418_v14  ;;  %v2868_v25 = vpop.f32.mrb[7].mxu1 }
 0x4b7   : > { %v2869_v28 = vadd.f32 %v5418_v14, %v2868_v25 }
 0x4b8   : > { %v2924_v30 = vmul.f32 0.2, %v2874_v24 }
 0x4b9   : > { %v2923_v32 = vmul.f32 0.2, %v2869_v28 }
 0x4ba   : > { %v2940_v29 = vmax.f32 %v2874_v24, %v2924_v30 }
 0x4bb   : > { %v2939_v38 = vmax.f32 %v2869_v28, %v2923_v32 }
 0x4bc   : > { %2956 = vst.msk [vmem:[%s4448_s29 + $0x38] sm:$0xff] %vm1819_vm12, %v2940_v29  ;;  %v3100_v41 = vcombine.high %v2940_v29, %v2940_v29  ;;  %v3107_v42 = vrot.slane %v2940_v29, %v5426_v27 }
 0x4bd   : > { %2955 = vst.msk [vmem:[%s4448_s29 + $0x30] sm:$0xff] %vm1819_vm12, %v2939_v38  ;;  %v3083_v5 = vcombine.high %v2939_v38, %v2939_v38  ;;  %v3090_v45 = vrot.slane %v2939_v38, %v5426_v27 }
 0x4be   : > { %v3114_v46 = vrot.slane %v3100_v41, %v5426_v27  ;;  %v3115_v47 = vcombine.high %v3107_v42, %v3107_v42  ;;  %v3427_v0 = vsel %vm3317_vm9, %v3107_v42, -inf }
 0x4bf   : > { %v3428_v48 = vmax.f32 %v3426_v35, %v3427_v0  ;;  %v3097_v50 = vrot.slane %v3083_v5, %v5426_v27  ;;  %v3098_v12 = vcombine.high %v3090_v45, %v3090_v45  ;;  %v3391_v51 = vsel %vm3317_vm9, %v3090_v45, -inf }
 0x4c0   : > { %v3116_v53 = vcombine.high %v3114_v46, %v3114_v46  ;;  %v3436_v54 = vsel %vm3317_vm9, %v3115_v47, -inf  ;;  %v3445_v55 = vsel %vm3317_vm9, %v3114_v46, -inf  ;;  %v3392_v56 = vmax.f32 %v3390_v37, %v3391_v51 }
 0x4c1   : > { %v3429_v58 = vrot.slane %v3428_v48, 4  ;;  %v3437_v59 = vmax.f32 %v3435_v36, %v3436_v54  ;;  %v3446_v61 = vmax.f32 %v3444_v34, %v3445_v55  ;;  %v3099_v62 = vcombine.high %v3097_v50, %v3097_v50 }
 0x4c2   : > { %v3454_v63 = vsel %vm3317_vm9, %v3116_v53, -inf  ;;  %v3393_v1 = vrot.slane %v3392_v56, 4  ;;  %v3400_v49 = vsel %vm3317_vm9, %v3098_v12, -inf  ;;  %v3409_v2 = vsel %vm3317_vm9, %v3097_v50, -inf }
 0x4c3   : > { %v3430_v3 = vmax.f32 %v3428_v48, %v3429_v58  ;;  %v3438_v4 = vrot.slane %v3437_v59, 4  ;;  %v3447_v6 = vrot.slane %v3446_v61, 4  ;;  %v3455_v7 = vmax.f32 %v3453_v39, %v3454_v63 }
 0x4c4   : > { %v3394_v8 = vmax.f32 %v3392_v56, %v3393_v1  ;;  %v3401_v52 = vmax.f32 %v3399_v43, %v3400_v49  ;;  %v3410_v9 = vmax.f32 %v3408_v44, %v3409_v2  ;;  %v3418_v10 = vsel %vm3317_vm9, %v3099_v62, -inf }
 0x4c5   : > { %v3439_v13 = vmax.f32 %v3437_v59, %v3438_v4  ;;  %v3448_v15 = vmax.f32 %v3446_v61, %v3447_v6  ;;  %v3456_v16 = vrot.slane %v3455_v7, 4  ;;  %v3419_v20 = vmax.f32 %v3417_v11, %v3418_v10 }
 0x4c6   : > { %v3395_v17 = vrot.slane %v3394_v8, 2  ;;  %v3402_v18 = vrot.slane %v3401_v52, 4  ;;  %v3411_v19 = vrot.slane %v3410_v9, 4  ;;  %v3431_v21 = vrot.slane %v3430_v3, 2 }
 0x4c7   : > { %v3440_v22 = vrot.slane %v3439_v13, 2  ;;  %v3457_v23 = vmax.f32 %v3455_v7, %v3456_v16  ;;  %v3420_v26 = vrot.slane %v3419_v20, 4  ;;  %v3449_v28 = vrot.slane %v3448_v15, 2 }
 0x4c8   : > { %v3396_v57 = vmax.f32 %v3394_v8, %v3395_v17  ;;  %v3403_v24 = vmax.f32 %v3401_v52, %v3402_v18  ;;  %v3412_v25 = vmax.f32 %v3410_v9, %v3411_v19  ;;  %v3432_v33 = vmax.f32 %v3430_v3, %v3431_v21 }
 0x4c9   : > { %v3458_v60 = vrot.slane %v3457_v23, 2  ;;  %v3421_v32 = vmax.f32 %v3419_v20, %v3420_v26  ;;  %v3441_v29 = vmax.f32 %v3439_v13, %v3440_v22  ;;  %v3450_v34 = vmax.f32 %v3448_v15, %v3449_v28 }
 0x4ca   : > { %v3404_v30 = vrot.slane %v3403_v24, 2  ;;  %v3413_v31 = vrot.slane %v3412_v25, 2  ;;  %v3397_v35 = vrot.slane %v3396_v57, 1  ;;  %v3433_v44 = vrot.slane %v3432_v33, 1 }
 0x4cb   : > { %v3422_v38 = vrot.slane %v3421_v32, 2  ;;  %v3459_v40 = vmax.f32 %v3457_v23, %v3458_v60  ;;  %v3442_v5 = vrot.slane %v3441_v29, 1  ;;  %v3451_v0 = vrot.slane %v3450_v34, 1 }
 0x4cc   : > { %v3405_v36 = vmax.f32 %v3403_v24, %v3404_v30  ;;  %v3414_v37 = vmax.f32 %v3412_v25, %v3413_v31  ;;  %v3398_v45 = vmax.f32 %v3396_v57, %v3397_v35  ;;  %v3434_v51 = vmax.f32 %v3432_v33, %v3433_v44 }
 0x4cd   : > { %v3423_v43 = vmax.f32 %v3421_v32, %v3422_v38  ;;  %v3460_v48 = vrot.slane %v3459_v40, 1  ;;  %v3443_v54 = vmax.f32 %v3441_v29, %v3442_v5  ;;  %v3452_v56 = vmax.f32 %v3450_v34, %v3451_v0 }
 0x4ce   : > { %v3406_v41 = vrot.slane %v3405_v36, 1  ;;  %v3415_v42 = vrot.slane %v3414_v37, 1 }
 0x4cf   : > { %v3424_v47 = vrot.slane %v3423_v43, 1  ;;  %v3461_v61 = vmax.f32 %v3459_v40, %v3460_v48 }
 0x4d0   : > { %v3407_v39 = vmax.f32 %v3405_v36, %v3406_v41  ;;  %v3416_v46 = vmax.f32 %v3414_v37, %v3415_v42 }
 0x4d1   : > { %v3425_v50 = vmax.f32 %v3423_v43, %v3424_v47 }
 0x4d2   : > { %v3652_v12 = vsel %vm3638_vm10, %v3407_v39, %v3398_v45 }
 0x4d3   : > { %v3653_v53 = vsel %vm3640_vm11, %v3416_v46, %v3652_v12 }
 0x4d4   : > { %v3654_v55 = vsel %vm3642_vm13, %v3425_v50, %v3653_v53 }
 0x4d5   : > { %v3655_v58 = vsel %vm3644_vm14, %v3434_v51, %v3654_v55  ;;  %v4069_v59 = vpop.f32.mrb[8].mxu1 }
 0x4d6   : > { %v3656_v62 = vsel %vm3646_vm15, %v3443_v54, %v3655_v58  ;;  %v2884_v63 = vadd.f32 %v4069_v59, %v5418_v14  ;;  %v2878_v1 = vpop.f32.mrb[9].mxu1 }
 0x4d7   : > { %v3657_v49 = vsel %vm3648_vm0, %v3452_v56, %v3656_v62  ;;  %v2879_v2 = vadd.f32 %v5418_v14, %v2878_v1 }
 0x4d8   : > { %v3658_v3 = vsel %vm3650_vm1, %v3461_v61, %v3657_v49  ;;  %v2926_v4 = vmul.f32 0.2, %v2884_v63 }
 0x4d9   : > { %3678 = vst.msk [vmem:[%s4459_s15 + $0x8] sm:$0xff] %vm1819_vm12, %v3658_v3  ;;  %v2925_v6 = vmul.f32 0.2, %v2879_v2 }
 0x4da   : > { %v2942_v7 = vmax.f32 %v2884_v63, %v2926_v4 }
 0x4db   : > { %v2941_v8 = vmax.f32 %v2879_v2, %v2925_v6 }
 0x4dc   : > { %2958 = vst.msk [vmem:[%s4448_s29 + $0x48] sm:$0xff] %vm1819_vm12, %v2942_v7  ;;  %v3134_v52 = vcombine.high %v2942_v7, %v2942_v7  ;;  %v3141_v9 = vrot.slane %v2942_v7, %v5426_v27 }
 0x4dd   : > { %2957 = vst.msk [vmem:[%s4448_s29 + $0x40] sm:$0xff] %vm1819_vm12, %v2941_v8  ;;  %v3117_v10 = vcombine.high %v2941_v8, %v2941_v8  ;;  %v3124_v11 = vrot.slane %v2941_v8, %v5426_v27 }
 0x4de   : > { %v3148_v15 = vrot.slane %v3134_v52, %v5426_v27  ;;  %v3149_v18 = vcombine.high %v3141_v9, %v3141_v9  ;;  %v3498_v25 = vsel %vm3317_vm9, %v3141_v9, -inf }
 0x4df   : > { %v3131_v20 = vrot.slane %v3117_v10, %v5426_v27  ;;  %v3132_v22 = vcombine.high %v3124_v11, %v3124_v11  ;;  %v3462_v28 = vsel %vm3317_vm9, %v3124_v11, -inf }
 0x4e0   : > { %v3150_v57 = vcombine.high %v3148_v15, %v3148_v15  ;;  %v3507_v26 = vsel %vm3317_vm9, %v3149_v18, -inf  ;;  %v3516_v30 = vsel %vm3317_vm9, %v3148_v15, -inf }
 0x4e1   : > { %v3133_v31 = vcombine.high %v3131_v20, %v3131_v20  ;;  %v3471_v29 = vsel %vm3317_vm9, %v3132_v22, -inf  ;;  %v3480_v35 = vsel %vm3317_vm9, %v3131_v20, -inf }
 0x4e2   : > { %v3525_v38 = vsel %vm3317_vm9, %v3150_v57, -inf }
 0x4e3   : > { %v3489_v2 = vsel %vm3317_vm9, %v3133_v31, -inf }
 0x4f5   : > { %v4072_v13 = vpop.f32.mrb[10].mxu1 }
 0x4f6   : > { %v2894_v16 = vadd.f32 %v4072_v13, %v5418_v14  ;;  %v2888_v17 = vpop.f32.mrb[11].mxu1 }
 0x4f7   : > { %v2889_v19 = vadd.f32 %v5418_v14, %v2888_v17 }
 0x4f8   : > { %v2928_v21 = vmul.f32 0.2, %v2894_v16 }
 0x4f9   : > { %v2927_v23 = vmul.f32 0.2, %v2889_v19 }
 0x4fa   : > { %v2944_v24 = vmax.f32 %v2894_v16, %v2928_v21 }
 0x4fb   : > { %v2943_v60 = vmax.f32 %v2889_v19, %v2927_v23 }
 0x4fc   : > { %2960 = vst.msk [vmem:[%s4448_s29 + $0x58] sm:$0xff] %vm1819_vm12, %v2944_v24  ;;  %v3168_v32 = vcombine.high %v2944_v24, %v2944_v24  ;;  %v3175_v33 = vrot.slane %v2944_v24, %v5426_v27 }
 0x4fd   : > { %2959 = vst.msk [vmem:[%s4448_s29 + $0x50] sm:$0xff] %vm1819_vm12, %v2943_v60  ;;  %v3151_v36 = vcombine.high %v2943_v60, %v2943_v60  ;;  %v3158_v37 = vrot.slane %v2943_v60, %v5426_v27 }
 0x4fe   : > { %v3182_v34 = vrot.slane %v3168_v32, %v5426_v27  ;;  %v3183_v40 = vcombine.high %v3175_v33, %v3175_v33  ;;  %v3499_v41 = vsel %vm3317_vm9, %v3175_v33, -inf }
 0x4ff   : > { %v3500_v42 = vmax.f32 %v3498_v25, %v3499_v41  ;;  %v3165_v43 = vrot.slane %v3151_v36, %v5426_v27  ;;  %v3166_v44 = vcombine.high %v3158_v37, %v3158_v37  ;;  %v3463_v5 = vsel %vm3317_vm9, %v3158_v37, -inf }
 0x500   : > { %v3184_v45 = vcombine.high %v3182_v34, %v3182_v34  ;;  %v3508_v39 = vsel %vm3317_vm9, %v3183_v40, -inf  ;;  %v3517_v46 = vsel %vm3317_vm9, %v3182_v34, -inf  ;;  %v3464_v47 = vmax.f32 %v3462_v28, %v3463_v5 }
 0x501   : > { %v3501_v0 = vrot.slane %v3500_v42, 4  ;;  %v3509_v48 = vmax.f32 %v3507_v26, %v3508_v39  ;;  %v3518_v50 = vmax.f32 %v3516_v30, %v3517_v46  ;;  %v3167_v12 = vcombine.high %v3165_v43, %v3165_v43 }
 0x502   : > { %v3526_v51 = vsel %vm3317_vm9, %v3184_v45, -inf  ;;  %v3465_v53 = vrot.slane %v3464_v47, 4  ;;  %v3472_v54 = vsel %vm3317_vm9, %v3166_v44, -inf  ;;  %v3481_v55 = vsel %vm3317_vm9, %v3165_v43, -inf }
 0x503   : > { %v3502_v56 = vmax.f32 %v3500_v42, %v3501_v0  ;;  %v3510_v58 = vrot.slane %v3509_v48, 4  ;;  %v3519_v59 = vrot.slane %v3518_v50, 4  ;;  %v3527_v61 = vmax.f32 %v3525_v38, %v3526_v51 }
 0x504   : > { %v3466_v62 = vmax.f32 %v3464_v47, %v3465_v53  ;;  %v3473_v63 = vmax.f32 %v3471_v29, %v3472_v54  ;;  %v3482_v1 = vmax.f32 %v3480_v35, %v3481_v55  ;;  %v3490_v49 = vsel %vm3317_vm9, %v3167_v12, -inf }
 0x505   : > { %v3511_v3 = vmax.f32 %v3509_v48, %v3510_v58  ;;  %v3520_v4 = vmax.f32 %v3518_v50, %v3519_v59  ;;  %v3528_v6 = vrot.slane %v3527_v61, 4  ;;  %v3491_v9 = vmax.f32 %v3489_v2, %v3490_v49 }
 0x506   : > { %v3467_v7 = vrot.slane %v3466_v62, 2  ;;  %v3474_v8 = vrot.slane %v3473_v63, 4  ;;  %v3483_v52 = vrot.slane %v3482_v1, 4  ;;  %v3503_v10 = vrot.slane %v3502_v56, 2 }
 0x507   : > { %v3512_v11 = vrot.slane %v3511_v3, 2  ;;  %v3529_v13 = vmax.f32 %v3527_v61, %v3528_v6  ;;  %v3492_v18 = vrot.slane %v3491_v9, 4  ;;  %v3521_v19 = vrot.slane %v3520_v4, 2 }
 0x508   : > { %v3468_v15 = vmax.f32 %v3466_v62, %v3467_v7  ;;  %v3475_v16 = vmax.f32 %v3473_v63, %v3474_v8  ;;  %v3484_v17 = vmax.f32 %v3482_v1, %v3483_v52  ;;  %v3504_v57 = vmax.f32 %v3502_v56, %v3503_v10 }
 0x509   : > { %v3530_v20 = vrot.slane %v3529_v13, 2  ;;  %v3493_v23 = vmax.f32 %v3491_v9, %v3492_v18  ;;  %v3513_v24 = vmax.f32 %v3511_v3, %v3512_v11  ;;  %v3522_v30 = vmax.f32 %v3520_v4, %v3521_v19 }
 0x50a   : > { %v3476_v21 = vrot.slane %v3475_v16, 2  ;;  %v3485_v22 = vrot.slane %v3484_v17, 2  ;;  %v3469_v25 = vrot.slane %v3468_v15, 1  ;;  %v3505_v35 = vrot.slane %v3504_v57, 1 }
 0x50b   : > { %v3494_v60 = vrot.slane %v3493_v23, 2  ;;  %v3531_v31 = vmax.f32 %v3529_v13, %v3530_v20  ;;  %v3514_v36 = vrot.slane %v3513_v24, 1  ;;  %v3523_v41 = vrot.slane %v3522_v30, 1 }
 0x50c   : > { %v3477_v26 = vmax.f32 %v3475_v16, %v3476_v21  ;;  %v3486_v28 = vmax.f32 %v3484_v17, %v3485_v22  ;;  %v3470_v37 = vmax.f32 %v3468_v15, %v3469_v25  ;;  %v3506_v5 = vmax.f32 %v3504_v57, %v3505_v35 }
 0x50d   : > { %v3495_v29 = vmax.f32 %v3493_v23, %v3494_v60  ;;  %v3532_v42 = vrot.slane %v3531_v31, 1  ;;  %v3515_v39 = vmax.f32 %v3513_v24, %v3514_v36  ;;  %v3524_v47 = vmax.f32 %v3522_v30, %v3523_v41 }
 0x50e   : > { %v3478_v32 = vrot.slane %v3477_v26, 1  ;;  %v3487_v33 = vrot.slane %v3486_v28, 1 }
 0x50f   : > { %v3496_v40 = vrot.slane %v3495_v29, 1  ;;  %v3533_v50 = vmax.f32 %v3531_v31, %v3532_v42 }
 0x510   : > { %v3479_v38 = vmax.f32 %v3477_v26, %v3478_v32  ;;  %v3488_v34 = vmax.f32 %v3486_v28, %v3487_v33 }
 0x511   : > { %v3497_v43 = vmax.f32 %v3495_v29, %v3496_v40 }
 0x512   : > { %v3659_v44 = vsel %vm3638_vm10, %v3479_v38, %v3470_v37 }
 0x513   : > { %v3660_v45 = vsel %vm3640_vm11, %v3488_v34, %v3659_v44 }
 0x514   : > { %v3661_v46 = vsel %vm3642_vm13, %v3497_v43, %v3660_v45 }
 0x515   : > { %v3662_v0 = vsel %vm3644_vm14, %v3506_v5, %v3661_v46 }
 0x516   : > { %v4075_v48 = vpop.f32.mrb[12].mxu1  ;;  %v3663_v12 = vsel %vm3646_vm15, %v3515_v39, %v3662_v0 }
 0x517   : > { %v2904_v51 = vadd.f32 %v4075_v48, %v5418_v14  ;;  %v2898_v53 = vpop.f32.mrb[13].mxu1  ;;  %v3664_v54 = vsel %vm3648_vm0, %v3524_v47, %v3663_v12 }
 0x518   : > { %v2899_v55 = vadd.f32 %v5418_v14, %v2898_v53  ;;  %v3665_v56 = vsel %vm3650_vm1, %v3533_v50, %v3664_v54 }
 0x519   : > { %v2930_v58 = vmul.f32 0.2, %v2904_v51  ;;  %3679 = vst.msk [vmem:[%s4459_s15 + $0x10] sm:$0xff] %vm1819_vm12, %v3665_v56 }
 0x51a   : > { %v2929_v59 = vmul.f32 0.2, %v2899_v55 }
 0x51b   : > { %v2946_v61 = vmax.f32 %v2904_v51, %v2930_v58 }
 0x51c   : > { %v2945_v62 = vmax.f32 %v2899_v55, %v2929_v59 }
 0x51d   : > { %2962 = vst.msk [vmem:[%s4448_s29 + $0x68] sm:$0xff] %vm1819_vm12, %v2946_v61  ;;  %v3202_v63 = vcombine.high %v2946_v61, %v2946_v61  ;;  %v3209_v1 = vrot.slane %v2946_v61, %v5426_v27 }
 0x51e   : > { %2961 = vst.msk [vmem:[%s4448_s29 + $0x60] sm:$0xff] %vm1819_vm12, %v2945_v62  ;;  %v3185_v49 = vcombine.high %v2945_v62, %v2945_v62  ;;  %v3192_v2 = vrot.slane %v2945_v62, %v5426_v27 }
 0x51f   : > { %v3216_v4 = vrot.slane %v3202_v63, %v5426_v27  ;;  %v3217_v8 = vcombine.high %v3209_v1, %v3209_v1  ;;  %v3570_v17 = vsel %vm3317_vm9, %v3209_v1, -inf }
 0x520   : > { %v3199_v9 = vrot.slane %v3185_v49, %v5426_v27  ;;  %v3200_v11 = vcombine.high %v3192_v2, %v3192_v2  ;;  %v3534_v19 = vsel %vm3317_vm9, %v3192_v2, -inf }
 0x521   : > { %v3218_v15 = vcombine.high %v3216_v4, %v3216_v4  ;;  %v3579_v18 = vsel %vm3317_vm9, %v3217_v8, -inf  ;;  %v3588_v21 = vsel %vm3317_vm9, %v3216_v4, -inf }
 0x522   : > { %v3201_v22 = vcombine.high %v3199_v9, %v3199_v9  ;;  %v3543_v57 = vsel %vm3317_vm9, %v3200_v11, -inf  ;;  %v3552_v24 = vsel %vm3317_vm9, %v3199_v9, -inf }
 0x523   : > { %v4078_v3 = vpop.f32.mrb[14].mxu1  ;;  %v3597_v28 = vsel %vm3317_vm9, %v3218_v15, -inf }
 0x524   : > { %v2914_v6 = vadd.f32 %v4078_v3, %v5418_v14  ;;  %v2908_v7 = vpop.f32.mrb[15].mxu1  ;;  %v3561_v53 = vsel %vm3317_vm9, %v3201_v22, -inf }
 0x525   : > { %v2909_v52 = vadd.f32 %v5418_v14, %v2908_v7 }
 0x526   : > { %v2932_v10 = vmul.f32 0.2, %v2914_v6 }
 0x527   : > { %v2931_v13 = vmul.f32 0.2, %v2909_v52 }
 0x528   : > { %v2948_v16 = vmax.f32 %v2914_v6, %v2932_v10 }
 0x529   : > { %v2947_v20 = vmax.f32 %v2909_v52, %v2931_v13 }
 0x52a   : > { %2964 = vst.msk [vmem:[%s4448_s29 + $0x78] sm:$0xff] %vm1819_vm12, %v2948_v16  ;;  %v3236_v14 = vcombine.high %v2948_v16, %v2948_v16  ;;  %v3243_v23 = vrot.slane %v2948_v16, %v5426_v27 }
 0x52b   : > { %2963 = vst.msk [vmem:[%s4448_s29 + $0x70] sm:$0xff] %vm1819_vm12, %v2947_v20  ;;  %v3219_v25 = vcombine.high %v2947_v20, %v2947_v20  ;;  %v3226_v26 = vrot.slane %v2947_v20, %v5426_v27  ;;  %s3942_s29 = sshll.u32 %s4275_s30, 2  ;;  %s4314_s30 = smov [#allocation3]  }
 0x52c   : > { %v3250_v60 = vrot.slane %v3236_v14, %v5426_v27  ;;  %v3251_v30 = vcombine.high %v3243_v23, %v3243_v23  ;;  %v3571_v31 = vsel %vm3317_vm9, %v3243_v23, -inf  ;;  %s3704_s16 = sadd.s32 %s3943_s10, %s3942_s29  ;;  %s4201_s9 = sshll.u32 %s4314_s30, 4  ;;  %s4202_s9 = int_to_ptr.vmem [resolvable:$false] %s4201_s9 }
 0x52d   : > { %v3572_v32 = vmax.f32 %v3570_v17, %v3571_v31  ;;  %v3233_v33 = vrot.slane %v3219_v25, %v5426_v27  ;;  %v3234_v29 = vcombine.high %v3226_v26, %v3226_v26  ;;  %v3535_v35 = vsel %vm3317_vm9, %v3226_v26, -inf  ;;  %s3944_s14 = sshll.u32 %s3704_s16, 7  ;;  %p4204_p7 = scmp.lt.s32.totalorder %s5605_s12, %s4202_s9 }
 0x52e   : > { %v3252_v36 = vcombine.high %v3250_v60, %v3250_v60  ;;  %v3580_v37 = vsel %vm3317_vm9, %v3251_v30, -inf  ;;  %v3589_v38 = vsel %vm3317_vm9, %v3250_v60, -inf  ;;  %v3536_v34 = vmax.f32 %v3534_v19, %v3535_v35  ;;  %s5610_s21 = scalar_lea.hbm %s5698_s19, %s3944_s14 }
 0x52f   : > { %v3573_v40 = vrot.slane %v3572_v32, 4  ;;  %v3581_v41 = vmax.f32 %v3579_v18, %v3580_v37  ;;  %v3590_v42 = vmax.f32 %v3588_v21, %v3589_v38  ;;  %v3235_v43 = vcombine.high %v3233_v33, %v3233_v33 }
 0x530   : > { %v3598_v44 = vsel %vm3317_vm9, %v3252_v36, -inf  ;;  %v3537_v5 = vrot.slane %v3536_v34, 4  ;;  %v3544_v45 = vsel %vm3317_vm9, %v3234_v29, -inf  ;;  %v3553_v27 = vsel %vm3317_vm9, %v3233_v33, -inf }
 0x531   : > { %v3574_v39 = vmax.f32 %v3572_v32, %v3573_v40  ;;  %v3582_v46 = vrot.slane %v3581_v41, 4  ;;  %v3591_v47 = vrot.slane %v3590_v42, 4  ;;  %v3599_v0 = vmax.f32 %v3597_v28, %v3598_v44 }
 0x532   : > { %v3538_v48 = vmax.f32 %v3536_v34, %v3537_v5  ;;  %v3545_v50 = vmax.f32 %v3543_v57, %v3544_v45  ;;  %v3554_v12 = vmax.f32 %v3552_v24, %v3553_v27  ;;  %v3562_v51 = vsel %vm3317_vm9, %v3235_v43, -inf }
 0x533   : > { %v3583_v54 = vmax.f32 %v3581_v41, %v3582_v46  ;;  %v3592_v55 = vmax.f32 %v3590_v42, %v3591_v47  ;;  %v3600_v56 = vrot.slane %v3599_v0, 4  ;;  %v3563_v62 = vmax.f32 %v3561_v53, %v3562_v51 }
 0x534   : > { %v3539_v58 = vrot.slane %v3538_v48, 2  ;;  %v3546_v59 = vrot.slane %v3545_v50, 4  ;;  %v3555_v61 = vrot.slane %v3554_v12, 4  ;;  %v3575_v63 = vrot.slane %v3574_v39, 2 }
 0x535   : > { %v3584_v1 = vrot.slane %v3583_v54, 2  ;;  %v3601_v49 = vmax.f32 %v3599_v0, %v3600_v56  ;;  %v3564_v6 = vrot.slane %v3563_v62, 4  ;;  %v3593_v7 = vrot.slane %v3592_v55, 2 }
 0x536   : > { %v3540_v2 = vmax.f32 %v3538_v48, %v3539_v58  ;;  %v3547_v3 = vmax.f32 %v3545_v50, %v3546_v59  ;;  %v3556_v4 = vmax.f32 %v3554_v12, %v3555_v61  ;;  %v3576_v11 = vmax.f32 %v3574_v39, %v3575_v63 }
 0x537   : > { %v3602_v8 = vrot.slane %v3601_v49, 2  ;;  %v3565_v10 = vmax.f32 %v3563_v62, %v3564_v6  ;;  %v3585_v13 = vmax.f32 %v3583_v54, %v3584_v1  ;;  %v3594_v19 = vmax.f32 %v3592_v55, %v3593_v7 }
 0x538   : > { %v3548_v52 = vrot.slane %v3547_v3, 2  ;;  %v3557_v9 = vrot.slane %v3556_v4, 2  ;;  %v3541_v15 = vrot.slane %v3540_v2, 1  ;;  %v3577_v23 = vrot.slane %v3576_v11, 1 }
 0x539   : > { %v3566_v18 = vrot.slane %v3565_v10, 2  ;;  %v3603_v20 = vmax.f32 %v3601_v49, %v3602_v8  ;;  %v3586_v57 = vrot.slane %v3585_v13, 1  ;;  %v3595_v60 = vrot.slane %v3594_v19, 1 }
 0x53a   : > { %v3549_v16 = vmax.f32 %v3547_v3, %v3548_v52  ;;  %v3558_v17 = vmax.f32 %v3556_v4, %v3557_v9  ;;  %v3542_v24 = vmax.f32 %v3540_v2, %v3541_v15  ;;  %v3578_v33 = vmax.f32 %v3576_v11, %v3577_v23 }
 0x53b   : > { %v3567_v14 = vmax.f32 %v3565_v10, %v3566_v18  ;;  %v3604_v30 = vrot.slane %v3603_v20, 1  ;;  %v3587_v35 = vmax.f32 %v3585_v13, %v3586_v57  ;;  %v3596_v37 = vmax.f32 %v3594_v19, %v3595_v60 }
 0x53c   : > { %v3550_v21 = vrot.slane %v3549_v16, 1  ;;  %v3559_v22 = vrot.slane %v3558_v17, 1 }
 0x53d   : > { %v3568_v28 = vrot.slane %v3567_v14, 1  ;;  %v3605_v34 = vmax.f32 %v3603_v20, %v3604_v30 }
 0x53e   : > { %v3551_v25 = vmax.f32 %v3549_v16, %v3550_v21  ;;  %v3560_v26 = vmax.f32 %v3558_v17, %v3559_v22 }
 0x53f   : > { %v3569_v31 = vmax.f32 %v3567_v14, %v3568_v28 }
 0x540   : > { %v3666_v32 = vsel %vm3638_vm10, %v3551_v25, %v3542_v24 }
 0x541   : > { %v3667_v29 = vsel %vm3640_vm11, %v3560_v26, %v3666_v32 }
 0x542   : > { %v3668_v36 = vsel %vm3642_vm13, %v3569_v31, %v3667_v29 }
 0x543   : > { %v3669_v38 = vsel %vm3644_vm14, %v3578_v33, %v3668_v36 }
 0x544   : > { %v3670_v40 = vsel %vm3646_vm15, %v3587_v35, %v3669_v38 }
 0x545   : > { %v3671_v41 = vsel %vm3648_vm0, %v3596_v37, %v3670_v40 }
 0x546   : > { %v3672_v42 = vsel %vm3650_vm1, %v3605_v34, %v3671_v41 }
 0x547   : > { %3680 = vst.msk [vmem:[%s4459_s15 + $0x18] sm:$0xff] %vm1819_vm12, %v3672_v42  ;;  %s4203_s15 = scalar_lea.vmem %s4202_s9, 1024 }
 0x548   : > { %p4205_p9 = scmp.lt.s32.totalorder %s4203_s15, %s4197_s17 }
 0x54a   : > { %p4206_p10 = por %p4205_p9, %p4204_p7 }
 0x54c   : > { %p4207_p11 = pnand %p4206_p10, %p4200_p6 }
 0x54e   : > { %4210 = shalt.err (!%p4207_p11)
}
 0x54f   : > { %s4211_s13 = scalar_lea.hbm %s5610_s21, 512  ;;  %s4215_s26 = scalar_lea.hbm %s5698_s19, 2048 }
 0x550   : > { %p4212_p12 = scmp.ne.s32.totalorder %s5610_s21, %s4211_s13  ;;  %p4216_p1 = scmp.lt.u32.totalorder %s5610_s21, %s5698_s19 }
 0x551   : > { %p4217_p2 = scmp.lt.u32.totalorder %s4215_s26, %s4211_s13  ;;  %p4219_p5 = scmp.lt.u32.totalorder %s4211_s13, %s5610_s21 }
 0x552   : > { %p4213_p13 = pnand %p4212_p12, %p4413_p3 }
 0x553   : > { %p4218_p4 = por %p4217_p2, %p4216_p1 }
 0x554   : > { %p4214_p0 = pneg %p4213_p13 }
 0x555   : > { %p4220_p6 = por %p4219_p5, %p4218_p4 }
 0x557   : > { %p4221_p7 = pnand %p4220_p6, %p4214_p0 }
 0x559   : > { %4224 = shalt.err (!%p4221_p7)
}
 0x55a   : > { %s4315_s29 = smov 128   ;;  %s4316_s10 = smov 8  }
 0x55b   : > { %4103 = dma.vmem_to_hbm [thread:$0]  (%p4413_p3), %s5605_s12, 512, %s5610_s21, %s5614_s25, %s4315_s29, %s4315_s29, %s4316_s10  }
 0x55c PF: > { %s5700_s16 = sld [smem:[#allocation13_spill]]  ;;  %s5701_s14 = sld [smem:[#allocation9_spill]] }
 0x562   : > { %p4109_p9 = scmp.ge.s32.totalorder %s5700_s16, 2  ;;  %s3726_s20 = sand.u32 1, %s5701_s14  }
 0x563   : > { %s3727_s22 = scalar_lea.sflag [#allocation4], %s3726_s20 }
 0x564   : > { %p4106_p10 = pnand %p4109_p9, %p4422_p8 }
 0x566   : > { %4258 = dma.done.wait (!%p4106_p10), %s3727_s22, 512  }
 0x567   : > { %4260 = vsyncadd (!%p4106_p10), %s3727_s22, 4294966784  ;;  %s22_s12 = sadd.s32 1, %s5700_s16   ;;  %s5703_s17 = sld [smem:[#allocation10_spill]] }
 0x568   : > { %p19_p11 = scmp.ge.s32.totalorder %s22_s12, 6   ;;  %s5704_s29 = sld [smem:[#allocation17_spill]] }
 0x569   : > { %s5705_s30 = sld [smem:[#allocation11_spill]]  ;;  %s5706_s9 = sld [smem:[#allocation12_spill]] }
 0x56a   : > { %s5707_s10 = sld [smem:[#allocation14_spill]]  ;;  %s5708_s11 = sld [smem:[#allocation15_spill]] }
 0x56b   : > { %s5709_s27 = smov %s4267_s28  ;;  %21 = sbr.rel (!%p19_p11) target bundleno = 7 (0x7), region = 117 }
 0x56d   : > { %s5710_s28 = smov %s5703_s17 }
 0x572   :  { %3745 = vsyncpa [#allocation4], 1 }
 0x573   :  { %3747 = vsyncpa [#allocation4 + $0x1], 1 }

</bundles_post_ra>
